<compile_context>
chip_gen: v7x
topology: tpu7x:2x2x1
jax: 0.10.0
libtpu: 0.0.40
codegen_flags: <defaults>
</compile_context>

<pallas_src>
import jax
import jax.numpy as jnp
from jax.experimental import pallas as pl
from jax.experimental.pallas import tpu as pltpu

INPUT_DIM = 3
SEQ_LEN = 8
BATCH = 64
EMBED_DIM = 64
H_DIM = 64

HP = 128            # hidden state padded to one full 128-lane vreg (h in 0:64, zeros above)
G2 = 2 * HP         # fused gate width: block0 = [r(64)|z(64)], block1 = [n(64)|0(64)]
OUT_PAD = 128       # hidden2pos output padded to a lane-dense 128 columns


def gru_model_kernel(
    x_ref,      # (seq*batch, 3)        raw obs_traj, flattened
    wx_ref,     # (3, G2)               W_emb @ [W_ir|W_iz|W_in|0]  (repacked)
    bx_ref,     # (1, G2)               b_emb@W_i + b_i + [b_hr|b_hz|0|0]
    wh_ref,     # (HP, G2)              [W_hr|W_hz|W_hn|0], rows >= H are 0
    bhn_ref,    # (1, HP)               b_hn padded
    wout_ref,   # (HP, OUT_PAD)         hidden2pos weight padded (lane-dense)
    bout_ref,   # (1, OUT_PAD)
    out_ref,    # (seq*batch, OUT_PAD)
    xg_ref,     # (seq*batch, G2)       VMEM scratch: input-side pre-activations
    hs_ref,     # (seq*batch, HP)       VMEM scratch: per-step hidden states
):
    # ---- 1) All input-side gate pre-activations in ONE matmul (off the
    #         critical recurrence path). h-independent biases already folded.
    xg_ref[...] = (
        jnp.dot(x_ref[...], wx_ref[...], preferred_element_type=jnp.float32)
        + bx_ref[...]
    )

    # Hoist loop-invariant loads / broadcasts (JAX does not CSE broadcasts,
    # and loading wh once lets Mosaic hold the RHS across the unrolled steps).
    wh = wh_ref[...]                                        # (HP, G2)
    b_hn = jnp.broadcast_to(bhn_ref[...], (BATCH, HP))
    h0 = jnp.zeros((BATCH, HP), jnp.float32)

    # ---- 2) Recurrence: a single (B,128)@(128,256) matmul per step.
    def step(t, h):
        row = t * BATCH
        xg_t = xg_ref[pl.ds(row, BATCH), :]                 # (B, G2)
        g = jnp.dot(h, wh, preferred_element_type=jnp.float32)   # (B, G2)

        # Block 0 lanes 0:127 hold [r|z]: one shared sigmoid via the tanh
        # identity (single EUP push, no Newton divide).
        rz = 0.5 * jnp.tanh(0.5 * (xg_t[:, 0:HP] + g[:, 0:HP])) + 0.5

        # Block 1 lanes 0:63 hold the n gate; lanes 64:127 are zero padding,
        # so using rz directly as "r" is safe (its z-half multiplies zeros).
        n = jnp.tanh(xg_t[:, HP:G2] + rz * (g[:, HP:G2] + b_hn))

        # Bring z into lanes 0:63 with a 64-lane rotation (XLU slot).
        z = pltpu.roll(rz, shift=H_DIM, axis=1)

        # Padded lanes stay zero: n/h are zero there, so h_new padding is zero.
        h_new = (1.0 - z) * n + z * h
        hs_ref[pl.ds(row, BATCH), :] = h_new
        return h_new

    jax.lax.fori_loop(0, SEQ_LEN, step, h0, unroll=True)

    # ---- 3) hidden2pos for all timesteps in ONE lane-dense matmul.
    out_ref[...] = (
        jnp.dot(hs_ref[...], wout_ref[...], preferred_element_type=jnp.float32)
        + bout_ref[...]
    ).astype(out_ref.dtype)


def gru_model_forward(obs_traj, kp):
    """obs_traj: (seq, batch, 3) -> cur_pos: (seq, batch, 3)"""
    seq, batch, _ = obs_traj.shape
    x2 = obs_traj.reshape(seq * batch, INPUT_DIM)
    inputs = (x2, kp["w_x"], kp["b_x"], kp["w_h"], kp["b_hn"],
              kp["w_out"], kp["b_out"])
    vmem = pl.BlockSpec(memory_space=pltpu.MemorySpace.VMEM)
    out_pad = pl.pallas_call(
        gru_model_kernel,
        out_shape=jax.ShapeDtypeStruct((seq * batch, OUT_PAD), jnp.float32),
        in_specs=[vmem] * len(inputs),
        out_specs=vmem,
        scratch_shapes=[
            pltpu.VMEM((seq * batch, G2), jnp.float32),   # input pre-acts
            pltpu.VMEM((seq * batch, HP), jnp.float32),   # hidden states
        ],
    )(*inputs)
    # Lane-dense output slab -> real 3 coordinates (layout plumbing only).
    return out_pad[:, :INPUT_DIM].reshape(seq, batch, INPUT_DIM)


# ----------------------------------------------------------------------------
# Parameters: raw (PyTorch-equivalent, math convention) + kernel-fused/packed.
# ----------------------------------------------------------------------------
def make_params(key):
    ks = jax.random.split(key, 8)
    scale = 0.1

    def u(k, shape):
        return (jax.random.uniform(k, shape, jnp.float32) * 2.0 - 1.0) * scale

    # PyTorch Linear weight is (out, in); store transposed (in, out).
    w_emb = u(ks[0], (INPUT_DIM, EMBED_DIM))
    b_emb = u(ks[1], (1, EMBED_DIM))
    # GRU weight_ih_l0 is (3H, E), gate order r,z,n; split + transpose.
    w_ih = u(ks[2], (3 * H_DIM, EMBED_DIM))
    b_ih = u(ks[3], (1, 3 * H_DIM))
    w_hh = u(ks[4], (3 * H_DIM, H_DIM))
    b_hh = u(ks[5], (1, 3 * H_DIM))
    w_out = u(ks[6], (H_DIM, INPUT_DIM))
    b_out = u(ks[7], (1, INPUT_DIM))

    H = H_DIM
    return dict(
        w_emb=w_emb, b_emb=b_emb,
        w_ir=w_ih[0 * H:1 * H].T, b_ir=b_ih[:, 0 * H:1 * H],
        w_iz=w_ih[1 * H:2 * H].T, b_iz=b_ih[:, 1 * H:2 * H],
        w_in=w_ih[2 * H:3 * H].T, b_in=b_ih[:, 2 * H:3 * H],
        w_hr=w_hh[0 * H:1 * H].T, b_hr=b_hh[:, 0 * H:1 * H],
        w_hz=w_hh[1 * H:2 * H].T, b_hz=b_hh[:, 1 * H:2 * H],
        w_hn=w_hh[2 * H:3 * H].T, b_hn=b_hh[:, 2 * H:3 * H],
        w_out=w_out, b_out=b_out,
    )


def prepare_kernel_params(p):
    """Fuse gates into the 256-lane layout [r|z||n|0], fold spatial_embedding
    + h-independent biases, zero-pad the hidden dim to 128 and the output to
    128 lane-dense columns."""
    H = H_DIM
    f32 = jnp.float32

    # Fused input-side gate matrix, new layout: cols [0:64]=r, [64:128]=z,
    # [128:192]=n, [192:256]=0.
    w_i = jnp.concatenate(
        [p["w_ir"], p["w_iz"], p["w_in"], jnp.zeros((EMBED_DIM, H), f32)], axis=1)  # (E, G2)
    b_i = jnp.concatenate(
        [p["b_ir"], p["b_iz"], p["b_in"], jnp.zeros((1, H), f32)], axis=1)          # (1, G2)
    b_h_rz = jnp.concatenate(
        [p["b_hr"], p["b_hz"], jnp.zeros((1, 2 * H), f32)], axis=1)                 # (1, G2)

    # Fold spatial_embedding (Linear∘Linear) and all h-independent biases.
    w_x = p["w_emb"] @ w_i                              # (3, G2)
    b_x = p["b_emb"] @ w_i + b_i + b_h_rz               # (1, G2)

    # Fused hidden-side gate matrix, same column layout; pad hidden rows
    # (padded h lanes are provably zero, so zero rows keep math exact).
    w_h = jnp.concatenate(
        [p["w_hr"], p["w_hz"], p["w_hn"], jnp.zeros((H, H), f32)], axis=1)          # (H, G2)
    w_h = jnp.pad(w_h, ((0, HP - H), (0, 0)))           # (HP, G2)

    b_hn = jnp.pad(p["b_hn"], ((0, 0), (0, HP - H)))    # (1, HP)

    # hidden2pos padded to a lane-dense output (zero rows/cols beyond H / 3).
    w_out = jnp.pad(p["w_out"], ((0, HP - H), (0, OUT_PAD - INPUT_DIM)))            # (HP, OUT_PAD)
    b_out = jnp.pad(p["b_out"], ((0, 0), (0, OUT_PAD - INPUT_DIM)))                 # (1, OUT_PAD)

    return dict(w_x=w_x, b_x=b_x, w_h=w_h, b_hn=b_hn,
                w_out=w_out, b_out=b_out)


def ref_forward(obs_traj, p):
    """Pure-JAX reference of the PyTorch forward (unfused, original equations)."""
    seq, batch, _ = obs_traj.shape
    emb = obs_traj.reshape(-1, INPUT_DIM) @ p["w_emb"] + p["b_emb"]
    emb = emb.reshape(seq, batch, EMBED_DIM)
    h = jnp.zeros((batch, H_DIM), jnp.float32)
    outs = []
    for t in range(seq):
        x = emb[t]
        r = jax.nn.sigmoid(x @ p["w_ir"] + p["b_ir"] + h @ p["w_hr"] + p["b_hr"])
        z = jax.nn.sigmoid(x @ p["w_iz"] + p["b_iz"] + h @ p["w_hz"] + p["b_hz"])
        n = jnp.tanh(x @ p["w_in"] + p["b_in"] + r * (h @ p["w_hn"] + p["b_hn"]))
        h = (1.0 - z) * n + z * h
        outs.append(h @ p["w_out"] + p["b_out"])
    return jnp.stack(outs, axis=0)


if __name__ == "__main__":
    key = jax.random.PRNGKey(0)
    k_x, k_p = jax.random.split(key)
    obs_traj = jax.random.normal(k_x, (SEQ_LEN, BATCH, INPUT_DIM), jnp.float32)

    raw_params = make_params(k_p)
    kernel_params = prepare_kernel_params(raw_params)

    cur_pos = gru_model_forward(obs_traj, kernel_params)
    cur_pos = jax.block_until_ready(cur_pos)

    expected = ref_forward(obs_traj, raw_params)
    assert cur_pos.shape == (SEQ_LEN, BATCH, INPUT_DIM)
    max_err = jnp.max(jnp.abs(cur_pos - expected))
    assert max_err < 1e-4, max_err

    print("KERNEL_OK")
</pallas_src>

<mosaic_0001>
module attributes {stable_mosaic.version = 11 : i64} {
  func.func @gru_model_kernel(%arg0: memref<512x3xf32, #tpu.memory_space<vmem>>, %arg1: memref<3x256xf32, #tpu.memory_space<vmem>>, %arg2: memref<1x256xf32, #tpu.memory_space<vmem>>, %arg3: memref<128x256xf32, #tpu.memory_space<vmem>>, %arg4: memref<1x128xf32, #tpu.memory_space<vmem>>, %arg5: memref<128x128xf32, #tpu.memory_space<vmem>>, %arg6: memref<1x128xf32, #tpu.memory_space<vmem>>, %arg7: memref<512x128xf32, #tpu.memory_space<vmem>>, %arg8: memref<512x256xf32, #tpu.memory_space<vmem>>, %arg9: memref<512x128xf32, #tpu.memory_space<vmem>>) attributes {dimension_semantics = [], scalar_prefetch = 0 : i64, scratch_operands = 2 : i64, tpu.core_type = #tpu.core_type<tc>} {
    %c0 = arith.constant 0 : index
    %c0_0 = arith.constant 0 : index
    %0 = vector.load %arg0[%c0, %c0_0] : memref<512x3xf32, #tpu.memory_space<vmem>>, vector<512x3xf32>
    %c0_1 = arith.constant 0 : index
    %c0_2 = arith.constant 0 : index
    %1 = vector.load %arg1[%c0_1, %c0_2] : memref<3x256xf32, #tpu.memory_space<vmem>>, vector<3x256xf32>
    %cst = arith.constant dense<0.000000e+00> : vector<512x256xf32>
    %2 = tpu.matmul %0, %1, %cst {dimension_numbers = #tpu.dot_dimension_numbers<[1], [0], [0], [1], [0, 0, 1, 1], [], []>} : vector<512x3xf32>, vector<3x256xf32>, vector<512x256xf32> -> vector<512x256xf32>
    %c0_3 = arith.constant 0 : index
    %c0_4 = arith.constant 0 : index
    %3 = vector.load %arg2[%c0_3, %c0_4] : memref<1x256xf32, #tpu.memory_space<vmem>>, vector<1x256xf32>
    %4 = vector.broadcast %3 : vector<1x256xf32> to vector<512x256xf32>
    %5 = arith.addf %2, %4 : vector<512x256xf32>
    %c0_5 = arith.constant 0 : index
    %c0_6 = arith.constant 0 : index
    %6 = vector.load %arg8[%c0_5, %c0_6] : memref<512x256xf32, #tpu.memory_space<vmem>>, vector<512x256xf32>
    tpu.vector_store %arg8[%c0_5, %c0_6], %5 {strides = array<i32>} : memref<512x256xf32, #tpu.memory_space<vmem>>, vector<512x256xf32>,
    %c0_7 = arith.constant 0 : index
    %c0_8 = arith.constant 0 : index
    %7 = vector.load %arg3[%c0_7, %c0_8] : memref<128x256xf32, #tpu.memory_space<vmem>>, vector<128x256xf32>
    %c0_9 = arith.constant 0 : index
    %c0_10 = arith.constant 0 : index
    %8 = vector.load %arg4[%c0_9, %c0_10] : memref<1x128xf32, #tpu.memory_space<vmem>>, vector<1x128xf32>
    %9 = vector.shape_cast %8 : vector<1x128xf32> to vector<1x128xf32>
    %10 = vector.broadcast %9 : vector<1x128xf32> to vector<64x128xf32>
    %cst_11 = arith.constant 0.000000e+00 : f32
    %11 = vector.broadcast %cst_11 : f32 to vector<64x128xf32>
    %c0_i32 = arith.constant 0 : i32
    %c64_i32 = arith.constant 64 : i32
    %12 = arith.muli %c0_i32, %c64_i32 : i32
    %13 = arith.index_cast %12 : i32 to index
    %c0_12 = arith.constant 0 : index
    %14 = vector.load %arg8[%13, %c0_12] : memref<512x256xf32, #tpu.memory_space<vmem>>, vector<64x256xf32>
    %cst_13 = arith.constant dense<0.000000e+00> : vector<64x256xf32>
    %15 = tpu.matmul %11, %7, %cst_13 {dimension_numbers = #tpu.dot_dimension_numbers<[1], [0], [0], [1], [0, 0, 1, 1], [], []>} : vector<64x128xf32>, vector<128x256xf32>, vector<64x256xf32> -> vector<64x256xf32>
    %16 = vector.extract_strided_slice %14 {offsets = [0, 0], sizes = [64, 128], strides = [1, 1]} : vector<64x256xf32> to vector<64x128xf32>
    %17 = vector.extract_strided_slice %15 {offsets = [0, 0], sizes = [64, 128], strides = [1, 1]} : vector<64x256xf32> to vector<64x128xf32>
    %18 = arith.addf %16, %17 : vector<64x128xf32>
    %cst_14 = arith.constant 5.000000e-01 : f32
    %19 = vector.broadcast %cst_14 : f32 to vector<64x128xf32>
    %20 = arith.mulf %19, %18 : vector<64x128xf32>
    %21 = math.tanh %20 : vector<64x128xf32>
    %cst_15 = arith.constant 5.000000e-01 : f32
    %22 = vector.broadcast %cst_15 : f32 to vector<64x128xf32>
    %23 = arith.mulf %22, %21 : vector<64x128xf32>
    %cst_16 = arith.constant 5.000000e-01 : f32
    %24 = vector.broadcast %cst_16 : f32 to vector<64x128xf32>
    %25 = arith.addf %23, %24 : vector<64x128xf32>
    %26 = vector.extract_strided_slice %14 {offsets = [0, 128], sizes = [64, 128], strides = [1, 1]} : vector<64x256xf32> to vector<64x128xf32>
    %27 = vector.extract_strided_slice %15 {offsets = [0, 128], sizes = [64, 128], strides = [1, 1]} : vector<64x256xf32> to vector<64x128xf32>
    %28 = arith.addf %27, %10 : vector<64x128xf32>
    %29 = arith.mulf %25, %28 : vector<64x128xf32>
    %30 = arith.addf %26, %29 : vector<64x128xf32>
    %31 = math.tanh %30 : vector<64x128xf32>
    %c64_i32_17 = arith.constant 64 : i32
    %32 = tpu.dynamic_rotate %25 by %c64_i32_17 dim 1 : vector<64x128xf32>, i32 -> vector<64x128xf32>
    %cst_18 = arith.constant 1.000000e+00 : f32
    %33 = vector.broadcast %cst_18 : f32 to vector<64x128xf32>
    %34 = arith.subf %33, %32 : vector<64x128xf32>
    %35 = arith.mulf %34, %31 : vector<64x128xf32>
    %36 = arith.mulf %32, %11 : vector<64x128xf32>
    %37 = arith.addf %35, %36 : vector<64x128xf32>
    %38 = arith.index_cast %12 : i32 to index
    %c0_19 = arith.constant 0 : index
    %39 = vector.load %arg9[%38, %c0_19] : memref<512x128xf32, #tpu.memory_space<vmem>>, vector<64x128xf32>
    tpu.vector_store %arg9[%38, %c0_19], %37 {strides = array<i32>} : memref<512x128xf32, #tpu.memory_space<vmem>>, vector<64x128xf32>,
    %c1_i32 = arith.constant 1 : i32
    %c64_i32_20 = arith.constant 64 : i32
    %40 = arith.muli %c1_i32, %c64_i32_20 : i32
    %41 = arith.index_cast %40 : i32 to index
    %c0_21 = arith.constant 0 : index
    %42 = vector.load %arg8[%41, %c0_21] : memref<512x256xf32, #tpu.memory_space<vmem>>, vector<64x256xf32>
    %cst_22 = arith.constant dense<0.000000e+00> : vector<64x256xf32>
    %43 = tpu.matmul %37, %7, %cst_22 {dimension_numbers = #tpu.dot_dimension_numbers<[1], [0], [0], [1], [0, 0, 1, 1], [], []>} : vector<64x128xf32>, vector<128x256xf32>, vector<64x256xf32> -> vector<64x256xf32>
    %44 = vector.extract_strided_slice %42 {offsets = [0, 0], sizes = [64, 128], strides = [1, 1]} : vector<64x256xf32> to vector<64x128xf32>
    %45 = vector.extract_strided_slice %43 {offsets = [0, 0], sizes = [64, 128], strides = [1, 1]} : vector<64x256xf32> to vector<64x128xf32>
    %46 = arith.addf %44, %45 : vector<64x128xf32>
    %cst_23 = arith.constant 5.000000e-01 : f32
    %47 = vector.broadcast %cst_23 : f32 to vector<64x128xf32>
    %48 = arith.mulf %47, %46 : vector<64x128xf32>
    %49 = math.tanh %48 : vector<64x128xf32>
    %cst_24 = arith.constant 5.000000e-01 : f32
    %50 = vector.broadcast %cst_24 : f32 to vector<64x128xf32>
    %51 = arith.mulf %50, %49 : vector<64x128xf32>
    %cst_25 = arith.constant 5.000000e-01 : f32
    %52 = vector.broadcast %cst_25 : f32 to vector<64x128xf32>
    %53 = arith.addf %51, %52 : vector<64x128xf32>
    %54 = vector.extract_strided_slice %42 {offsets = [0, 128], sizes = [64, 128], strides = [1, 1]} : vector<64x256xf32> to vector<64x128xf32>
    %55 = vector.extract_strided_slice %43 {offsets = [0, 128], sizes = [64, 128], strides = [1, 1]} : vector<64x256xf32> to vector<64x128xf32>
    %56 = arith.addf %55, %10 : vector<64x128xf32>
    %57 = arith.mulf %53, %56 : vector<64x128xf32>
    %58 = arith.addf %54, %57 : vector<64x128xf32>
    %59 = math.tanh %58 : vector<64x128xf32>
    %c64_i32_26 = arith.constant 64 : i32
    %60 = tpu.dynamic_rotate %53 by %c64_i32_26 dim 1 : vector<64x128xf32>, i32 -> vector<64x128xf32>
    %cst_27 = arith.constant 1.000000e+00 : f32
    %61 = vector.broadcast %cst_27 : f32 to vector<64x128xf32>
    %62 = arith.subf %61, %60 : vector<64x128xf32>
    %63 = arith.mulf %62, %59 : vector<64x128xf32>
    %64 = arith.mulf %60, %37 : vector<64x128xf32>
    %65 = arith.addf %63, %64 : vector<64x128xf32>
    %66 = arith.index_cast %40 : i32 to index
    %c0_28 = arith.constant 0 : index
    %67 = vector.load %arg9[%66, %c0_28] : memref<512x128xf32, #tpu.memory_space<vmem>>, vector<64x128xf32>
    tpu.vector_store %arg9[%66, %c0_28], %65 {strides = array<i32>} : memref<512x128xf32, #tpu.memory_space<vmem>>, vector<64x128xf32>,
    %c2_i32 = arith.constant 2 : i32
    %c64_i32_29 = arith.constant 64 : i32
    %68 = arith.muli %c2_i32, %c64_i32_29 : i32
    %69 = arith.index_cast %68 : i32 to index
    %c0_30 = arith.constant 0 : index
    %70 = vector.load %arg8[%69, %c0_30] : memref<512x256xf32, #tpu.memory_space<vmem>>, vector<64x256xf32>
    %cst_31 = arith.constant dense<0.000000e+00> : vector<64x256xf32>
    %71 = tpu.matmul %65, %7, %cst_31 {dimension_numbers = #tpu.dot_dimension_numbers<[1], [0], [0], [1], [0, 0, 1, 1], [], []>} : vector<64x128xf32>, vector<128x256xf32>, vector<64x256xf32> -> vector<64x256xf32>
    %72 = vector.extract_strided_slice %70 {offsets = [0, 0], sizes = [64, 128], strides = [1, 1]} : vector<64x256xf32> to vector<64x128xf32>
    %73 = vector.extract_strided_slice %71 {offsets = [0, 0], sizes = [64, 128], strides = [1, 1]} : vector<64x256xf32> to vector<64x128xf32>
    %74 = arith.addf %72, %73 : vector<64x128xf32>
    %cst_32 = arith.constant 5.000000e-01 : f32
    %75 = vector.broadcast %cst_32 : f32 to vector<64x128xf32>
    %76 = arith.mulf %75, %74 : vector<64x128xf32>
    %77 = math.tanh %76 : vector<64x128xf32>
    %cst_33 = arith.constant 5.000000e-01 : f32
    %78 = vector.broadcast %cst_33 : f32 to vector<64x128xf32>
    %79 = arith.mulf %78, %77 : vector<64x128xf32>
    %cst_34 = arith.constant 5.000000e-01 : f32
    %80 = vector.broadcast %cst_34 : f32 to vector<64x128xf32>
    %81 = arith.addf %79, %80 : vector<64x128xf32>
    %82 = vector.extract_strided_slice %70 {offsets = [0, 128], sizes = [64, 128], strides = [1, 1]} : vector<64x256xf32> to vector<64x128xf32>
    %83 = vector.extract_strided_slice %71 {offsets = [0, 128], sizes = [64, 128], strides = [1, 1]} : vector<64x256xf32> to vector<64x128xf32>
    %84 = arith.addf %83, %10 : vector<64x128xf32>
    %85 = arith.mulf %81, %84 : vector<64x128xf32>
    %86 = arith.addf %82, %85 : vector<64x128xf32>
    %87 = math.tanh %86 : vector<64x128xf32>
    %c64_i32_35 = arith.constant 64 : i32
    %88 = tpu.dynamic_rotate %81 by %c64_i32_35 dim 1 : vector<64x128xf32>, i32 -> vector<64x128xf32>
    %cst_36 = arith.constant 1.000000e+00 : f32
    %89 = vector.broadcast %cst_36 : f32 to vector<64x128xf32>
    %90 = arith.subf %89, %88 : vector<64x128xf32>
    %91 = arith.mulf %90, %87 : vector<64x128xf32>
    %92 = arith.mulf %88, %65 : vector<64x128xf32>
    %93 = arith.addf %91, %92 : vector<64x128xf32>
    %94 = arith.index_cast %68 : i32 to index
    %c0_37 = arith.constant 0 : index
    %95 = vector.load %arg9[%94, %c0_37] : memref<512x128xf32, #tpu.memory_space<vmem>>, vector<64x128xf32>
    tpu.vector_store %arg9[%94, %c0_37], %93 {strides = array<i32>} : memref<512x128xf32, #tpu.memory_space<vmem>>, vector<64x128xf32>,
    %c3_i32 = arith.constant 3 : i32
    %c64_i32_38 = arith.constant 64 : i32
    %96 = arith.muli %c3_i32, %c64_i32_38 : i32
    %97 = arith.index_cast %96 : i32 to index
    %c0_39 = arith.constant 0 : index
    %98 = vector.load %arg8[%97, %c0_39] : memref<512x256xf32, #tpu.memory_space<vmem>>, vector<64x256xf32>
    %cst_40 = arith.constant dense<0.000000e+00> : vector<64x256xf32>
    %99 = tpu.matmul %93, %7, %cst_40 {dimension_numbers = #tpu.dot_dimension_numbers<[1], [0], [0], [1], [0, 0, 1, 1], [], []>} : vector<64x128xf32>, vector<128x256xf32>, vector<64x256xf32> -> vector<64x256xf32>
    %100 = vector.extract_strided_slice %98 {offsets = [0, 0], sizes = [64, 128], strides = [1, 1]} : vector<64x256xf32> to vector<64x128xf32>
    %101 = vector.extract_strided_slice %99 {offsets = [0, 0], sizes = [64, 128], strides = [1, 1]} : vector<64x256xf32> to vector<64x128xf32>
    %102 = arith.addf %100, %101 : vector<64x128xf32>
    %cst_41 = arith.constant 5.000000e-01 : f32
    %103 = vector.broadcast %cst_41 : f32 to vector<64x128xf32>
    %104 = arith.mulf %103, %102 : vector<64x128xf32>
    %105 = math.tanh %104 : vector<64x128xf32>
    %cst_42 = arith.constant 5.000000e-01 : f32
    %106 = vector.broadcast %cst_42 : f32 to vector<64x128xf32>
    %107 = arith.mulf %106, %105 : vector<64x128xf32>
    %cst_43 = arith.constant 5.000000e-01 : f32
    %108 = vector.broadcast %cst_43 : f32 to vector<64x128xf32>
    %109 = arith.addf %107, %108 : vector<64x128xf32>
    %110 = vector.extract_strided_slice %98 {offsets = [0, 128], sizes = [64, 128], strides = [1, 1]} : vector<64x256xf32> to vector<64x128xf32>
    %111 = vector.extract_strided_slice %99 {offsets = [0, 128], sizes = [64, 128], strides = [1, 1]} : vector<64x256xf32> to vector<64x128xf32>
    %112 = arith.addf %111, %10 : vector<64x128xf32>
    %113 = arith.mulf %109, %112 : vector<64x128xf32>
    %114 = arith.addf %110, %113 : vector<64x128xf32>
    %115 = math.tanh %114 : vector<64x128xf32>
    %c64_i32_44 = arith.constant 64 : i32
    %116 = tpu.dynamic_rotate %109 by %c64_i32_44 dim 1 : vector<64x128xf32>, i32 -> vector<64x128xf32>
    %cst_45 = arith.constant 1.000000e+00 : f32
    %117 = vector.broadcast %cst_45 : f32 to vector<64x128xf32>
    %118 = arith.subf %117, %116 : vector<64x128xf32>
    %119 = arith.mulf %118, %115 : vector<64x128xf32>
    %120 = arith.mulf %116, %93 : vector<64x128xf32>
    %121 = arith.addf %119, %120 : vector<64x128xf32>
    %122 = arith.index_cast %96 : i32 to index
    %c0_46 = arith.constant 0 : index
    %123 = vector.load %arg9[%122, %c0_46] : memref<512x128xf32, #tpu.memory_space<vmem>>, vector<64x128xf32>
    tpu.vector_store %arg9[%122, %c0_46], %121 {strides = array<i32>} : memref<512x128xf32, #tpu.memory_space<vmem>>, vector<64x128xf32>,
    %c4_i32 = arith.constant 4 : i32
    %c64_i32_47 = arith.constant 64 : i32
    %124 = arith.muli %c4_i32, %c64_i32_47 : i32
    %125 = arith.index_cast %124 : i32 to index
    %c0_48 = arith.constant 0 : index
    %126 = vector.load %arg8[%125, %c0_48] : memref<512x256xf32, #tpu.memory_space<vmem>>, vector<64x256xf32>
    %cst_49 = arith.constant dense<0.000000e+00> : vector<64x256xf32>
    %127 = tpu.matmul %121, %7, %cst_49 {dimension_numbers = #tpu.dot_dimension_numbers<[1], [0], [0], [1], [0, 0, 1, 1], [], []>} : vector<64x128xf32>, vector<128x256xf32>, vector<64x256xf32> -> vector<64x256xf32>
    %128 = vector.extract_strided_slice %126 {offsets = [0, 0], sizes = [64, 128], strides = [1, 1]} : vector<64x256xf32> to vector<64x128xf32>
    %129 = vector.extract_strided_slice %127 {offsets = [0, 0], sizes = [64, 128], strides = [1, 1]} : vector<64x256xf32> to vector<64x128xf32>
    %130 = arith.addf %128, %129 : vector<64x128xf32>
    %cst_50 = arith.constant 5.000000e-01 : f32
    %131 = vector.broadcast %cst_50 : f32 to vector<64x128xf32>
    %132 = arith.mulf %131, %130 : vector<64x128xf32>
    %133 = math.tanh %132 : vector<64x128xf32>
    %cst_51 = arith.constant 5.000000e-01 : f32
    %134 = vector.broadcast %cst_51 : f32 to vector<64x128xf32>
    %135 = arith.mulf %134, %133 : vector<64x128xf32>
    %cst_52 = arith.constant 5.000000e-01 : f32
    %136 = vector.broadcast %cst_52 : f32 to vector<64x128xf32>
    %137 = arith.addf %135, %136 : vector<64x128xf32>
    %138 = vector.extract_strided_slice %126 {offsets = [0, 128], sizes = [64, 128], strides = [1, 1]} : vector<64x256xf32> to vector<64x128xf32>
    %139 = vector.extract_strided_slice %127 {offsets = [0, 128], sizes = [64, 128], strides = [1, 1]} : vector<64x256xf32> to vector<64x128xf32>
    %140 = arith.addf %139, %10 : vector<64x128xf32>
    %141 = arith.mulf %137, %140 : vector<64x128xf32>
    %142 = arith.addf %138, %141 : vector<64x128xf32>
    %143 = math.tanh %142 : vector<64x128xf32>
    %c64_i32_53 = arith.constant 64 : i32
    %144 = tpu.dynamic_rotate %137 by %c64_i32_53 dim 1 : vector<64x128xf32>, i32 -> vector<64x128xf32>
    %cst_54 = arith.constant 1.000000e+00 : f32
    %145 = vector.broadcast %cst_54 : f32 to vector<64x128xf32>
    %146 = arith.subf %145, %144 : vector<64x128xf32>
    %147 = arith.mulf %146, %143 : vector<64x128xf32>
    %148 = arith.mulf %144, %121 : vector<64x128xf32>
    %149 = arith.addf %147, %148 : vector<64x128xf32>
    %150 = arith.index_cast %124 : i32 to index
    %c0_55 = arith.constant 0 : index
    %151 = vector.load %arg9[%150, %c0_55] : memref<512x128xf32, #tpu.memory_space<vmem>>, vector<64x128xf32>
    tpu.vector_store %arg9[%150, %c0_55], %149 {strides = array<i32>} : memref<512x128xf32, #tpu.memory_space<vmem>>, vector<64x128xf32>,
    %c5_i32 = arith.constant 5 : i32
    %c64_i32_56 = arith.constant 64 : i32
    %152 = arith.muli %c5_i32, %c64_i32_56 : i32
    %153 = arith.index_cast %152 : i32 to index
    %c0_57 = arith.constant 0 : index
    %154 = vector.load %arg8[%153, %c0_57] : memref<512x256xf32, #tpu.memory_space<vmem>>, vector<64x256xf32>
    %cst_58 = arith.constant dense<0.000000e+00> : vector<64x256xf32>
    %155 = tpu.matmul %149, %7, %cst_58 {dimension_numbers = #tpu.dot_dimension_numbers<[1], [0], [0], [1], [0, 0, 1, 1], [], []>} : vector<64x128xf32>, vector<128x256xf32>, vector<64x256xf32> -> vector<64x256xf32>
    %156 = vector.extract_strided_slice %154 {offsets = [0, 0], sizes = [64, 128], strides = [1, 1]} : vector<64x256xf32> to vector<64x128xf32>
    %157 = vector.extract_strided_slice %155 {offsets = [0, 0], sizes = [64, 128], strides = [1, 1]} : vector<64x256xf32> to vector<64x128xf32>
    %158 = arith.addf %156, %157 : vector<64x128xf32>
    %cst_59 = arith.constant 5.000000e-01 : f32
    %159 = vector.broadcast %cst_59 : f32 to vector<64x128xf32>
    %160 = arith.mulf %159, %158 : vector<64x128xf32>
    %161 = math.tanh %160 : vector<64x128xf32>
    %cst_60 = arith.constant 5.000000e-01 : f32
    %162 = vector.broadcast %cst_60 : f32 to vector<64x128xf32>
    %163 = arith.mulf %162, %161 : vector<64x128xf32>
    %cst_61 = arith.constant 5.000000e-01 : f32
    %164 = vector.broadcast %cst_61 : f32 to vector<64x128xf32>
    %165 = arith.addf %163, %164 : vector<64x128xf32>
    %166 = vector.extract_strided_slice %154 {offsets = [0, 128], sizes = [64, 128], strides = [1, 1]} : vector<64x256xf32> to vector<64x128xf32>
    %167 = vector.extract_strided_slice %155 {offsets = [0, 128], sizes = [64, 128], strides = [1, 1]} : vector<64x256xf32> to vector<64x128xf32>
    %168 = arith.addf %167, %10 : vector<64x128xf32>
    %169 = arith.mulf %165, %168 : vector<64x128xf32>
    %170 = arith.addf %166, %169 : vector<64x128xf32>
    %171 = math.tanh %170 : vector<64x128xf32>
    %c64_i32_62 = arith.constant 64 : i32
    %172 = tpu.dynamic_rotate %165 by %c64_i32_62 dim 1 : vector<64x128xf32>, i32 -> vector<64x128xf32>
    %cst_63 = arith.constant 1.000000e+00 : f32
    %173 = vector.broadcast %cst_63 : f32 to vector<64x128xf32>
    %174 = arith.subf %173, %172 : vector<64x128xf32>
    %175 = arith.mulf %174, %171 : vector<64x128xf32>
    %176 = arith.mulf %172, %149 : vector<64x128xf32>
    %177 = arith.addf %175, %176 : vector<64x128xf32>
    %178 = arith.index_cast %152 : i32 to index
    %c0_64 = arith.constant 0 : index
    %179 = vector.load %arg9[%178, %c0_64] : memref<512x128xf32, #tpu.memory_space<vmem>>, vector<64x128xf32>
    tpu.vector_store %arg9[%178, %c0_64], %177 {strides = array<i32>} : memref<512x128xf32, #tpu.memory_space<vmem>>, vector<64x128xf32>,
    %c6_i32 = arith.constant 6 : i32
    %c64_i32_65 = arith.constant 64 : i32
    %180 = arith.muli %c6_i32, %c64_i32_65 : i32
    %181 = arith.index_cast %180 : i32 to index
    %c0_66 = arith.constant 0 : index
    %182 = vector.load %arg8[%181, %c0_66] : memref<512x256xf32, #tpu.memory_space<vmem>>, vector<64x256xf32>
    %cst_67 = arith.constant dense<0.000000e+00> : vector<64x256xf32>
    %183 = tpu.matmul %177, %7, %cst_67 {dimension_numbers = #tpu.dot_dimension_numbers<[1], [0], [0], [1], [0, 0, 1, 1], [], []>} : vector<64x128xf32>, vector<128x256xf32>, vector<64x256xf32> -> vector<64x256xf32>
    %184 = vector.extract_strided_slice %182 {offsets = [0, 0], sizes = [64, 128], strides = [1, 1]} : vector<64x256xf32> to vector<64x128xf32>
    %185 = vector.extract_strided_slice %183 {offsets = [0, 0], sizes = [64, 128], strides = [1, 1]} : vector<64x256xf32> to vector<64x128xf32>
    %186 = arith.addf %184, %185 : vector<64x128xf32>
    %cst_68 = arith.constant 5.000000e-01 : f32
    %187 = vector.broadcast %cst_68 : f32 to vector<64x128xf32>
    %188 = arith.mulf %187, %186 : vector<64x128xf32>
    %189 = math.tanh %188 : vector<64x128xf32>
    %cst_69 = arith.constant 5.000000e-01 : f32
    %190 = vector.broadcast %cst_69 : f32 to vector<64x128xf32>
    %191 = arith.mulf %190, %189 : vector<64x128xf32>
    %cst_70 = arith.constant 5.000000e-01 : f32
    %192 = vector.broadcast %cst_70 : f32 to vector<64x128xf32>
    %193 = arith.addf %191, %192 : vector<64x128xf32>
    %194 = vector.extract_strided_slice %182 {offsets = [0, 128], sizes = [64, 128], strides = [1, 1]} : vector<64x256xf32> to vector<64x128xf32>
    %195 = vector.extract_strided_slice %183 {offsets = [0, 128], sizes = [64, 128], strides = [1, 1]} : vector<64x256xf32> to vector<64x128xf32>
    %196 = arith.addf %195, %10 : vector<64x128xf32>
    %197 = arith.mulf %193, %196 : vector<64x128xf32>
    %198 = arith.addf %194, %197 : vector<64x128xf32>
    %199 = math.tanh %198 : vector<64x128xf32>
    %c64_i32_71 = arith.constant 64 : i32
    %200 = tpu.dynamic_rotate %193 by %c64_i32_71 dim 1 : vector<64x128xf32>, i32 -> vector<64x128xf32>
    %cst_72 = arith.constant 1.000000e+00 : f32
    %201 = vector.broadcast %cst_72 : f32 to vector<64x128xf32>
    %202 = arith.subf %201, %200 : vector<64x128xf32>
    %203 = arith.mulf %202, %199 : vector<64x128xf32>
    %204 = arith.mulf %200, %177 : vector<64x128xf32>
    %205 = arith.addf %203, %204 : vector<64x128xf32>
    %206 = arith.index_cast %180 : i32 to index
    %c0_73 = arith.constant 0 : index
    %207 = vector.load %arg9[%206, %c0_73] : memref<512x128xf32, #tpu.memory_space<vmem>>, vector<64x128xf32>
    tpu.vector_store %arg9[%206, %c0_73], %205 {strides = array<i32>} : memref<512x128xf32, #tpu.memory_space<vmem>>, vector<64x128xf32>,
    %c7_i32 = arith.constant 7 : i32
    %c64_i32_74 = arith.constant 64 : i32
    %208 = arith.muli %c7_i32, %c64_i32_74 : i32
    %209 = arith.index_cast %208 : i32 to index
    %c0_75 = arith.constant 0 : index
    %210 = vector.load %arg8[%209, %c0_75] : memref<512x256xf32, #tpu.memory_space<vmem>>, vector<64x256xf32>
    %cst_76 = arith.constant dense<0.000000e+00> : vector<64x256xf32>
    %211 = tpu.matmul %205, %7, %cst_76 {dimension_numbers = #tpu.dot_dimension_numbers<[1], [0], [0], [1], [0, 0, 1, 1], [], []>} : vector<64x128xf32>, vector<128x256xf32>, vector<64x256xf32> -> vector<64x256xf32>
    %212 = vector.extract_strided_slice %210 {offsets = [0, 0], sizes = [64, 128], strides = [1, 1]} : vector<64x256xf32> to vector<64x128xf32>
    %213 = vector.extract_strided_slice %211 {offsets = [0, 0], sizes = [64, 128], strides = [1, 1]} : vector<64x256xf32> to vector<64x128xf32>
    %214 = arith.addf %212, %213 : vector<64x128xf32>
    %cst_77 = arith.constant 5.000000e-01 : f32
    %215 = vector.broadcast %cst_77 : f32 to vector<64x128xf32>
    %216 = arith.mulf %215, %214 : vector<64x128xf32>
    %217 = math.tanh %216 : vector<64x128xf32>
    %cst_78 = arith.constant 5.000000e-01 : f32
    %218 = vector.broadcast %cst_78 : f32 to vector<64x128xf32>
    %219 = arith.mulf %218, %217 : vector<64x128xf32>
    %cst_79 = arith.constant 5.000000e-01 : f32
    %220 = vector.broadcast %cst_79 : f32 to vector<64x128xf32>
    %221 = arith.addf %219, %220 : vector<64x128xf32>
    %222 = vector.extract_strided_slice %210 {offsets = [0, 128], sizes = [64, 128], strides = [1, 1]} : vector<64x256xf32> to vector<64x128xf32>
    %223 = vector.extract_strided_slice %211 {offsets = [0, 128], sizes = [64, 128], strides = [1, 1]} : vector<64x256xf32> to vector<64x128xf32>
    %224 = arith.addf %223, %10 : vector<64x128xf32>
    %225 = arith.mulf %221, %224 : vector<64x128xf32>
    %226 = arith.addf %222, %225 : vector<64x128xf32>
    %227 = math.tanh %226 : vector<64x128xf32>
    %c64_i32_80 = arith.constant 64 : i32
    %228 = tpu.dynamic_rotate %221 by %c64_i32_80 dim 1 : vector<64x128xf32>, i32 -> vector<64x128xf32>
    %cst_81 = arith.constant 1.000000e+00 : f32
    %229 = vector.broadcast %cst_81 : f32 to vector<64x128xf32>
    %230 = arith.subf %229, %228 : vector<64x128xf32>
    %231 = arith.mulf %230, %227 : vector<64x128xf32>
    %232 = arith.mulf %228, %205 : vector<64x128xf32>
    %233 = arith.addf %231, %232 : vector<64x128xf32>
    %234 = arith.index_cast %208 : i32 to index
    %c0_82 = arith.constant 0 : index
    %235 = vector.load %arg9[%234, %c0_82] : memref<512x128xf32, #tpu.memory_space<vmem>>, vector<64x128xf32>
    tpu.vector_store %arg9[%234, %c0_82], %233 {strides = array<i32>} : memref<512x128xf32, #tpu.memory_space<vmem>>, vector<64x128xf32>,
    %c8_i32 = arith.constant 8 : i32
    %c0_83 = arith.constant 0 : index
    %c0_84 = arith.constant 0 : index
    %236 = vector.load %arg9[%c0_83, %c0_84] : memref<512x128xf32, #tpu.memory_space<vmem>>, vector<512x128xf32>
    %c0_85 = arith.constant 0 : index
    %c0_86 = arith.constant 0 : index
    %237 = vector.load %arg5[%c0_85, %c0_86] : memref<128x128xf32, #tpu.memory_space<vmem>>, vector<128x128xf32>
    %cst_87 = arith.constant dense<0.000000e+00> : vector<512x128xf32>
    %238 = tpu.matmul %236, %237, %cst_87 {dimension_numbers = #tpu.dot_dimension_numbers<[1], [0], [0], [1], [0, 0, 1, 1], [], []>} : vector<512x128xf32>, vector<128x128xf32>, vector<512x128xf32> -> vector<512x128xf32>
    %c0_88 = arith.constant 0 : index
    %c0_89 = arith.constant 0 : index
    %239 = vector.load %arg6[%c0_88, %c0_89] : memref<1x128xf32, #tpu.memory_space<vmem>>, vector<1x128xf32>
    %240 = vector.broadcast %239 : vector<1x128xf32> to vector<512x128xf32>
    %241 = arith.addf %238, %240 : vector<512x128xf32>
    %c0_90 = arith.constant 0 : index
    %c0_91 = arith.constant 0 : index
    %242 = vector.load %arg7[%c0_90, %c0_91] : memref<512x128xf32, #tpu.memory_space<vmem>>, vector<512x128xf32>
    tpu.vector_store %arg7[%c0_90, %c0_91], %241 {strides = array<i32>} : memref<512x128xf32, #tpu.memory_space<vmem>>, vector<512x128xf32>,
    return
  }
}

</mosaic_0001>

<bundles_post_ra>
// kernel: tpu_custom_call.1
= control target key start
LH: loop header
LB: loop body
LE: loop exit
PB: predicated region body
PF: predicated region fallthrough
CT: control target
= control target key end

     0   :  { %vm299_vm0 = vcmask 1042432   ;;  %v6274_v2 = vmov 0.0   ;;  %vm106_vm1 = vcmask 23552   ;;  %s6266_s0 = inlined_call_operand.vmem [shape: f32[512,3], index: 0, kind: input, shape index: {}]   ;;  %s6267_s1 = inlined_call_operand.vmem [shape: f32[3,256], index: 1, kind: input, shape index: {}]   ;;  %s6268_s2 = inlined_call_operand.vmem [shape: f32[1,256], index: 2, kind: input, shape index: {}]   ;;  %s6269_s3 = inlined_call_operand.vmem [shape: f32[128,256], index: 3, kind: input, shape index: {}]   ;;  %s6270_s4 = inlined_call_operand.vmem [shape: f32[1,128], index: 4, kind: input, shape index: {}]   ;;  %s6271_s5 = inlined_call_operand.vmem [shape: f32[128,128], index: 5, kind: input, shape index: {}]   ;;  %s6272_s6 = inlined_call_operand.vmem [shape: f32[1,128], index: 6, kind: input, shape index: {}]   ;;  %s6273_s7 = inlined_call_operand.hbm [shape: f32[512,128], index: 7, kind: output, shape index: {}]  }
   0x1   :  { %v91_v0 = vld [vmem:[%s6267_s1] sm:$0x77]  ;;  %656 = vmatprep.mubr.f32.mxu1 %v6274_v2  ;;  %v882_v3 = vld [vmem:[%s6269_s3 + $0x8] sm:$0xff]  ;;  %v884_v4 = vld [vmem:[%s6269_s3 + $0x18] sm:$0xff]  ;;  %368 = vmatprep.mubr.f32.mxu0 %v6274_v2 }
   0x2   :  { %v105_v1 = vcombine.high %v91_v0, %v91_v0  ;;  %v881_v5 = vld [vmem:[%s6269_s3] sm:$0xff]  ;;  %v4447_v7 = vpack.c.bf16 %v884_v4, %v882_v3  ;;  %v883_v8 = vld [vmem:[%s6269_s3 + $0x10] sm:$0xff]  ;;  %v886_v10 = vld [vmem:[%s6269_s3 + $0x28] sm:$0xff] }
   0x3   :  { %v75_v6 = vld [vmem:[%s6266_s0 + $0x180] sm:$0xff]  ;;  %v4453_v9 = vpack.c.bf16 %v883_v8, %v881_v5  ;;  %v888_v11 = vld [vmem:[%s6269_s3 + $0x38] sm:$0xff]  ;;  %v887_v14 = vld [vmem:[%s6269_s3 + $0x30] sm:$0xff] }
   0x4   :  { %4092 = vmatprep.subr.msk.mxu1 %vm299_vm0, %v105_v1  ;;  %v885_v12 = vld [vmem:[%s6269_s3 + $0x20] sm:$0xff]  ;;  %3528 = vmatprep.subr.msk.mxu0 %vm299_vm0, %v105_v1  ;;  %v4466_v13 = vpack.c.bf16 %v888_v11, %v886_v10  ;;  %v890_v15 = vld [vmem:[%s6269_s3 + $0x48] sm:$0xff]  ;;  %v892_v16 = vld [vmem:[%s6269_s3 + $0x58] sm:$0xff] }
   0x5   :  { %4093 = vmatpush1.msk.msra.mxu1 %vm299_vm0, %v91_v0  ;;  %3529 = vmatpush1.msk.msra.mxu0 %vm299_vm0, %v91_v0  ;;  %v76_v17 = vld [vmem:[%s6266_s0 + $0x188] sm:$0xff]  ;;  %v4485_v18 = vpack.c.bf16 %v887_v14, %v885_v12  ;;  %v4488_v19 = vpack.c.bf16 %v892_v16, %v890_v15  ;;  %v889_v20 = vld [vmem:[%s6269_s3 + $0x40] sm:$0xff]  ;;  %v891_v21 = vld [vmem:[%s6269_s3 + $0x50] sm:$0xff] }
   0x6   :  { %3578 = vmatmul.mubr.msk.f32.vlgmr.msra.gmra.mrb[0].mxu1 %vm106_vm1, %v75_v6  ;;  %3805 = vmatprep.subr.bf16.mxu1 %v4447_v7  ;;  %v894_v22 = vld [vmem:[%s6269_s3 + $0x68] sm:$0xff]  ;;  %v896_v23 = vld [vmem:[%s6269_s3 + $0x78] sm:$0xff]  ;;  %v77_v24 = vld [vmem:[%s6266_s0 + $0x190] sm:$0xff]  ;;  %v4508_v25 = vpack.c.bf16 %v891_v21, %v889_v20 }
   0x7   :  { %3807 = vmatpush1.bf16.msra.mxu1 %v4453_v9  ;;  %662 = vmatprep.mubr.f32.mxu1 %v6274_v2  ;;  %v4511_v26 = vpack.c.bf16 %v896_v23, %v894_v22  ;;  %v893_v27 = vld [vmem:[%s6269_s3 + $0x60] sm:$0xff]  ;;  %v895_v28 = vld [vmem:[%s6269_s3 + $0x70] sm:$0xff]  ;;  %v898_v29 = vld [vmem:[%s6269_s3 + $0x88] sm:$0xff] }
   0x8   :  { %3809 = vmatprep.subr.bf16.mxu1 %v4466_v13  ;;  %v900_v30 = vld [vmem:[%s6269_s3 + $0x98] sm:$0xff]  ;;  %v4531_v32 = vpack.c.bf16 %v895_v28, %v893_v27  ;;  %v897_v34 = vld [vmem:[%s6269_s3 + $0x80] sm:$0xff]  ;;  %v899_v35 = vld [vmem:[%s6269_s3 + $0x90] sm:$0xff] }
   0x9   :  { %v78_v31 = vld [vmem:[%s6266_s0 + $0x198] sm:$0xff]  ;;  %v4534_v33 = vpack.c.bf16 %v900_v30, %v898_v29  ;;  %v902_v36 = vld [vmem:[%s6269_s3 + $0xa8] sm:$0xff]  ;;  %v27_v38 = vld [vmem:[%s6266_s0] sm:$0xff]  ;;  %v4558_v40 = vpack.c.bf16 %v899_v35, %v897_v34 }
   0xa   :  { %3579 = vmatmul.mubr.msk.f32.gmra.mrb[2].mxu1 %vm106_vm1, %v76_v17  ;;  %v904_v37 = vld [vmem:[%s6269_s3 + $0xb8] sm:$0xff]  ;;  %3530 = vmatmul.mubr.msk.f32.vlgmr.msra.gmra.mrb[0].mxu0 %vm106_vm1, %v27_v38  ;;  %v79_v39 = vld [vmem:[%s6266_s0 + $0x1a0] sm:$0xff]  ;;  %v28_v41 = vld [vmem:[%s6266_s0 + $0x8] sm:$0xff] }
   0xb   :  { %668 = vmatprep.mubr.f32.mxu1 %v6274_v2  ;;  %3811 = vmatpush1.bf16.msra.mxu1 %v4485_v18  ;;  %v4564_v42 = vpack.c.bf16 %v904_v37, %v902_v36  ;;  %v901_v43 = vld [vmem:[%s6269_s3 + $0xa0] sm:$0xff]  ;;  %v903_v44 = vld [vmem:[%s6269_s3 + $0xb0] sm:$0xff] }
   0xc   :  { %3813 = vmatprep.subr.bf16.mxu1 %v4488_v19  ;;  %374 = vmatprep.mubr.f32.mxu0 %v6274_v2 }
   0xe   :  { %3580 = vmatmul.mubr.msk.f32.gmra.mrb[4].mxu1 %vm106_vm1, %v77_v24 }
   0xf   :  { %674 = vmatprep.mubr.f32.mxu1 %v6274_v2  ;;  %3815 = vmatpush1.bf16.msra.mxu1 %v4508_v25 }
  0x10   :  { %3817 = vmatprep.subr.bf16.mxu1 %v4511_v26 }
  0x12   :  { %3581 = vmatmul.mubr.msk.f32.gmra.mrb[6].mxu1 %vm106_vm1, %v78_v31 }
  0x13   :  { %680 = vmatprep.mubr.f32.mxu1 %v6274_v2  ;;  %3819 = vmatpush1.bf16.msra.mxu1 %v4531_v32 }
  0x14   :  { %3821 = vmatprep.subr.bf16.mxu1 %v4534_v33 }
  0x15   :  { %12 = vsyncpa [#allocation5], 0  ;;  %v906_v45 = vld [vmem:[%s6269_s3 + $0xc8] sm:$0xff]  ;;  %v908_v46 = vld [vmem:[%s6269_s3 + $0xd8] sm:$0xff]  ;;  %3531 = vmatmul.mubr.msk.f32.gmra.mrb[2].mxu0 %vm106_vm1, %v28_v41  ;;  %v4586_v48 = vpack.c.bf16 %v903_v44, %v901_v43 }
  0x16   :  { %3582 = vmatmul.mubr.msk.f32.gmra.mrb[8].mxu1 %vm106_vm1, %v79_v39  ;;  %v80_v47 = vld [vmem:[%s6266_s0 + $0x1a8] sm:$0xff]  ;;  %v29_v49 = vld [vmem:[%s6266_s0 + $0x10] sm:$0xff]  ;;  %v4592_v50 = vpack.c.bf16 %v908_v46, %v906_v45  ;;  %v905_v51 = vld [vmem:[%s6269_s3 + $0xc0] sm:$0xff]  ;;  %380 = vmatprep.mubr.f32.mxu0 %v6274_v2 }
  0x17   :  { %686 = vmatprep.mubr.f32.mxu1 %v6274_v2  ;;  %3823 = vmatpush1.bf16.msra.mxu1 %v4558_v40  ;;  %v907_v52 = vld [vmem:[%s6269_s3 + $0xd0] sm:$0xff]  ;;  %v910_v53 = vld [vmem:[%s6269_s3 + $0xe8] sm:$0xff]  ;;  %v912_v54 = vld [vmem:[%s6269_s3 + $0xf8] sm:$0xff] }
  0x18   :  { %3825 = vmatprep.subr.bf16.mxu1 %v4564_v42  ;;  %v81_v55 = vld [vmem:[%s6266_s0 + $0x1b0] sm:$0xff]  ;;  %v4614_v56 = vpack.c.bf16 %v907_v52, %v905_v51  ;;  %v30_v57 = vld [vmem:[%s6266_s0 + $0x18] sm:$0xff]  ;;  %v4620_v58 = vpack.c.bf16 %v912_v54, %v910_v53  ;;  %v909_v59 = vld [vmem:[%s6269_s3 + $0xe0] sm:$0xff] }
  0x19   :  { %3532 = vmatmul.mubr.msk.f32.gmra.mrb[4].mxu0 %vm106_vm1, %v29_v49  ;;  %v911_v60 = vld [vmem:[%s6269_s3 + $0xf0] sm:$0xff]  ;;  %v82_v61 = vld [vmem:[%s6266_s0 + $0x1b8] sm:$0xff]  ;;  %v31_v63 = vld [vmem:[%s6266_s0 + $0x20] sm:$0xff] }
  0x1a   :  { %3583 = vmatmul.mubr.msk.f32.gmra.mrb[10].mxu1 %vm106_vm1, %v80_v47  ;;  %386 = vmatprep.mubr.f32.mxu0 %v6274_v2  ;;  %v4636_v62 = vpack.c.bf16 %v911_v60, %v909_v59  ;;  %v83_v0 = vld [vmem:[%s6266_s0 + $0x1c0] sm:$0xff]  ;;  %v32_v1 = vld [vmem:[%s6266_s0 + $0x28] sm:$0xff]  ;;  %v33_v4 = vld [vmem:[%s6266_s0 + $0x30] sm:$0xff] }
  0x1b   :  { %692 = vmatprep.mubr.f32.mxu1 %v6274_v2  ;;  %3827 = vmatpush1.bf16.msra.mxu1 %v4586_v48  ;;  %v84_v3 = vld [vmem:[%s6266_s0 + $0x1c8] sm:$0xff]  ;;  %v85_v5 = vld [vmem:[%s6266_s0 + $0x1d0] sm:$0xff]  ;;  %v34_v6 = vld [vmem:[%s6266_s0 + $0x38] sm:$0xff] }
  0x1c   :  { %3829 = vmatprep.subr.bf16.mxu1 %v4592_v50  ;;  %v86_v8 = vld [vmem:[%s6266_s0 + $0x1d8] sm:$0xff]  ;;  %v87_v10 = vld [vmem:[%s6266_s0 + $0x1e0] sm:$0xff]  ;;  %v88_v11 = vld [vmem:[%s6266_s0 + $0x1e8] sm:$0xff] }
  0x1d   :  { %3533 = vmatmul.mubr.msk.f32.gmra.mrb[6].mxu0 %vm106_vm1, %v30_v57  ;;  %v89_v12 = vld [vmem:[%s6266_s0 + $0x1f0] sm:$0xff]  ;;  %v90_v14 = vld [vmem:[%s6266_s0 + $0x1f8] sm:$0xff]  ;;  %v35_v15 = vld [vmem:[%s6266_s0 + $0x40] sm:$0xff] }
  0x1e   :  { %3584 = vmatmul.mubr.msk.f32.gmra.mrb[12].mxu1 %vm106_vm1, %v81_v55  ;;  %392 = vmatprep.mubr.f32.mxu0 %v6274_v2  ;;  %v36_v16 = vld [vmem:[%s6266_s0 + $0x48] sm:$0xff]  ;;  %v37_v17 = vld [vmem:[%s6266_s0 + $0x50] sm:$0xff]  ;;  %v38_v20 = vld [vmem:[%s6266_s0 + $0x58] sm:$0xff] }
  0x1f   :  { %698 = vmatprep.mubr.f32.mxu1 %v6274_v2  ;;  %3831 = vmatpush1.bf16.msra.mxu1 %v4614_v56  ;;  %v39_v21 = vld [vmem:[%s6266_s0 + $0x60] sm:$0xff]  ;;  %v40_v22 = vld [vmem:[%s6266_s0 + $0x68] sm:$0xff]  ;;  %v41_v23 = vld [vmem:[%s6266_s0 + $0x70] sm:$0xff] }
  0x20   :  { %3833 = vmatprep.subr.bf16.mxu1 %v4620_v58  ;;  %v42_v24 = vld [vmem:[%s6266_s0 + $0x78] sm:$0xff]  ;;  %v43_v27 = vld [vmem:[%s6266_s0 + $0x80] sm:$0xff]  ;;  %v44_v28 = vld [vmem:[%s6266_s0 + $0x88] sm:$0xff] }
  0x21   :  { %3534 = vmatmul.mubr.msk.f32.gmra.mrb[8].mxu0 %vm106_vm1, %v31_v63  ;;  %v45_v29 = vld [vmem:[%s6266_s0 + $0x90] sm:$0xff]  ;;  %v46_v30 = vld [vmem:[%s6266_s0 + $0x98] sm:$0xff]  ;;  %v47_v31 = vld [vmem:[%s6266_s0 + $0xa0] sm:$0xff] }
  0x22   :  { %3585 = vmatmul.mubr.msk.f32.gmra.mrb[14].mxu1 %vm106_vm1, %v82_v61  ;;  %398 = vmatprep.mubr.f32.mxu0 %v6274_v2  ;;  %v48_v34 = vld [vmem:[%s6266_s0 + $0xa8] sm:$0xff]  ;;  %v49_v35 = vld [vmem:[%s6266_s0 + $0xb0] sm:$0xff]  ;;  %v50_v36 = vld [vmem:[%s6266_s0 + $0xb8] sm:$0xff] }
  0x23   :  { %704 = vmatprep.mubr.f32.mxu1 %v6274_v2  ;;  %3835 = vmatpush1.bf16.msra.mxu1 %v4636_v62  ;;  %v51_v37 = vld [vmem:[%s6266_s0 + $0xc0] sm:$0xff]  ;;  %v52_v38 = vld [vmem:[%s6266_s0 + $0xc8] sm:$0xff]  ;;  %v53_v39 = vld [vmem:[%s6266_s0 + $0xd0] sm:$0xff] }
  0x24   :  { %3837 = vmatprep.subr.bf16.mxu1 %v4447_v7  ;;  %v54_v41 = vld [vmem:[%s6266_s0 + $0xd8] sm:$0xff]  ;;  %v3040_v43 = vld [vmem:[%s6271_s5] sm:$0xff]  ;;  %v3041_v44 = vld [vmem:[%s6271_s5 + $0x8] sm:$0xff] }
  0x25   :  { %3535 = vmatmul.mubr.msk.f32.gmra.mrb[10].mxu0 %vm106_vm1, %v32_v1  ;;  %v4060_v45 = vpack.c.bf16 %v3041_v44, %v3040_v43  ;;  %v3042_v46 = vld [vmem:[%s6271_s5 + $0x10] sm:$0xff]  ;;  %v3043_v47 = vld [vmem:[%s6271_s5 + $0x18] sm:$0xff]  ;;  %v3044_v51 = vld [vmem:[%s6271_s5 + $0x20] sm:$0xff] }
  0x26   :  { %3586 = vmatmul.mubr.msk.f32.gmra.mrb[16].mxu1 %vm106_vm1, %v83_v0  ;;  %404 = vmatprep.mubr.f32.mxu0 %v6274_v2  ;;  %v4064_v49 = vpack.c.bf16 %v3043_v47, %v3042_v46  ;;  %v3045_v52 = vld [vmem:[%s6271_s5 + $0x28] sm:$0xff]  ;;  %v55_v53 = vld [vmem:[%s6266_s0 + $0xe0] sm:$0xff]  ;;  %v3046_v55 = vld [vmem:[%s6271_s5 + $0x30] sm:$0xff] }
  0x27   :  { %710 = vmatprep.mubr.f32.mxu1 %v6274_v2  ;;  %4061 = vmatprep.subr.bf16.mxu0 %v4060_v45  ;;  %v4068_v54 = vpack.c.bf16 %v3045_v52, %v3044_v51  ;;  %v3047_v57 = vld [vmem:[%s6271_s5 + $0x38] sm:$0xff]  ;;  %v56_v61 = vld [vmem:[%s6266_s0 + $0xe8] sm:$0xff]  ;;  %v3048_v0 = vld [vmem:[%s6271_s5 + $0x40] sm:$0xff] }
  0x28   :  { %4063 = vmatpush3.bf16.msra.mxu0 %v4060_v45  ;;  %v4072_v63 = vpack.c.bf16 %v3047_v57, %v3046_v55  ;;  %v3049_v1 = vld [vmem:[%s6271_s5 + $0x48] sm:$0xff]  ;;  %v62_v43 = vld [vmem:[%s6266_s0 + $0x118] sm:$0xff] }
  0x29   :  { %3536 = vmatmul.mubr.msk.f32.gmra.mrb[12].mxu0 %vm106_vm1, %v33_v4  ;;  %4065 = vmatprep.subr.bf16.mxu0 %v4064_v49  ;;  %v64_v55 = vld [vmem:[%s6266_s0 + $0x128] sm:$0xff] }
  0x2a   :  { %3587 = vmatmul.mubr.msk.f32.gmra.mrb[18].mxu1 %vm106_vm1, %v84_v3  ;;  %410 = vmatprep.mubr.f32.mxu0 %v6274_v2 }
  0x2b   :  { %716 = vmatprep.mubr.f32.mxu1 %v6274_v2 }
  0x2c   :  { %4067 = vmatpush3.bf16.msra.mxu0 %v4064_v49  ;;  %v63_v49 = vld [vmem:[%s6266_s0 + $0x120] sm:$0xff] }
  0x2d   :  { %3537 = vmatmul.mubr.msk.f32.gmra.mrb[14].mxu0 %vm106_vm1, %v34_v6  ;;  %4069 = vmatprep.subr.bf16.mxu0 %v4068_v54  ;;  %v4076_v6 = vpack.c.bf16 %v3049_v1, %v3048_v0  ;;  %v65_v1 = vld [vmem:[%s6266_s0 + $0x130] sm:$0xff] }
  0x2e   :  { %3588 = vmatmul.mubr.msk.f32.gmra.mrb[20].mxu1 %vm106_vm1, %v85_v5  ;;  %416 = vmatprep.mubr.f32.mxu0 %v6274_v2  ;;  %v57_v5 = vld [vmem:[%s6266_s0 + $0xf0] sm:$0xff] }
  0x2f   :  { %722 = vmatprep.mubr.f32.mxu1 %v6274_v2 }
  0x30   :  { %4071 = vmatpush3.bf16.msra.mxu0 %v4068_v54 }
  0x31   :  { %3538 = vmatmul.mubr.msk.f32.gmra.mrb[16].mxu0 %vm106_vm1, %v35_v15  ;;  %4073 = vmatprep.subr.bf16.mxu0 %v4072_v63 }
  0x32   :  { %3589 = vmatmul.mubr.msk.f32.gmra.mrb[22].mxu1 %vm106_vm1, %v86_v8  ;;  %422 = vmatprep.mubr.f32.mxu0 %v6274_v2  ;;  %v3050_v8 = vld [vmem:[%s6271_s5 + $0x50] sm:$0xff] }
  0x33   :  { %728 = vmatprep.mubr.f32.mxu1 %v6274_v2 }
  0x34   :  { %4075 = vmatpush3.bf16.msra.mxu0 %v4072_v63 }
  0x35   :  { %3539 = vmatmul.mubr.msk.f32.gmra.mrb[18].mxu0 %vm106_vm1, %v36_v16  ;;  %4077 = vmatprep.subr.bf16.mxu0 %v4076_v6 }
  0x36   :  { %3590 = vmatmul.mubr.msk.f32.gmra.mrb[24].mxu1 %vm106_vm1, %v87_v10  ;;  %428 = vmatprep.mubr.f32.mxu0 %v6274_v2  ;;  %v3051_v10 = vld [vmem:[%s6271_s5 + $0x58] sm:$0xff] }
  0x37   :  { %734 = vmatprep.mubr.f32.mxu1 %v6274_v2  ;;  %v4080_v15 = vpack.c.bf16 %v3051_v10, %v3050_v8 }
  0x38   :  { %4079 = vmatpush3.bf16.msra.mxu0 %v4076_v6 }
  0x39   :  { %3540 = vmatmul.mubr.msk.f32.gmra.mrb[20].mxu0 %vm106_vm1, %v37_v17  ;;  %4081 = vmatprep.subr.bf16.mxu0 %v4080_v15 }
  0x3a   :  { %3591 = vmatmul.mubr.msk.f32.gmra.mrb[26].mxu1 %vm106_vm1, %v88_v11  ;;  %434 = vmatprep.mubr.f32.mxu0 %v6274_v2 }
  0x3b   :  { %740 = vmatprep.mubr.f32.mxu1 %v6274_v2 }
  0x3c   :  { %4083 = vmatpush3.bf16.msra.mxu0 %v4080_v15 }
  0x3d   :  { %3541 = vmatmul.mubr.msk.f32.gmra.mrb[22].mxu0 %vm106_vm1, %v38_v20 }
  0x3e   :  { %3592 = vmatmul.mubr.msk.f32.gmra.mrb[28].mxu1 %vm106_vm1, %v89_v12  ;;  %440 = vmatprep.mubr.f32.mxu0 %v6274_v2 }
  0x3f   :  { %746 = vmatprep.mubr.f32.mxu1 %v6274_v2 }
  0x41   :  { %3542 = vmatmul.mubr.msk.f32.gmra.mrb[24].mxu0 %vm106_vm1, %v39_v21 }
  0x42   :  { %3593 = vmatmul.mubr.msk.f32.gmra.mrb[30].mxu1 %vm106_vm1, %v90_v14  ;;  %446 = vmatprep.mubr.f32.mxu0 %v6274_v2  ;;  %v58_v14 = vld [vmem:[%s6266_s0 + $0xf8] sm:$0xff] }
  0x43   :  { %1000 = vmatprep.mubr.f32.mxu1 %v6274_v2 }
  0x45   :  { %3543 = vmatmul.mubr.msk.f32.gmra.mrb[26].mxu0 %vm106_vm1, %v40_v22  ;;  %v59_v22 = vld [vmem:[%s6266_s0 + $0x100] sm:$0xff] }
  0x46   :  { %1001 = vmatmul.mubr.f32.vlgmr.msra.gmra.mrb[32].mxu1 %v6274_v2  ;;  %452 = vmatprep.mubr.f32.mxu0 %v6274_v2 }
  0x47   :  { %1006 = vmatprep.mubr.f32.mxu1 %v6274_v2  ;;  %3839 = vmatpush1.bf16.msra.mxu1 %v4453_v9 }
  0x48   :  { %3841 = vmatprep.subr.bf16.mxu1 %v4466_v13 }
  0x49   :  { %3544 = vmatmul.mubr.msk.f32.gmra.mrb[28].mxu0 %vm106_vm1, %v41_v23 }
  0x4a   :  { %1007 = vmatmul.mubr.f32.gmra.mrb[34].mxu1 %v6274_v2  ;;  %458 = vmatprep.mubr.f32.mxu0 %v6274_v2 }
  0x4b   :  { %1012 = vmatprep.mubr.f32.mxu1 %v6274_v2  ;;  %3843 = vmatpush1.bf16.msra.mxu1 %v4485_v18 }
  0x4c   :  { %3845 = vmatprep.subr.bf16.mxu1 %v4488_v19 }
  0x4d   :  { %3545 = vmatmul.mubr.msk.f32.gmra.mrb[30].mxu0 %vm106_vm1, %v42_v24 }
  0x4e   :  { %1013 = vmatmul.mubr.f32.gmra.mrb[36].mxu1 %v6274_v2  ;;  %464 = vmatprep.mubr.f32.mxu0 %v6274_v2 }
  0x4f   :  { %1018 = vmatprep.mubr.f32.mxu1 %v6274_v2  ;;  %3847 = vmatpush1.bf16.msra.mxu1 %v4508_v25 }
  0x50   :  { %3849 = vmatprep.subr.bf16.mxu1 %v4511_v26 }
  0x51   :  { %3546 = vmatmul.mubr.msk.f32.gmra.mrb[32].mxu0 %vm106_vm1, %v43_v27 }
  0x52   :  { %1019 = vmatmul.mubr.f32.gmra.mrb[38].mxu1 %v6274_v2  ;;  %470 = vmatprep.mubr.f32.mxu0 %v6274_v2 }
  0x53   :  { %1024 = vmatprep.mubr.f32.mxu1 %v6274_v2  ;;  %3851 = vmatpush1.bf16.msra.mxu1 %v4531_v32 }
  0x54   :  { %3853 = vmatprep.subr.bf16.mxu1 %v4534_v33 }
  0x55   :  { %3547 = vmatmul.mubr.msk.f32.gmra.mrb[34].mxu0 %vm106_vm1, %v44_v28 }
  0x56   :  { %1025 = vmatmul.mubr.f32.gmra.mrb[40].mxu1 %v6274_v2  ;;  %476 = vmatprep.mubr.f32.mxu0 %v6274_v2 }
  0x57   :  { %1030 = vmatprep.mubr.f32.mxu1 %v6274_v2  ;;  %3855 = vmatpush1.bf16.msra.mxu1 %v4558_v40 }
  0x58   :  { %3857 = vmatprep.subr.bf16.mxu1 %v4564_v42 }
  0x59   :  { %3548 = vmatmul.mubr.msk.f32.gmra.mrb[36].mxu0 %vm106_vm1, %v45_v29  ;;  %v60_v29 = vld [vmem:[%s6266_s0 + $0x108] sm:$0xff] }
  0x5a   :  { %1031 = vmatmul.mubr.f32.gmra.mrb[42].mxu1 %v6274_v2  ;;  %482 = vmatprep.mubr.f32.mxu0 %v6274_v2 }
  0x5b   :  { %1036 = vmatprep.mubr.f32.mxu1 %v6274_v2  ;;  %3859 = vmatpush1.bf16.msra.mxu1 %v4586_v48 }
  0x5c   :  { %3861 = vmatprep.subr.bf16.mxu1 %v4592_v50 }
  0x5d   :  { %3549 = vmatmul.mubr.msk.f32.gmra.mrb[38].mxu0 %vm106_vm1, %v46_v30 }
  0x5e   :  { %1037 = vmatmul.mubr.f32.gmra.mrb[44].mxu1 %v6274_v2  ;;  %488 = vmatprep.mubr.f32.mxu0 %v6274_v2 }
  0x5f   :  { %1042 = vmatprep.mubr.f32.mxu1 %v6274_v2  ;;  %3863 = vmatpush1.bf16.msra.mxu1 %v4614_v56 }
  0x60   :  { %3865 = vmatprep.subr.bf16.mxu1 %v4620_v58 }
  0x61   :  { %3550 = vmatmul.mubr.msk.f32.gmra.mrb[40].mxu0 %vm106_vm1, %v47_v31 }
  0x62   :  { %1043 = vmatmul.mubr.f32.gmra.mrb[46].mxu1 %v6274_v2  ;;  %494 = vmatprep.mubr.f32.mxu0 %v6274_v2 }
  0x63   :  { %3867 = vmatpush1.bf16.msra.mxu1 %v4636_v62  ;;  %1257 = vmatprep.mubr.f32.mxu1 %v6274_v2 }
  0x64   :  { %3869 = vmatprep.subr.bf16.mxu1 %v4447_v7 }
  0x65   :  { %3551 = vmatmul.mubr.msk.f32.gmra.mrb[42].mxu0 %vm106_vm1, %v48_v34 }
  0x66   :  { %500 = vmatprep.mubr.f32.mxu0 %v6274_v2 }
  0x69   :  { %3552 = vmatmul.mubr.msk.f32.gmra.mrb[44].mxu0 %vm106_vm1, %v49_v35 }
  0x6a   :  { %506 = vmatprep.mubr.f32.mxu0 %v6274_v2 }
  0x6d   :  { %3553 = vmatmul.mubr.msk.f32.gmra.mrb[46].mxu0 %vm106_vm1, %v50_v36  ;;  %v61_v36 = vld [vmem:[%s6266_s0 + $0x110] sm:$0xff] }
  0x6e   :  { %512 = vmatprep.mubr.f32.mxu0 %v6274_v2 }
  0x71   :  { %3554 = vmatmul.mubr.msk.f32.gmra.mrb[48].mxu0 %vm106_vm1, %v51_v37 }
  0x72   :  { %518 = vmatprep.mubr.f32.mxu0 %v6274_v2 }
  0x75   :  { %3555 = vmatmul.mubr.msk.f32.gmra.mrb[50].mxu0 %vm106_vm1, %v52_v38 }
  0x76   :  { %524 = vmatprep.mubr.f32.mxu0 %v6274_v2 }
  0x79   :  { %3556 = vmatmul.mubr.msk.f32.gmra.mrb[52].mxu0 %vm106_vm1, %v53_v39 }
  0x7a   :  { %530 = vmatprep.mubr.f32.mxu0 %v6274_v2 }
  0x7d   :  { %3557 = vmatmul.mubr.msk.f32.gmra.mrb[54].mxu0 %vm106_vm1, %v54_v41 }
  0x7e   :  { %536 = vmatprep.mubr.f32.mxu0 %v6274_v2 }
  0x81   :  { %3558 = vmatmul.mubr.msk.f32.gmra.mrb[56].mxu0 %vm106_vm1, %v55_v53 }
  0x82   :  { %542 = vmatprep.mubr.f32.mxu0 %v6274_v2 }
  0x85   :  { %3559 = vmatmul.mubr.msk.f32.gmra.mrb[58].mxu0 %vm106_vm1, %v56_v61 }
  0x86   :  { %548 = vmatprep.mubr.f32.mxu0 %v6274_v2 }
  0x89   :  { %3560 = vmatmul.mubr.msk.f32.gmra.mrb[60].mxu0 %vm106_vm1, %v57_v5 }
  0x8a   :  { %554 = vmatprep.mubr.f32.mxu0 %v6274_v2 }
  0x8d   :  { %3561 = vmatmul.mubr.msk.f32.gmra.mrb[62].mxu0 %vm106_vm1, %v58_v14  ;;  %v66_v14 = vld [vmem:[%s6266_s0 + $0x138] sm:$0xff] }
  0x8e   :  { %560 = vmatprep.mubr.f32.mxu0 %v6274_v2 }
  0x91   :  { %3562 = vmatmul.mubr.msk.f32.gmra.mrb[64].mxu0 %vm106_vm1, %v59_v22 }
  0x92   :  { %566 = vmatprep.mubr.f32.mxu0 %v6274_v2 }
  0x95   :  { %3563 = vmatmul.mubr.msk.f32.gmra.mrb[66].mxu0 %vm106_vm1, %v60_v29  ;;  %v67_v29 = vld [vmem:[%s6266_s0 + $0x140] sm:$0xff] }
  0x96   :  { %572 = vmatprep.mubr.f32.mxu0 %v6274_v2 }
  0x99   :  { %3564 = vmatmul.mubr.msk.f32.gmra.mrb[68].mxu0 %vm106_vm1, %v61_v36  ;;  %v94_v36 = vlaneseq }
  0x9a   :  { %578 = vmatprep.mubr.f32.mxu0 %v6274_v2 }
  0x9d   :  { %3565 = vmatmul.mubr.msk.f32.gmra.mrb[70].mxu0 %vm106_vm1, %v62_v43 }
  0x9e   :  { %584 = vmatprep.mubr.f32.mxu0 %v6274_v2 }
  0xa1   :  { %3566 = vmatmul.mubr.msk.f32.gmra.mrb[72].mxu0 %vm106_vm1, %v63_v49 }
  0xa2   :  { %590 = vmatprep.mubr.f32.mxu0 %v6274_v2 }
  0xa5   :  { %3567 = vmatmul.mubr.msk.f32.gmra.mrb[74].mxu0 %vm106_vm1, %v64_v55  ;;  %v68_v55 = vld [vmem:[%s6266_s0 + $0x148] sm:$0xff] }
  0xa6   :  { %596 = vmatprep.mubr.f32.mxu0 %v6274_v2 }
  0xa9   :  { %3568 = vmatmul.mubr.msk.f32.gmra.mrb[76].mxu0 %vm106_vm1, %v65_v1  ;;  %v5024_v1 = vshrl.u32 %v94_v36, 7 }
  0xaa   :  { %602 = vmatprep.mubr.f32.mxu0 %v6274_v2 }
  0xad   :  { %3569 = vmatmul.mubr.msk.f32.gmra.mrb[78].mxu0 %vm106_vm1, %v66_v14 }
  0xae   :  { %608 = vmatprep.mubr.f32.mxu0 %v6274_v2 }
  0xb1   :  { %3570 = vmatmul.mubr.msk.f32.gmra.mrb[80].mxu0 %vm106_vm1, %v67_v29  ;;  %v69_v29 = vld [vmem:[%s6266_s0 + $0x150] sm:$0xff] }
  0xb2   :  { %614 = vmatprep.mubr.f32.mxu0 %v6274_v2 }
  0xb5   :  { %3571 = vmatmul.mubr.msk.f32.gmra.mrb[82].mxu0 %vm106_vm1, %v68_v55 }
  0xb6   :  { %620 = vmatprep.mubr.f32.mxu0 %v6274_v2 }
  0xb9   :  { %3572 = vmatmul.mubr.msk.f32.gmra.mrb[84].mxu0 %vm106_vm1, %v69_v29 }
  0xba   :  { %626 = vmatprep.mubr.f32.mxu0 %v6274_v2 }
  0xd9   :  { %v4863_v59 = vpop.f32.mrb[0].mxu1 }
  0xda   :  { %6276 = vst [vmem:[#allocation7_spill] sm:$0xff] %v4863_v59  ;;  %v4866_v60 = vpop.f32.mrb[1].mxu1 }
  0xdb   :  { %6277 = vst [vmem:[#allocation8_spill] sm:$0xff] %v4866_v60 }
  0xdd   :  { %v4878_v3 = vpop.f32.mrb[2].mxu1  ;;  %v4904_v17 = vpop.f32.mrb[0].mxu0 }
  0xde   :  { %6278 = vst [vmem:[#allocation9_spill] sm:$0xff] %v4878_v3  ;;  %v4881_v4 = vpop.f32.mrb[3].mxu1  ;;  %v4909_v21 = vpop.f32.mrb[1].mxu0 }
  0xdf   :  { %6279 = vst [vmem:[#allocation10_spill] sm:$0xff] %v4881_v4 }
  0xe1   :  { %v4893_v11 = vpop.f32.mrb[4].mxu1 }
  0xe2   :  { %6280 = vst [vmem:[#allocation11_spill] sm:$0xff] %v4893_v11  ;;  %v4896_v12 = vpop.f32.mrb[5].mxu1 }
  0xe3   :  { %6281 = vst [vmem:[#allocation12_spill] sm:$0xff] %v4896_v12 }
  0xe5   :  { %v4902_v16 = vpop.f32.mrb[6].mxu1 }
  0xe6   :  { %6282 = vst [vmem:[#allocation13_spill] sm:$0xff] %v4902_v16  ;;  %v4907_v20 = vpop.f32.mrb[7].mxu1 }
  0xe7   :  { %6283 = vst [vmem:[#allocation14_spill] sm:$0xff] %v4907_v20 }
  0xe8   :  { %v4917_v24 = vpop.f32.mrb[2].mxu0 }
  0xe9   :  { %v4915_v23 = vpop.f32.mrb[8].mxu1  ;;  %v4922_v28 = vpop.f32.mrb[3].mxu0 }
  0xea   :  { %6284 = vst [vmem:[#allocation15_spill] sm:$0xff] %v4915_v23  ;;  %v4920_v27 = vpop.f32.mrb[9].mxu1 }
  0xeb   :  { %6285 = vst [vmem:[#allocation16_spill] sm:$0xff] %v4920_v27 }
  0xec   :  { %v4930_v31 = vpop.f32.mrb[4].mxu0 }
  0xed   :  { %v4928_v30 = vpop.f32.mrb[10].mxu1  ;;  %v4935_v35 = vpop.f32.mrb[5].mxu0 }
  0xee   :  { %6286 = vst [vmem:[#allocation17_spill] sm:$0xff] %v4928_v30  ;;  %v4933_v34 = vpop.f32.mrb[11].mxu1 }
  0xef   :  { %6287 = vst [vmem:[#allocation18_spill] sm:$0xff] %v4933_v34 }
  0xf0   :  { %v4943_v38 = vpop.f32.mrb[6].mxu0 }
  0xf1   :  { %v4941_v37 = vpop.f32.mrb[12].mxu1  ;;  %v4948_v41 = vpop.f32.mrb[7].mxu0 }
  0xf2   :  { %6288 = vst [vmem:[#allocation19_spill] sm:$0xff] %v4941_v37  ;;  %v4946_v39 = vpop.f32.mrb[13].mxu1 }
  0xf3   :  { %6289 = vst [vmem:[#allocation20_spill] sm:$0xff] %v4946_v39 }
  0xf4   :  { %v4956_v45 = vpop.f32.mrb[8].mxu0 }
  0xf5   :  { %v4954_v44 = vpop.f32.mrb[14].mxu1  ;;  %v4961_v47 = vpop.f32.mrb[9].mxu0 }
  0xf6   :  { %6290 = vst [vmem:[#allocation21_spill] sm:$0xff] %v4954_v44  ;;  %v4959_v46 = vpop.f32.mrb[15].mxu1 }
  0xf7   :  { %6291 = vst [vmem:[#allocation22_spill] sm:$0xff] %v4959_v46 }
  0xf8   :  { %v4969_v52 = vpop.f32.mrb[10].mxu0 }
  0xf9   :  { %v4967_v51 = vpop.f32.mrb[16].mxu1  ;;  %v4974_v54 = vpop.f32.mrb[11].mxu0 }
  0xfa   :  { %6292 = vst [vmem:[#allocation23_spill] sm:$0xff] %v4967_v51  ;;  %v4972_v53 = vpop.f32.mrb[17].mxu1 }
  0xfb   :  { %6293 = vst [vmem:[#allocation24_spill] sm:$0xff] %v4972_v53 }
  0xfc   :  { %v4982_v61 = vpop.f32.mrb[12].mxu0 }
  0xfd   :  { %v4980_v57 = vpop.f32.mrb[18].mxu1  ;;  %v4987_v0 = vpop.f32.mrb[13].mxu0 }
  0xfe   :  { %6294 = vst [vmem:[#allocation25_spill] sm:$0xff] %v4980_v57  ;;  %v4985_v63 = vpop.f32.mrb[19].mxu1 }
  0xff   :  { %6295 = vst [vmem:[#allocation26_spill] sm:$0xff] %v4985_v63 }
 0x100   :  { %v4995_v6 = vpop.f32.mrb[14].mxu0 }
 0x101   :  { %v4993_v5 = vpop.f32.mrb[20].mxu1  ;;  %v5000_v10 = vpop.f32.mrb[15].mxu0 }
 0x102   :  { %6296 = vst [vmem:[#allocation27_spill] sm:$0xff] %v4993_v5  ;;  %v4998_v8 = vpop.f32.mrb[21].mxu1 }
 0x103   :  { %6297 = vst [vmem:[#allocation28_spill] sm:$0xff] %v4998_v8  ;;  %v5039_v8 = vld [vmem:[%s6268_s2] sm:$0x3] }
 0x105   :  { %v5006_v15 = vpop.f32.mrb[22].mxu1 }
 0x106   :  { %6298 = vst [vmem:[#allocation29_spill] sm:$0xff] %v5006_v15  ;;  %v5009_v22 = vpop.f32.mrb[23].mxu1 }
 0x107   :  { %6299 = vst [vmem:[#allocation30_spill] sm:$0xff] %v5009_v22 }
 0x109   :  { %v5015_v43 = vpop.f32.mrb[24].mxu1 }
 0x10a   :  { %6300 = vst [vmem:[#allocation31_spill] sm:$0xff] %v5015_v43  ;;  %v5018_v49 = vpop.f32.mrb[25].mxu1 }
 0x10b   :  { %6301 = vst [vmem:[#allocation32_spill] sm:$0xff] %v5018_v49  ;;  %v96_v49 = vsub.s32 0, %v5024_v1 }
 0x10d   :  { %v5026_v14 = vpop.f32.mrb[26].mxu1  ;;  %v5051_v63 = vrot.slane %v5039_v8, %v96_v49 }
 0x10e   :  { %6302 = vst [vmem:[#allocation33_spill] sm:$0xff] %v5026_v14  ;;  %v5029_v22 = vpop.f32.mrb[27].mxu1 }
 0x10f   :  { %6303 = vst [vmem:[#allocation34_spill] sm:$0xff] %v5029_v22  ;;  %v70_v22 = vld [vmem:[%s6266_s0 + $0x158] sm:$0xff]  ;;  %v371_v29 = vadd.f32 %v4904_v17, %v5051_v63  ;;  %v72_v17 = vld [vmem:[%s6266_s0 + $0x168] sm:$0xff] }
 0x110   :  { %3573 = vmatmul.mubr.msk.f32.gmra.mrb[86].mxu0 %vm106_vm1, %v70_v22 }
 0x111   :  { %v5041_v36 = vpop.f32.mrb[28].mxu1  ;;  %632 = vmatprep.mubr.f32.mxu0 %v6274_v2 }
 0x112   :  { %6304 = vst [vmem:[#allocation35_spill] sm:$0xff] %v5041_v36  ;;  %v5044_v55 = vpop.f32.mrb[29].mxu1 }
 0x113   :  { %6305 = vst [vmem:[#allocation36_spill] sm:$0xff] %v5044_v55  ;;  %v71_v55 = vld [vmem:[%s6266_s0 + $0x160] sm:$0xff] }
 0x114   :  { %3574 = vmatmul.mubr.msk.f32.gmra.mrb[88].mxu0 %vm106_vm1, %v71_v55  ;;  %v3053_v55 = vld [vmem:[%s6271_s5 + $0x68] sm:$0xff] }
 0x115   :  { %v5053_v53 = vpop.f32.mrb[30].mxu1  ;;  %638 = vmatprep.mubr.f32.mxu0 %v6274_v2 }
 0x116   :  { %6306 = vst [vmem:[#allocation37_spill] sm:$0xff] %v5053_v53  ;;  %v5056_v14 = vpop.f32.mrb[31].mxu1  ;;  %v377_v53 = vadd.f32 %v4917_v24, %v5051_v63  ;;  %v3052_v24 = vld [vmem:[%s6271_s5 + $0x60] sm:$0xff] }
 0x117   :  { %6307 = vst [vmem:[#allocation38_spill] sm:$0xff] %v5056_v14 }
 0x118   :  { %3575 = vmatmul.mubr.msk.f32.gmra.mrb[90].mxu0 %vm106_vm1, %v72_v17 }
 0x119   :  { %v1002_v36 = vpop.f32.mrb[32].mxu1  ;;  %644 = vmatprep.mubr.f32.mxu0 %v6274_v2 }
 0x11a   :  { %v1049_v49 = vadd.f32 %v1002_v36, %v371_v29  ;;  %v1004_v43 = vpop.f32.mrb[33].mxu1  ;;  %v383_v36 = vadd.f32 %v4930_v31, %v5051_v63 }
 0x11c   :  { %v1057_v22 = vmul.f32 0.5, %v1049_v49  ;;  %v73_v49 = vld [vmem:[%s6266_s0 + $0x170] sm:$0xff] }
 0x11d   :  { %v1008_v14 = vpop.f32.mrb[34].mxu1  ;;  %3576 = vmatmul.mubr.msk.f32.gmra.mrb[92].mxu0 %vm106_vm1, %v73_v49 }
 0x11e   :  { %4100 = vtanh.f32 %v1057_v22  ;;  %v1050_v15 = vadd.f32 %v1008_v14, %v377_v53  ;;  %v1010_v5 = vpop.f32.mrb[35].mxu1  ;;  %v4084_v53 = vpack.c.bf16 %v3053_v55, %v3052_v24  ;;  %v389_v22 = vadd.f32 %v4943_v38, %v5051_v63  ;;  %650 = vmatprep.mubr.f32.mxu0 %v6274_v2  ;;  %v3055_v24 = vld [vmem:[%s6271_s5 + $0x78] sm:$0xff] }
 0x11f   :  { %v100_v2 = vsub.s32 1, %v5024_v1 }
 0x120   :  { %v1058_v29 = vmul.f32 0.5, %v1050_v15  ;;  %4085 = vmatprep.subr.bf16.mxu0 %v4084_v53  ;;  %v3054_v15 = vld [vmem:[%s6271_s5 + $0x70] sm:$0xff] }
 0x121   :  { %v1014_v14 = vpop.f32.mrb[36].mxu1  ;;  %4087 = vmatpush3.bf16.msra.mxu0 %v4084_v53 }
 0x122   :  { %4102 = vtanh.f32 %v1058_v29  ;;  %v1051_v31 = vadd.f32 %v1014_v14, %v383_v36  ;;  %v1016_v17 = vpop.f32.mrb[37].mxu1  ;;  %v74_v36 = vld [vmem:[%s6266_s0 + $0x178] sm:$0xff]  ;;  %v4088_v29 = vpack.c.bf16 %v3055_v24, %v3054_v15  ;;  %v395_v14 = vadd.f32 %v4956_v45, %v5051_v63  ;;  %s4386_s0 = smov 64  }
 0x123   :  { %3577 = vmatmul.mubr.msk.f32.gmra.mrb[94].mxu0 %vm106_vm1, %v74_v36  ;;  %v401_v36 = vadd.f32 %v4969_v52, %v5051_v63  ;;  %v5109_v45 = vrot.slane %v5039_v8, %v100_v2  ;;  %v407_v2 = vadd.f32 %v4982_v61, %v5051_v63  ;;  %v413_v61 = vadd.f32 %v4995_v6, %v5051_v63 }
 0x124   :  { %v1059_v55 = vmul.f32 0.5, %v1051_v31  ;;  %4089 = vmatprep.subr.bf16.mxu0 %v4088_v29  ;;  %v5104_v31 = vld [vmem:[%s6270_s4] ss:$0 sm:$0xff] }
 0x125   :  { %v1020_v49 = vpop.f32.mrb[38].mxu1  ;;  %4091 = vmatpush3.bf16.msra.mxu0 %v4088_v29  ;;  %v1089_v1 = vadd.f32 %v5104_v31, %v1004_v43  ;;  %v373_v39 = vadd.f32 %v4909_v21, %v5109_v45  ;;  %v379_v21 = vadd.f32 %v4922_v28, %v5109_v45  ;;  %v385_v28 = vadd.f32 %v4935_v35, %v5109_v45 }
 0x126   :  { %4104 = vtanh.f32 %v1059_v55  ;;  %v1052_v38 = vadd.f32 %v1020_v49, %v389_v22  ;;  %v1022_v53 = vpop.f32.mrb[39].mxu1 }
 0x127   :  { %v1092_v6 = vadd.f32 %v5104_v31, %v1022_v53  ;;  %v397_v53 = vadd.f32 %v4961_v47, %v5109_v45 }
 0x128   :  { %v4101_v57 = vpop.eup %4100  ;;  %v1060_v15 = vmul.f32 0.5, %v1052_v38 }
 0x129   :  { %v1026_v24 = vpop.f32.mrb[40].mxu1  ;;  %v1073_v51 = vmul.f32 0.5, %v4101_v57 }
 0x12a   :  { %4106 = vtanh.f32 %v1060_v15  ;;  %v1053_v55 = vadd.f32 %v1026_v24, %v395_v14  ;;  %v1028_v22 = vpop.f32.mrb[41].mxu1 }
 0x12b   :  { %v1081_v29 = vadd.f32 0.5, %v1073_v51  ;;  %v1090_v51 = vadd.f32 %v5104_v31, %v1010_v5 }
 0x12c   :  { %v4103_v49 = vpop.eup %4102  ;;  %v1061_v46 = vmul.f32 0.5, %v1053_v55 }
 0x12d   :  { %v1074_v38 = vmul.f32 0.5, %v4103_v49  ;;  %v1032_v34 = vpop.f32.mrb[42].mxu1  ;;  %1121 = vrot.lane.b32.xlu0 %v1081_v29, %s4386_s0  ;;  %v1097_v57 = vmul.f32 %v1089_v1, %v1081_v29 }
 0x12e   :  { %4108 = vtanh.f32 %v1061_v46  ;;  %v1054_v14 = vadd.f32 %v1032_v34, %v401_v36  ;;  %v1034_v52 = vpop.f32.mrb[43].mxu1 }
 0x12f   :  { %v1082_v8 = vadd.f32 0.5, %v1074_v38  ;;  %v5118_v43 = vadd.f32 %v1097_v57, %v373_v39  ;;  %v1091_v39 = vadd.f32 %v5104_v31, %v1016_v17 }
 0x130   :  { %v4105_v15 = vpop.eup %4104  ;;  %v1062_v24 = vmul.f32 0.5, %v1054_v14 }
 0x131   :  { %v1098_v55 = vmul.f32 %v1090_v51, %v1082_v8  ;;  %v1038_v49 = vpop.f32.mrb[44].mxu1  ;;  %1123 = vrot.lane.b32.xlu0 %v1082_v8, %s4386_s0  ;;  %v1075_v46 = vmul.f32 0.5, %v4105_v15 }
 0x132   :  { %4110 = vtanh.f32 %v1062_v24  ;;  %v1055_v34 = vadd.f32 %v1038_v49, %v407_v2  ;;  %v1040_v36 = vpop.f32.mrb[45].mxu1 }
 0x133   :  { %v5125_v1 = vadd.f32 %v1098_v55, %v379_v21  ;;  %v1083_v5 = vadd.f32 0.5, %v1075_v46  ;;  %v391_v55 = vadd.f32 %v4948_v41, %v5109_v45 }
 0x134   :  { %v4107_v29 = vpop.eup %4106  ;;  %v1063_v38 = vmul.f32 0.5, %v1055_v34 }
 0x135   :  { %v1076_v57 = vmul.f32 0.5, %v4107_v29  ;;  %v1044_v14 = vpop.f32.mrb[46].mxu1  ;;  %1125 = vrot.lane.b32.xlu1 %v1083_v5, %s4386_s0  ;;  %v1099_v8 = vmul.f32 %v1091_v39, %v1083_v5 }
 0x136   :  { %4112 = vtanh.f32 %v1063_v38  ;;  %v1056_v2 = vadd.f32 %v1044_v14, %v413_v61  ;;  %v1046_v51 = vpop.f32.mrb[47].mxu1  ;;  %v1093_v61 = vadd.f32 %v5104_v31, %v1028_v22  ;;  %v403_v14 = vadd.f32 %v4974_v54, %v5109_v45 }
 0x137   :  { %v1084_v15 = vadd.f32 0.5, %v1076_v57  ;;  %v5132_v24 = vadd.f32 %v1099_v8, %v385_v28  ;;  %v1094_v28 = vadd.f32 %v5104_v31, %v1034_v52 }
 0x138   :  { %v4109_v17 = vpop.eup %4108  ;;  %v1064_v21 = vmul.f32 0.5, %v1056_v2 }
 0x139   :  { %v1100_v49 = vmul.f32 %v1092_v6, %v1084_v15  ;;  %v1077_v35 = vmul.f32 0.5, %v4109_v17  ;;  %1127 = vrot.lane.b32.xlu1 %v1084_v15, %s4386_s0  ;;  %v1095_v15 = vadd.f32 %v5104_v31, %v1040_v36  ;;  %v409_v17 = vadd.f32 %v4987_v0, %v5109_v45 }
 0x13a   :  { %4114 = vtanh.f32 %v1064_v21 }
 0x13b   :  { %v5137_v46 = vadd.f32 %v1100_v49, %v391_v55  ;;  %v1085_v34 = vadd.f32 0.5, %v1077_v35  ;;  %v1096_v49 = vadd.f32 %v5104_v31, %v1046_v51  ;;  %v415_v35 = vadd.f32 %v5000_v10, %v5109_v45 }
 0x13c   :  { %v4111_v39 = vpop.eup %4110  ;;  %4116 = vtanh.f32 %v5118_v43 }
 0x13d   :  { %v1101_v5 = vmul.f32 %v1093_v61, %v1085_v34  ;;  %v1078_v29 = vmul.f32 0.5, %v4111_v39  ;;  %1129 = vrot.lane.b32.xlu0 %v1085_v34, %s4386_s0  ;;  %v5163_v61 = vpop.f32.mrb[16].mxu0  ;;  %4118 = vtanh.f32 %v5125_v1 }
 0x13e   :  { %v5165_v0 = vpop.f32.mrb[17].mxu0  ;;  %4120 = vtanh.f32 %v5132_v24 }
 0x13f   :  { %v5143_v38 = vadd.f32 %v1101_v5, %v397_v53  ;;  %v1086_v41 = vadd.f32 0.5, %v1078_v29  ;;  %v5167_v39 = vpop.f32.mrb[18].mxu0  ;;  %4122 = vtanh.f32 %v5137_v46 }
 0x140   :  { %v4113_v57 = vpop.eup %4112  ;;  %v5169_v53 = vpop.f32.mrb[19].mxu0 }
 0x141   :  { %v1102_v8 = vmul.f32 %v1094_v28, %v1086_v41  ;;  %v1079_v2 = vmul.f32 0.5, %v4113_v57  ;;  %1131 = vrot.lane.b32.xlu1 %v1086_v41, %s4386_s0  ;;  %v5171_v5 = vpop.f32.mrb[20].mxu0  ;;  %4124 = vtanh.f32 %v5143_v38 }
 0x142   :  { %v5173_v29 = vpop.f32.mrb[21].mxu0 }
 0x143   :  { %v5149_v22 = vadd.f32 %v1102_v8, %v403_v14  ;;  %v1087_v47 = vadd.f32 0.5, %v1079_v2  ;;  %v5175_v51 = vpop.f32.mrb[22].mxu0 }
 0x144   :  { %v4115_v6 = vpop.eup %4114  ;;  %v5177_v10 = vpop.f32.mrb[23].mxu0 }
 0x145   :  { %v1103_v21 = vmul.f32 %v1095_v15, %v1087_v47  ;;  %v1080_v55 = vmul.f32 0.5, %v4115_v6  ;;  %1133 = vrot.lane.b32.xlu0 %v1087_v47, %s4386_s0  ;;  %v5179_v41 = vpop.f32.mrb[24].mxu0  ;;  %4126 = vtanh.f32 %v5149_v22 }
 0x146   :  { %v5181_v28 = vpop.f32.mrb[25].mxu0 }
 0x147   :  { %v5155_v52 = vadd.f32 %v1103_v21, %v409_v17  ;;  %v1088_v54 = vadd.f32 0.5, %v1080_v55  ;;  %v5183_v57 = vpop.f32.mrb[26].mxu0 }
 0x148   :  { %v5185_v14 = vpop.f32.mrb[27].mxu0 }
 0x149   :  { %v1104_v34 = vmul.f32 %v1096_v49, %v1088_v54  ;;  %1135 = vrot.lane.b32.xlu1 %v1088_v54, %s4386_s0  ;;  %v5187_v8 = vpop.f32.mrb[28].mxu0  ;;  %4128 = vtanh.f32 %v5155_v52 }
 0x14a   :  { %v5189_v2 = vpop.f32.mrb[29].mxu0 }
 0x14b   :  { %v5161_v36 = vadd.f32 %v1104_v34, %v415_v35  ;;  %v5191_v47 = vpop.f32.mrb[30].mxu0 }
 0x14c   :  { %v5193_v15 = vpop.f32.mrb[31].mxu0 }
 0x14d   :  { %v5195_v6 = vpop.f32.mrb[32].mxu0  ;;  %4130 = vtanh.f32 %v5161_v36 }
 0x14e   :  { %v5197_v17 = vpop.f32.mrb[33].mxu0 }
 0x14f   :  { %6308 = vst [vmem:[#allocation39_spill] sm:$0xff] %v5197_v17  ;;  %v5199_v21 = vpop.f32.mrb[34].mxu0 }
 0x150   :  { %v5201_v55 = vpop.f32.mrb[35].mxu0 }
 0x151   :  { %6309 = vst [vmem:[#allocation40_spill] sm:$0xff] %v5201_v55  ;;  %v5203_v54 = vpop.f32.mrb[36].mxu0 }
 0x152   :  { %v5205_v49 = vpop.f32.mrb[37].mxu0 }
 0x153   :  { %6310 = vst [vmem:[#allocation41_spill] sm:$0xff] %v5205_v49  ;;  %v5207_v35 = vpop.f32.mrb[38].mxu0 }
 0x154   :  { %6311 = vst [vmem:[#allocation42_spill] sm:$0xff] %v5207_v35  ;;  %v5209_v34 = vpop.f32.mrb[39].mxu0  ;;  %v427_v35 = vadd.f32 %v5169_v53, %v5109_v45  ;;  %v433_v53 = vadd.f32 %v5173_v29, %v5109_v45 }
 0x155   :  { %6312 = vst [vmem:[#allocation43_spill] sm:$0xff] %v5209_v34  ;;  %v5211_v27 = vpop.f32.mrb[40].mxu0 }
 0x156   :  { %6313 = vst [vmem:[#allocation44_spill] sm:$0xff] %v5211_v27  ;;  %v5213_v20 = vpop.f32.mrb[41].mxu0 }
 0x157   :  { %6314 = vst [vmem:[#allocation45_spill] sm:$0xff] %v5213_v20  ;;  %v5215_v12 = vpop.f32.mrb[42].mxu0 }
 0x158   :  { %6315 = vst [vmem:[#allocation46_spill] sm:$0xff] %v5215_v12  ;;  %v5217_v44 = vpop.f32.mrb[43].mxu0 }
 0x159   :  { %6316 = vst [vmem:[#allocation47_spill] sm:$0xff] %v5217_v44  ;;  %v5219_v4 = vpop.f32.mrb[44].mxu0  ;;  %v4117_v44 = vpop.eup %4116 }
 0x15a   :  { %6317 = vst [vmem:[#allocation48_spill] sm:$0xff] %v5219_v4  ;;  %v5221_v37 = vpop.f32.mrb[45].mxu0 }
 0x15b   :  { %6318 = vst [vmem:[#allocation49_spill] sm:$0xff] %v5221_v37  ;;  %v5224_v60 = vpop.f32.mrb[46].mxu0 }
 0x15c   :  { %6319 = vst [vmem:[#allocation50_spill] sm:$0xff] %v5224_v60  ;;  %v5226_v30 = vpop.f32.mrb[47].mxu0 }
 0x15d   :  { %6320 = vst [vmem:[#allocation51_spill] sm:$0xff] %v5226_v30  ;;  %v5229_v23 = vpop.f32.mrb[48].mxu0 }
 0x15e   :  { %6321 = vst [vmem:[#allocation52_spill] sm:$0xff] %v5229_v23  ;;  %v5231_v16 = vpop.f32.mrb[49].mxu0 }
 0x15f   :  { %6322 = vst [vmem:[#allocation53_spill] sm:$0xff] %v5231_v16  ;;  %v5234_v59 = vpop.f32.mrb[50].mxu0  ;;  %v4119_v16 = vpop.eup %4118 }
 0x160   :  { %6323 = vst [vmem:[#allocation54_spill] sm:$0xff] %v5234_v59  ;;  %v5236_v37 = vpop.f32.mrb[51].mxu0 }
 0x161   :  { %6324 = vst [vmem:[#allocation55_spill] sm:$0xff] %v5236_v37  ;;  %v5241_v23 = vpop.f32.mrb[52].mxu0 }
 0x162   :  { %6325 = vst [vmem:[#allocation56_spill] sm:$0xff] %v5241_v23  ;;  %v5243_v49 = vpop.f32.mrb[53].mxu0 }
 0x163   :  { %6326 = vst [vmem:[#allocation57_spill] sm:$0xff] %v5243_v49  ;;  %v5252_v46 = vpop.f32.mrb[54].mxu0 }
 0x164   :  { %6328 = vst [vmem:[#allocation58_spill] sm:$0xff] %v5252_v46 }
 0x19f   :  { %v1122_v11 = vpop.permute.xlu0 %1121 }
 0x1a0   :  { %v1137_v3 = vsub.f32 1.0, %v1122_v11  ;;  %v1153_v20 = vmul.f32 0.0, %v1122_v11  ;;  %v6327_v11 = vmov 0.0  }
 0x1a2   :  { %v1145_v43 = vmul.f32 %v4117_v44, %v1137_v3 }
 0x1a3   :  { %v1124_v30 = vpop.permute.xlu0 %1123 }
 0x1a4   :  { %v5239_v34 = vadd.f32 %v1153_v20, %v1145_v43  ;;  %v1138_v1 = vsub.f32 1.0, %v1124_v30  ;;  %v1154_v60 = vmul.f32 0.0, %v1124_v30  ;;  %v5255_v30 = vpop.f32.mrb[55].mxu0 }
 0x1a5   :  { %6329 = vst [vmem:[#allocation59_spill] sm:$0xff] %v5255_v30  ;;  %v5264_v49 = vpop.f32.mrb[56].mxu0 }
 0x1a6   :  { %v1146_v24 = vmul.f32 %v4119_v16, %v1138_v1  ;;  %1258 = vmatmul.mubr.f32.vlgmr.msra.gmra.mrb[48].mxu1 %v5239_v34  ;;  %3708 = vmatprep.mubr.f32.mxu0 %v5239_v34  ;;  %v4121_v16 = vpop.eup %4120  ;;  %6330 = vst [vmem:[#allocation60_spill] sm:$0xff] %v5264_v49 }
 0x1a7   :  { %v1126_v3 = vpop.permute.xlu1 %1125  ;;  %1263 = vmatprep.mubr.f32.mxu1 %v6327_v11  ;;  %3871 = vmatpush1.bf16.msra.mxu1 %v4453_v9 }
 0x1a8   :  { %v5250_v20 = vadd.f32 %v1154_v60, %v1146_v24  ;;  %v1139_v44 = vsub.f32 1.0, %v1126_v3  ;;  %3873 = vmatprep.subr.bf16.mxu1 %v4466_v13  ;;  %v1155_v1 = vmul.f32 0.0, %v1126_v3  ;;  %v5267_v3 = vpop.f32.mrb[57].mxu0 }
 0x1a9   :  { %6331 = vst [vmem:[#allocation61_spill] sm:$0xff] %v5267_v3  ;;  %v5276_v37 = vpop.f32.mrb[58].mxu0 }
 0x1aa   :  { %v1147_v43 = vmul.f32 %v4121_v16, %v1139_v44  ;;  %1264 = vmatmul.mubr.f32.gmra.mrb[50].mxu1 %v5250_v20  ;;  %3709 = vmatmul.mubr.f32.vlgmr.msra.gmra.mrb[96].mxu0 %v5250_v20  ;;  %v4123_v44 = vpop.eup %4122  ;;  %6332 = vst [vmem:[#allocation62_spill] sm:$0xff] %v5276_v37 }
 0x1ab   :  { %v1128_v38 = vpop.permute.xlu1 %1127  ;;  %1269 = vmatprep.mubr.f32.mxu1 %v6327_v11  ;;  %3875 = vmatpush1.bf16.msra.mxu1 %v4485_v18 }
 0x1ac   :  { %v5262_v60 = vadd.f32 %v1155_v1, %v1147_v43  ;;  %v1140_v24 = vsub.f32 1.0, %v1128_v38  ;;  %3877 = vmatprep.subr.bf16.mxu1 %v4488_v19  ;;  %v1156_v30 = vmul.f32 0.0, %v1128_v38  ;;  %v5279_v38 = vpop.f32.mrb[59].mxu0 }
 0x1ad   :  { %6333 = vst [vmem:[#allocation63_spill] sm:$0xff] %v5279_v38  ;;  %v5288_v37 = vpop.f32.mrb[60].mxu0 }
 0x1ae   :  { %v1148_v16 = vmul.f32 %v4123_v44, %v1140_v24  ;;  %1270 = vmatmul.mubr.f32.gmra.mrb[52].mxu1 %v5262_v60  ;;  %3711 = vmatprep.mubr.f32.mxu0 %v5262_v60  ;;  %v4125_v24 = vpop.eup %4124  ;;  %6334 = vst [vmem:[#allocation64_spill] sm:$0xff] %v5288_v37 }
 0x1af   :  { %v1130_v22 = vpop.permute.xlu0 %1129  ;;  %1275 = vmatprep.mubr.f32.mxu1 %v6327_v11  ;;  %3879 = vmatpush1.bf16.msra.mxu1 %v4508_v25 }
 0x1b0   :  { %v5274_v43 = vadd.f32 %v1156_v30, %v1148_v16  ;;  %v1141_v1 = vsub.f32 1.0, %v1130_v22  ;;  %3881 = vmatprep.subr.bf16.mxu1 %v4511_v26  ;;  %v1157_v3 = vmul.f32 0.0, %v1130_v22  ;;  %v5291_v22 = vpop.f32.mrb[61].mxu0 }
 0x1b1   :  { %6335 = vst [vmem:[#allocation65_spill] sm:$0xff] %v5291_v22  ;;  %v5299_v37 = vpop.f32.mrb[62].mxu0 }
 0x1b2   :  { %v1149_v44 = vmul.f32 %v4125_v24, %v1141_v1  ;;  %1276 = vmatmul.mubr.f32.gmra.mrb[54].mxu1 %v5274_v43  ;;  %3712 = vmatmul.mubr.f32.gmra.mrb[98].mxu0 %v5274_v43  ;;  %v4127_v1 = vpop.eup %4126  ;;  %6336 = vst [vmem:[#allocation66_spill] sm:$0xff] %v5299_v37  ;;  %v5302_v22 = vpop.f32.mrb[63].mxu0 }
 0x1b3   :  { %v1132_v52 = vpop.permute.xlu1 %1131  ;;  %1281 = vmatprep.mubr.f32.mxu1 %v6327_v11  ;;  %3883 = vmatpush1.bf16.msra.mxu1 %v4531_v32  ;;  %v4129_v49 = vpop.eup %4128  ;;  %6337 = vst [vmem:[#allocation67_spill] sm:$0xff] %v5302_v22 }
 0x1b4   :  { %v5286_v30 = vadd.f32 %v1157_v3, %v1149_v44  ;;  %v1142_v16 = vsub.f32 1.0, %v1132_v52  ;;  %3885 = vmatprep.subr.bf16.mxu1 %v4534_v33  ;;  %v1158_v38 = vmul.f32 0.0, %v1132_v52  ;;  %v5310_v37 = vpop.f32.mrb[64].mxu0  ;;  %v4131_v46 = vpop.eup %4130 }
 0x1b5   :  { %6338 = vst [vmem:[#allocation68_spill] sm:$0xff] %v5310_v37  ;;  %v5313_v22 = vpop.f32.mrb[65].mxu0 }
 0x1b6   :  { %v1150_v24 = vmul.f32 %v4127_v1, %v1142_v16  ;;  %1282 = vmatmul.mubr.f32.gmra.mrb[56].mxu1 %v5286_v30  ;;  %3714 = vmatprep.mubr.f32.mxu0 %v5286_v30  ;;  %6339 = vst [vmem:[#allocation69_spill] sm:$0xff] %v5313_v22 }
 0x1b7   :  { %v1134_v36 = vpop.permute.xlu0 %1133  ;;  %1287 = vmatprep.mubr.f32.mxu1 %v6327_v11  ;;  %3887 = vmatpush1.bf16.msra.mxu1 %v4558_v40 }
 0x1b8   :  { %v5297_v3 = vadd.f32 %v1158_v38, %v1150_v24  ;;  %v1143_v44 = vsub.f32 1.0, %v1134_v36  ;;  %3889 = vmatprep.subr.bf16.mxu1 %v4564_v42  ;;  %v1159_v16 = vmul.f32 0.0, %v1134_v36 }
 0x1ba   :  { %v1151_v52 = vmul.f32 %v4129_v49, %v1143_v44  ;;  %1288 = vmatmul.mubr.f32.gmra.mrb[58].mxu1 %v5297_v3  ;;  %3715 = vmatmul.mubr.f32.gmra.mrb[100].mxu0 %v5297_v3 }
 0x1bb   :  { %v1136_v1 = vpop.permute.xlu1 %1135  ;;  %1293 = vmatprep.mubr.f32.mxu1 %v6327_v11  ;;  %3891 = vmatpush1.bf16.msra.mxu1 %v4586_v48 }
 0x1bc   :  { %v5308_v38 = vadd.f32 %v1159_v16, %v1151_v52  ;;  %v1144_v24 = vsub.f32 1.0, %v1136_v1  ;;  %3893 = vmatprep.subr.bf16.mxu1 %v4592_v50  ;;  %v1160_v36 = vmul.f32 0.0, %v1136_v1  ;;  %v5321_v52 = vpop.f32.mrb[66].mxu0 }
 0x1bd   :  { %6340 = vst [vmem:[#allocation70_spill] sm:$0xff] %v5321_v52  ;;  %v5324_v16 = vpop.f32.mrb[67].mxu0 }
 0x1be   :  { %v1152_v49 = vmul.f32 %v4131_v46, %v1144_v24  ;;  %1294 = vmatmul.mubr.f32.gmra.mrb[60].mxu1 %v5308_v38  ;;  %3717 = vmatprep.mubr.f32.mxu0 %v5308_v38  ;;  %6341 = vst [vmem:[#allocation71_spill] sm:$0xff] %v5324_v16  ;;  %v5330_v46 = vpop.f32.mrb[68].mxu0 }
 0x1bf   :  { %1299 = vmatprep.mubr.f32.mxu1 %v6327_v11  ;;  %3895 = vmatpush1.bf16.msra.mxu1 %v4614_v56  ;;  %6342 = vst [vmem:[#allocation72_spill] sm:$0xff] %v5330_v46  ;;  %v5333_v1 = vpop.f32.mrb[69].mxu0 }
 0x1c0   :  { %v5319_v44 = vadd.f32 %v1160_v36, %v1152_v49  ;;  %3897 = vmatprep.subr.bf16.mxu1 %v4620_v58  ;;  %6343 = vst [vmem:[#allocation73_spill] sm:$0xff] %v5333_v1  ;;  %v5335_v24 = vpop.f32.mrb[70].mxu0 }
 0x1c1   :  { %6344 = vst [vmem:[#allocation74_spill] sm:$0xff] %v5335_v24  ;;  %v5337_v49 = vpop.f32.mrb[71].mxu0 }
 0x1c2   :  { %1300 = vmatmul.mubr.f32.gmra.mrb[62].mxu1 %v5319_v44  ;;  %3718 = vmatmul.mubr.f32.gmra.mrb[102].mxu0 %v5319_v44  ;;  %6345 = vst [vmem:[#allocation75_spill] sm:$0xff] %v5337_v49  ;;  %v5339_v36 = vpop.f32.mrb[72].mxu0 }
 0x1c3   :  { %3899 = vmatpush1.bf16.msra.mxu1 %v4636_v62  ;;  %1514 = vmatprep.mubr.f32.mxu1 %v6327_v11  ;;  %6346 = vst [vmem:[#allocation76_spill] sm:$0xff] %v5339_v36  ;;  %v5341_v16 = vpop.f32.mrb[73].mxu0 }
 0x1c4   :  { %3901 = vmatprep.subr.bf16.mxu1 %v4447_v7  ;;  %6347 = vst [vmem:[#allocation77_spill] sm:$0xff] %v5341_v16  ;;  %v5343_v22 = vpop.f32.mrb[74].mxu0 }
 0x1c5   :  { %6348 = vst [vmem:[#allocation78_spill] sm:$0xff] %v5343_v22  ;;  %v5345_v52 = vpop.f32.mrb[75].mxu0 }
 0x1c6   :  { %6349 = vst [vmem:[#allocation79_spill] sm:$0xff] %v5345_v52  ;;  %v5347_v37 = vpop.f32.mrb[76].mxu0 }
 0x1c7   :  { %6350 = vst [vmem:[#allocation80_spill] sm:$0xff] %v5347_v37  ;;  %v5349_v23 = vpop.f32.mrb[77].mxu0 }
 0x1c8   :  { %6351 = vst [vmem:[#allocation81_spill] sm:$0xff] %v5349_v23  ;;  %v5351_v46 = vpop.f32.mrb[78].mxu0 }
 0x1c9   :  { %6352 = vst [vmem:[#allocation82_spill] sm:$0xff] %v5351_v46  ;;  %v5353_v59 = vpop.f32.mrb[79].mxu0 }
 0x1ca   :  { %6353 = vst [vmem:[#allocation83_spill] sm:$0xff] %v5353_v59  ;;  %v5355_v1 = vpop.f32.mrb[80].mxu0 }
 0x1cb   :  { %6354 = vst [vmem:[#allocation84_spill] sm:$0xff] %v5355_v1  ;;  %v5357_v24 = vpop.f32.mrb[81].mxu0 }
 0x1cc   :  { %6355 = vst [vmem:[#allocation85_spill] sm:$0xff] %v5357_v24  ;;  %v5359_v49 = vpop.f32.mrb[82].mxu0 }
 0x1cd   :  { %6356 = vst [vmem:[#allocation86_spill] sm:$0xff] %v5359_v49  ;;  %v5361_v36 = vpop.f32.mrb[83].mxu0 }
 0x1ce   :  { %6357 = vst [vmem:[#allocation87_spill] sm:$0xff] %v5361_v36  ;;  %v5363_v16 = vpop.f32.mrb[84].mxu0 }
 0x1cf   :  { %6358 = vst [vmem:[#allocation88_spill] sm:$0xff] %v5363_v16  ;;  %v5365_v22 = vpop.f32.mrb[85].mxu0 }
 0x1d0   :  { %6359 = vst [vmem:[#allocation89_spill] sm:$0xff] %v5365_v22  ;;  %v419_v22 = vadd.f32 %v5163_v61, %v5051_v63 }
 0x1e3   :  { %v5367_v52 = vpop.f32.mrb[86].mxu0 }
 0x1e4   :  { %6360 = vst [vmem:[#allocation90_spill] sm:$0xff] %v5367_v52  ;;  %v5369_v37 = vpop.f32.mrb[87].mxu0 }
 0x1e5   :  { %6361 = vst [vmem:[#allocation91_spill] sm:$0xff] %v5369_v37 }
 0x1e7   :  { %v5371_v23 = vpop.f32.mrb[88].mxu0 }
 0x1e8   :  { %6362 = vst [vmem:[#allocation92_spill] sm:$0xff] %v5371_v23  ;;  %v5373_v46 = vpop.f32.mrb[89].mxu0  ;;  %v425_v23 = vadd.f32 %v5167_v39, %v5051_v63 }
 0x1e9   :  { %6363 = vst [vmem:[#allocation93_spill] sm:$0xff] %v5373_v46 }
 0x1eb   :  { %v5375_v59 = vpop.f32.mrb[90].mxu0 }
 0x1ec   :  { %6364 = vst [vmem:[#allocation94_spill] sm:$0xff] %v5375_v59  ;;  %v5377_v1 = vpop.f32.mrb[91].mxu0 }
 0x1ed   :  { %6365 = vst [vmem:[#allocation95_spill] sm:$0xff] %v5377_v1  ;;  %v5394_v1 = vld [vmem:[%s6272_s6] ss:$0 sm:$0xff] }
 0x1f0   :  { %v5379_v24 = vpop.f32.mrb[92].mxu0 }
 0x1f1   :  { %6366 = vst [vmem:[#allocation96_spill] sm:$0xff] %v5379_v24  ;;  %v5381_v49 = vpop.f32.mrb[93].mxu0 }
 0x1f2   :  { %6367 = vst [vmem:[#allocation97_spill] sm:$0xff] %v5381_v49 }
 0x1f6   :  { %v5383_v36 = vpop.f32.mrb[94].mxu0 }
 0x1f7   :  { %6368 = vst [vmem:[#allocation98_spill] sm:$0xff] %v5383_v36  ;;  %v5385_v16 = vpop.f32.mrb[95].mxu0 }
 0x1f8   :  { %6369 = vst [vmem:[#allocation99_spill] sm:$0xff] %v5385_v16  ;;  %v431_v16 = vadd.f32 %v5171_v5, %v5051_v63 }
 0x279   :  { %v1259_v37 = vpop.f32.mrb[48].mxu1 }
 0x27a   :  { %v1306_v46 = vadd.f32 %v1259_v37, %v419_v22  ;;  %v1261_v52 = vpop.f32.mrb[49].mxu1 }
 0x27c   :  { %v1314_v24 = vmul.f32 0.5, %v1306_v46  ;;  %v437_v46 = vadd.f32 %v5175_v51, %v5051_v63 }
 0x27d   :  { %v1265_v49 = vpop.f32.mrb[50].mxu1  ;;  %v3710_v59 = vpop.f32.mrb[96].mxu0 }
 0x27e   :  { %4132 = vtanh.f32 %v1314_v24  ;;  %v1307_v36 = vadd.f32 %v1265_v49, %v425_v23  ;;  %v3135_v61 = vadd.f32 %v3710_v59, %v5394_v1  ;;  %v1267_v55 = vpop.f32.mrb[51].mxu1  ;;  %v3129_v4 = vpop.f32.mrb[97].mxu0  ;;  %v443_v59 = vadd.f32 %v5179_v41, %v5051_v63 }
 0x27f   :  { %v3130_v37 = vadd.f32 %v5394_v1, %v3129_v4 }
 0x280   :  { %v1315_v39 = vmul.f32 0.5, %v1307_v36  ;;  %3449 = vst [vmem:[#allocation4 + $0x8] sm:$0xff] %v3135_v61 }
 0x281   :  { %3448 = vst [vmem:[#allocation4] sm:$0xff] %v3130_v37  ;;  %v1271_v22 = vpop.f32.mrb[52].mxu1 }
 0x282   :  { %4134 = vtanh.f32 %v1315_v39  ;;  %v1308_v17 = vadd.f32 %v1271_v22, %v431_v16  ;;  %v1273_v12 = vpop.f32.mrb[53].mxu1  ;;  %v449_v39 = vadd.f32 %v5183_v57, %v5051_v63  ;;  %v455_v57 = vadd.f32 %v5187_v8, %v5051_v63 }
 0x284   :  { %v1316_v27 = vmul.f32 0.5, %v1308_v17 }
 0x285   :  { %v1277_v5 = vpop.f32.mrb[54].mxu1  ;;  %v3713_v24 = vpop.f32.mrb[98].mxu0 }
 0x286   :  { %4136 = vtanh.f32 %v1316_v27  ;;  %v1309_v23 = vadd.f32 %v1277_v5, %v437_v46  ;;  %v3145_v4 = vadd.f32 %v3713_v24, %v5394_v1  ;;  %v5405_v49 = vpop.f32.mrb[55].mxu1  ;;  %v3139_v36 = vpop.f32.mrb[99].mxu0  ;;  %v1346_v46 = vadd.f32 %v5104_v31, %v1261_v52 }
 0x287   :  { %v3140_v61 = vadd.f32 %v5394_v1, %v3139_v36  ;;  %v421_v36 = vadd.f32 %v5165_v0, %v5109_v45  ;;  %v1347_v0 = vadd.f32 %v5104_v31, %v1267_v55 }
 0x288   :  { %v4133_v37 = vpop.eup %4132  ;;  %v1317_v51 = vmul.f32 0.5, %v1309_v23  ;;  %3451 = vst [vmem:[#allocation4 + $0x18] sm:$0xff] %v3145_v4 }
 0x289   :  { %v1330_v16 = vmul.f32 0.5, %v4133_v37  ;;  %3450 = vst [vmem:[#allocation4 + $0x10] sm:$0xff] %v3140_v61  ;;  %v1283_v17 = vpop.f32.mrb[56].mxu1 }
 0x28a   :  { %4138 = vtanh.f32 %v1317_v51  ;;  %v1310_v41 = vadd.f32 %v1283_v17, %v443_v59  ;;  %v5410_v27 = vpop.f32.mrb[57].mxu1 }
 0x28b   :  { %v1338_v22 = vadd.f32 0.5, %v1330_v16 }
 0x28c   :  { %v4135_v5 = vpop.eup %4134  ;;  %v1318_v24 = vmul.f32 0.5, %v1310_v41 }
 0x28d   :  { %v1354_v23 = vmul.f32 %v1346_v46, %v1338_v22  ;;  %v1331_v4 = vmul.f32 0.5, %v4135_v5  ;;  %v3716_v37 = vpop.f32.mrb[100].mxu0  ;;  %1378 = vrot.lane.b32.xlu0 %v1338_v22, %s4386_s0  ;;  %v1289_v61 = vpop.f32.mrb[58].mxu1 }
 0x28e   :  { %4140 = vtanh.f32 %v1318_v24  ;;  %v3155_v59 = vadd.f32 %v3716_v37, %v5394_v1  ;;  %v1311_v51 = vadd.f32 %v1289_v61, %v449_v39  ;;  %v1291_v16 = vpop.f32.mrb[59].mxu1  ;;  %v3149_v52 = vpop.f32.mrb[101].mxu0  ;;  %v1348_v61 = vadd.f32 %v5104_v31, %v1273_v12 }
 0x28f   :  { %v5419_v17 = vadd.f32 %v1354_v23, %v421_v36  ;;  %v1339_v41 = vadd.f32 0.5, %v1331_v4  ;;  %v3150_v46 = vadd.f32 %v5394_v1, %v3149_v52  ;;  %v461_v36 = vadd.f32 %v5191_v47, %v5051_v63 }
 0x290   :  { %v4137_v5 = vpop.eup %4136  ;;  %3453 = vst [vmem:[#allocation4 + $0x28] sm:$0xff] %v3155_v59  ;;  %v1319_v22 = vmul.f32 0.5, %v1311_v51  ;;  %v1349_v12 = vadd.f32 %v5104_v31, %v5405_v49 }
 0x291   :  { %v1355_v8 = vmul.f32 %v1347_v0, %v1339_v41  ;;  %v1332_v24 = vmul.f32 0.5, %v4137_v5  ;;  %3452 = vst [vmem:[#allocation4 + $0x20] sm:$0xff] %v3150_v46  ;;  %1380 = vrot.lane.b32.xlu1 %v1339_v41, %s4386_s0  ;;  %v1295_v39 = vpop.f32.mrb[60].mxu1 }
 0x292   :  { %4142 = vtanh.f32 %v1319_v22  ;;  %v1312_v23 = vadd.f32 %v1295_v39, %v455_v57  ;;  %v1297_v55 = vpop.f32.mrb[61].mxu1 }
 0x293   :  { %v1363_v4 = vadd.f32 %v1355_v8, %v427_v35  ;;  %v1340_v37 = vadd.f32 0.5, %v1332_v24 }
 0x294   :  { %v4139_v59 = vpop.eup %4138  ;;  %v1320_v51 = vmul.f32 0.5, %v1312_v23  ;;  %v439_v23 = vadd.f32 %v5177_v10, %v5109_v45 }
 0x295   :  { %v1356_v52 = vmul.f32 %v1348_v61, %v1340_v37  ;;  %v1333_v0 = vmul.f32 0.5, %v4139_v59  ;;  %v3719_v46 = vpop.f32.mrb[102].mxu0  ;;  %1382 = vrot.lane.b32.xlu0 %v1340_v37, %s4386_s0  ;;  %v1301_v41 = vpop.f32.mrb[62].mxu1 }
 0x296   :  { %4144 = vtanh.f32 %v1320_v51  ;;  %v3165_v47 = vadd.f32 %v3719_v46, %v5394_v1  ;;  %v1313_v57 = vadd.f32 %v1301_v41, %v461_v36  ;;  %v1303_v5 = vpop.f32.mrb[63].mxu1  ;;  %v3159_v35 = vpop.f32.mrb[103].mxu0  ;;  %v1350_v51 = vadd.f32 %v5104_v31, %v5410_v27 }
 0x297   :  { %v1364_v22 = vadd.f32 %v1356_v52, %v433_v53  ;;  %v1341_v8 = vadd.f32 0.5, %v1333_v0  ;;  %v3160_v24 = vadd.f32 %v5394_v1, %v3159_v35  ;;  %v445_v53 = vadd.f32 %v5181_v28, %v5109_v45 }
 0x298   :  { %v4141_v29 = vpop.eup %4140  ;;  %3455 = vst [vmem:[#allocation4 + $0x38] sm:$0xff] %v3165_v47  ;;  %v1321_v39 = vmul.f32 0.5, %v1313_v57  ;;  %v1351_v41 = vadd.f32 %v5104_v31, %v1291_v16  ;;  %v451_v57 = vadd.f32 %v5185_v14, %v5109_v45  ;;  %v1352_v28 = vadd.f32 %v5104_v31, %v1297_v55 }
 0x299   :  { %v1357_v37 = vmul.f32 %v1349_v12, %v1341_v8  ;;  %v1334_v61 = vmul.f32 0.5, %v4141_v29  ;;  %3454 = vst [vmem:[#allocation4 + $0x30] sm:$0xff] %v3160_v24  ;;  %1384 = vrot.lane.b32.xlu1 %v1341_v8, %s4386_s0  ;;  %v457_v29 = vadd.f32 %v5189_v2, %v5109_v45  ;;  %v1353_v14 = vadd.f32 %v5104_v31, %v1303_v5 }
 0x29a   :  { %4146 = vtanh.f32 %v1321_v39 }
 0x29b   :  { %v1365_v36 = vadd.f32 %v1357_v37, %v439_v23  ;;  %v1342_v59 = vadd.f32 0.5, %v1334_v61  ;;  %v463_v61 = vadd.f32 %v5193_v15, %v5109_v45  ;;  %4148 = vtanh.f32 %v5419_v17 }
 0x29c   :  { %v4143_v49 = vpop.eup %4142  ;;  %4150 = vtanh.f32 %v1363_v4 }
 0x29d   :  { %v1358_v52 = vmul.f32 %v1350_v51, %v1342_v59  ;;  %v1335_v0 = vmul.f32 0.5, %v4143_v49  ;;  %1386 = vrot.lane.b32.xlu0 %v1342_v59, %s4386_s0  ;;  %4152 = vtanh.f32 %v1364_v22 }
 0x29e   :  { %4154 = vtanh.f32 %v1365_v36 }
 0x29f   :  { %v1366_v10 = vadd.f32 %v1358_v52, %v445_v53  ;;  %v1343_v46 = vadd.f32 0.5, %v1335_v0 }
 0x2a0   :  { %v4145_v47 = vpop.eup %4144 }
 0x2a1   :  { %v1359_v35 = vmul.f32 %v1351_v41, %v1343_v46  ;;  %v1336_v8 = vmul.f32 0.5, %v4145_v47  ;;  %1388 = vrot.lane.b32.xlu1 %v1343_v46, %s4386_s0  ;;  %4156 = vtanh.f32 %v1366_v10 }
 0x2a3   :  { %v1367_v27 = vadd.f32 %v1359_v35, %v451_v57  ;;  %v1344_v12 = vadd.f32 0.5, %v1336_v8 }
 0x2a4   :  { %v4147_v24 = vpop.eup %4146 }
 0x2a5   :  { %v1360_v39 = vmul.f32 %v1352_v28, %v1344_v12  ;;  %v1337_v23 = vmul.f32 0.5, %v4147_v24  ;;  %1390 = vrot.lane.b32.xlu0 %v1344_v12, %s4386_s0  ;;  %v4149_v49 = vpop.eup %4148  ;;  %4158 = vtanh.f32 %v1367_v27 }
 0x2a6   :  { %v4151_v15 = vpop.eup %4150 }
 0x2a7   :  { %v1368_v16 = vadd.f32 %v1360_v39, %v457_v29  ;;  %v1345_v37 = vadd.f32 0.5, %v1337_v23  ;;  %v4153_v22 = vpop.eup %4152 }
 0x2a8   :  { %v4155_v35 = vpop.eup %4154 }
 0x2a9   :  { %v1361_v59 = vmul.f32 %v1353_v14, %v1345_v37  ;;  %1392 = vrot.lane.b32.xlu1 %v1345_v37, %s4386_s0  ;;  %4160 = vtanh.f32 %v1368_v16 }
 0x2ab   :  { %v1369_v51 = vadd.f32 %v1361_v59, %v463_v61  ;;  %v4157_v24 = vpop.eup %4156 }
 0x2ad   :  { %4162 = vtanh.f32 %v1369_v51 }
 0x2af   :  { %v4159_v37 = vpop.eup %4158 }
 0x2ff   :  { %v1379_v2 = vpop.permute.xlu0 %1378 }
 0x300   :  { %v1394_v55 = vsub.f32 1.0, %v1379_v2  ;;  %v1410_v52 = vmul.f32 %v1379_v2, %v5239_v34  ;;  %v4161_v2 = vpop.eup %4160 }
 0x302   :  { %v1402_v53 = vmul.f32 %v4149_v49, %v1394_v55 }
 0x303   :  { %v1381_v0 = vpop.permute.xlu1 %1380 }
 0x304   :  { %v5458_v31 = vadd.f32 %v1410_v52, %v1402_v53  ;;  %v1395_v5 = vsub.f32 1.0, %v1381_v0  ;;  %v1411_v41 = vmul.f32 %v1381_v0, %v5250_v20  ;;  %v4163_v0 = vpop.eup %4162 }
 0x306   :  { %v1403_v46 = vmul.f32 %v4151_v15, %v1395_v5  ;;  %1515 = vmatmul.mubr.f32.vlgmr.msra.gmra.mrb[64].mxu1 %v5458_v31  ;;  %3720 = vmatprep.mubr.f32.mxu0 %v5458_v31 }
 0x307   :  { %v1383_v17 = vpop.permute.xlu0 %1382  ;;  %1520 = vmatprep.mubr.f32.mxu1 %v6327_v11  ;;  %3903 = vmatpush1.bf16.msra.mxu1 %v4453_v9 }
 0x308   :  { %v5465_v34 = vadd.f32 %v1411_v41, %v1403_v46  ;;  %v1396_v4 = vsub.f32 1.0, %v1383_v17  ;;  %3905 = vmatprep.subr.bf16.mxu1 %v4466_v13  ;;  %v1412_v47 = vmul.f32 %v1383_v17, %v5262_v60  ;;  %v473_v41 = vadd.f32 %v5199_v21, %v5051_v63 }
 0x30a   :  { %v1404_v36 = vmul.f32 %v4153_v22, %v1396_v4  ;;  %1521 = vmatmul.mubr.f32.gmra.mrb[66].mxu1 %v5465_v34  ;;  %3721 = vmatmul.mubr.f32.gmra.mrb[104].mxu0 %v5465_v34 }
 0x30b   :  { %v1385_v20 = vpop.permute.xlu1 %1384  ;;  %1526 = vmatprep.mubr.f32.mxu1 %v6327_v11  ;;  %3907 = vmatpush1.bf16.msra.mxu1 %v4485_v18 }
 0x30c   :  { %v5473_v10 = vadd.f32 %v1412_v47, %v1404_v36  ;;  %v1397_v57 = vsub.f32 1.0, %v1385_v20  ;;  %3909 = vmatprep.subr.bf16.mxu1 %v4488_v19  ;;  %v1413_v12 = vmul.f32 %v1385_v20, %v5274_v43  ;;  %v479_v20 = vadd.f32 %v5203_v54, %v5051_v63 }
 0x30e   :  { %v1405_v8 = vmul.f32 %v4155_v35, %v1397_v57  ;;  %1527 = vmatmul.mubr.f32.gmra.mrb[68].mxu1 %v5473_v10  ;;  %3723 = vmatprep.mubr.f32.mxu0 %v5473_v10 }
 0x30f   :  { %v1387_v60 = vpop.permute.xlu0 %1386  ;;  %1532 = vmatprep.mubr.f32.mxu1 %v6327_v11  ;;  %3911 = vmatpush1.bf16.msra.mxu1 %v4508_v25 }
 0x310   :  { %v5481_v27 = vadd.f32 %v1413_v12, %v1405_v8  ;;  %v1398_v28 = vsub.f32 1.0, %v1387_v60  ;;  %3913 = vmatprep.subr.bf16.mxu1 %v4511_v26  ;;  %v1414_v39 = vmul.f32 %v1387_v60, %v5286_v30 }
 0x312   :  { %v1406_v29 = vmul.f32 %v4157_v24, %v1398_v28  ;;  %1533 = vmatmul.mubr.f32.gmra.mrb[70].mxu1 %v5481_v27  ;;  %3724 = vmatmul.mubr.f32.gmra.mrb[106].mxu0 %v5481_v27  ;;  %v6370_v28 = vld [vmem:[#allocation42_spill] sm:$0xff] }
 0x313   :  { %v1389_v43 = vpop.permute.xlu1 %1388  ;;  %1538 = vmatprep.mubr.f32.mxu1 %v6327_v11  ;;  %3915 = vmatpush1.bf16.msra.mxu1 %v4531_v32  ;;  %v485_v24 = vadd.f32 %v6370_v28, %v5051_v63 }
 0x314   :  { %v5489_v23 = vadd.f32 %v1414_v39, %v1406_v29  ;;  %v1399_v16 = vsub.f32 1.0, %v1389_v43  ;;  %3917 = vmatprep.subr.bf16.mxu1 %v4534_v33  ;;  %v1415_v61 = vmul.f32 %v1389_v43, %v5297_v3 }
 0x316   :  { %v1407_v14 = vmul.f32 %v4159_v37, %v1399_v16  ;;  %1539 = vmatmul.mubr.f32.gmra.mrb[72].mxu1 %v5489_v23  ;;  %3726 = vmatprep.mubr.f32.mxu0 %v5489_v23  ;;  %v6371_v37 = vld [vmem:[#allocation44_spill] sm:$0xff] }
 0x317   :  { %v1391_v30 = vpop.permute.xlu0 %1390  ;;  %1544 = vmatprep.mubr.f32.mxu1 %v6327_v11  ;;  %3919 = vmatpush1.bf16.msra.mxu1 %v4558_v40 }
 0x318   :  { %v5497_v59 = vadd.f32 %v1415_v61, %v1407_v14  ;;  %v1400_v51 = vsub.f32 1.0, %v1391_v30  ;;  %3921 = vmatprep.subr.bf16.mxu1 %v4564_v42  ;;  %v1416_v49 = vmul.f32 %v1391_v30, %v5308_v38  ;;  %v491_v14 = vadd.f32 %v6371_v37, %v5051_v63 }
 0x31a   :  { %v1408_v55 = vmul.f32 %v4161_v2, %v1400_v51  ;;  %1545 = vmatmul.mubr.f32.gmra.mrb[74].mxu1 %v5497_v59  ;;  %3727 = vmatmul.mubr.f32.gmra.mrb[108].mxu0 %v5497_v59 }
 0x31b   :  { %v1393_v3 = vpop.permute.xlu1 %1392  ;;  %1550 = vmatprep.mubr.f32.mxu1 %v6327_v11  ;;  %3923 = vmatpush1.bf16.msra.mxu1 %v4586_v48 }
 0x31c   :  { %v5505_v53 = vadd.f32 %v1416_v49, %v1408_v55  ;;  %v1401_v52 = vsub.f32 1.0, %v1393_v3  ;;  %3925 = vmatprep.subr.bf16.mxu1 %v4592_v50  ;;  %v1417_v15 = vmul.f32 %v1393_v3, %v5319_v44  ;;  %v467_v44 = vadd.f32 %v5195_v6, %v5051_v63 }
 0x31e   :  { %v1409_v5 = vmul.f32 %v4163_v0, %v1401_v52  ;;  %1551 = vmatmul.mubr.f32.gmra.mrb[76].mxu1 %v5505_v53  ;;  %3729 = vmatprep.mubr.f32.mxu0 %v5505_v53 }
 0x31f   :  { %1556 = vmatprep.mubr.f32.mxu1 %v6327_v11  ;;  %3927 = vmatpush1.bf16.msra.mxu1 %v4614_v56 }
 0x320   :  { %v5513_v38 = vadd.f32 %v1417_v15, %v1409_v5  ;;  %3929 = vmatprep.subr.bf16.mxu1 %v4620_v58  ;;  %v6372_v5 = vld [vmem:[#allocation46_spill] sm:$0xff] }
 0x321   :  { %v497_v15 = vadd.f32 %v6372_v5, %v5051_v63 }
 0x322   :  { %1557 = vmatmul.mubr.f32.gmra.mrb[78].mxu1 %v5513_v38  ;;  %3730 = vmatmul.mubr.f32.gmra.mrb[110].mxu0 %v5513_v38 }
 0x323   :  { %3931 = vmatpush1.bf16.msra.mxu1 %v4636_v62  ;;  %1771 = vmatprep.mubr.f32.mxu1 %v6327_v11 }
 0x324   :  { %3933 = vmatprep.subr.bf16.mxu1 %v4447_v7 }
 0x3d9   :  { %v1516_v46 = vpop.f32.mrb[64].mxu1 }
 0x3da   :  { %v1563_v17 = vadd.f32 %v1516_v46, %v467_v44  ;;  %v1518_v4 = vpop.f32.mrb[65].mxu1 }
 0x3dc   :  { %v1571_v22 = vmul.f32 0.5, %v1563_v17  ;;  %v5544_v17 = vld [vmem:[%s6270_s4] ss:$0 sm:$0xff] }
 0x3dd   :  { %v1522_v36 = vpop.f32.mrb[66].mxu1  ;;  %v3722_v47 = vpop.f32.mrb[104].mxu0 }
 0x3de   :  { %4164 = vtanh.f32 %v1571_v22  ;;  %v1564_v57 = vadd.f32 %v1522_v36, %v473_v41  ;;  %v3175_v35 = vadd.f32 %v3722_v47, %v5394_v1  ;;  %v1524_v8 = vpop.f32.mrb[67].mxu1  ;;  %v3169_v12 = vpop.f32.mrb[105].mxu0  ;;  %v1603_v22 = vadd.f32 %v5544_v17, %v1518_v4 }
 0x3df   :  { %v3170_v6 = vadd.f32 %v5394_v1, %v3169_v12  ;;  %v1604_v37 = vadd.f32 %v5544_v17, %v1524_v8 }
 0x3e0   :  { %v1572_v60 = vmul.f32 0.5, %v1564_v57  ;;  %3457 = vst [vmem:[#allocation4 + $0x48] sm:$0xff] %v3175_v35 }
 0x3e1   :  { %3456 = vst [vmem:[#allocation4 + $0x40] sm:$0xff] %v3170_v6  ;;  %v1528_v21 = vpop.f32.mrb[68].mxu1 }
 0x3e2   :  { %4166 = vtanh.f32 %v1572_v60  ;;  %v1565_v29 = vadd.f32 %v1528_v21, %v479_v20  ;;  %v1530_v39 = vpop.f32.mrb[69].mxu1  ;;  %v6373_v20 = vld [vmem:[#allocation39_spill] sm:$0xff]  ;;  %v6374_v21 = vld [vmem:[#allocation48_spill] sm:$0xff] }
 0x3e3   :  { %v469_v57 = vadd.f32 %v6373_v20, %v5109_v45  ;;  %v503_v28 = vadd.f32 %v6374_v21, %v5051_v63  ;;  %v6377_v20 = vld [vmem:[#allocation41_spill] sm:$0xff] }
 0x3e4   :  { %v1573_v43 = vmul.f32 0.5, %v1565_v29 }
 0x3e5   :  { %v1534_v54 = vpop.f32.mrb[70].mxu1  ;;  %v3725_v16 = vpop.f32.mrb[106].mxu0 }
 0x3e6   :  { %4168 = vtanh.f32 %v1573_v43  ;;  %v1566_v61 = vadd.f32 %v1534_v54, %v485_v24  ;;  %v3185_v30 = vadd.f32 %v3725_v16, %v5394_v1  ;;  %v5534_v51 = vpop.f32.mrb[71].mxu1  ;;  %v3179_v2 = vpop.f32.mrb[107].mxu0 }
 0x3e7   :  { %v3180_v55 = vadd.f32 %v5394_v1, %v3179_v2  ;;  %v6375_v2 = vld [vmem:[#allocation40_spill] sm:$0xff] }
 0x3e8   :  { %v4165_v49 = vpop.eup %4164  ;;  %v1574_v3 = vmul.f32 0.5, %v1566_v61  ;;  %3459 = vst [vmem:[#allocation4 + $0x58] sm:$0xff] %v3185_v30 }
 0x3e9   :  { %v1587_v52 = vmul.f32 0.5, %v4165_v49  ;;  %3458 = vst [vmem:[#allocation4 + $0x50] sm:$0xff] %v3180_v55  ;;  %v1540_v0 = vpop.f32.mrb[72].mxu1  ;;  %v475_v55 = vadd.f32 %v6375_v2, %v5109_v45 }
 0x3ea   :  { %4170 = vtanh.f32 %v1574_v3  ;;  %v1567_v44 = vadd.f32 %v1540_v0, %v491_v14  ;;  %v5539_v46 = vpop.f32.mrb[73].mxu1  ;;  %v6376_v0 = vld [vmem:[#allocation50_spill] sm:$0xff] }
 0x3eb   :  { %v1595_v41 = vadd.f32 0.5, %v1587_v52  ;;  %v509_v5 = vadd.f32 %v6376_v0, %v5051_v63  ;;  %v1607_v0 = vadd.f32 %v5544_v17, %v5539_v46 }
 0x3ec   :  { %v4167_v36 = vpop.eup %4166  ;;  %v1575_v47 = vmul.f32 0.5, %v1567_v44 }
 0x3ed   :  { %v1611_v35 = vmul.f32 %v1603_v22, %v1595_v41  ;;  %v1588_v12 = vmul.f32 0.5, %v4167_v36  ;;  %v3728_v6 = vpop.f32.mrb[108].mxu0  ;;  %1635 = vrot.lane.b32.xlu0 %v1595_v41, %s4386_s0  ;;  %v1546_v60 = vpop.f32.mrb[74].mxu1  ;;  %v1605_v22 = vadd.f32 %v5544_v17, %v1530_v39  ;;  %v1606_v39 = vadd.f32 %v5544_v17, %v5534_v51 }
 0x3ee   :  { %4172 = vtanh.f32 %v1575_v47  ;;  %v3195_v24 = vadd.f32 %v3728_v6, %v5394_v1  ;;  %v1568_v29 = vadd.f32 %v1546_v60, %v497_v15  ;;  %v1548_v43 = vpop.f32.mrb[75].mxu1  ;;  %v3189_v4 = vpop.f32.mrb[109].mxu0 }
 0x3ef   :  { %v5553_v54 = vadd.f32 %v1611_v35, %v469_v57  ;;  %v1596_v16 = vadd.f32 0.5, %v1588_v12  ;;  %v3190_v14 = vadd.f32 %v5394_v1, %v3189_v4  ;;  %v481_v57 = vadd.f32 %v6377_v20, %v5109_v45 }
 0x3f0   :  { %v4169_v61 = vpop.eup %4168  ;;  %3461 = vst [vmem:[#allocation4 + $0x68] sm:$0xff] %v3195_v24  ;;  %v1576_v30 = vmul.f32 0.5, %v1568_v29  ;;  %v1608_v20 = vadd.f32 %v5544_v17, %v1548_v43 }
 0x3f1   :  { %v1612_v49 = vmul.f32 %v1604_v37, %v1596_v16  ;;  %v1589_v3 = vmul.f32 0.5, %v4169_v61  ;;  %3460 = vst [vmem:[#allocation4 + $0x60] sm:$0xff] %v3190_v14  ;;  %1637 = vrot.lane.b32.xlu1 %v1596_v16, %s4386_s0  ;;  %v1552_v52 = vpop.f32.mrb[76].mxu1 }
 0x3f2   :  { %4174 = vtanh.f32 %v1576_v30  ;;  %v1569_v15 = vadd.f32 %v1552_v52, %v503_v28  ;;  %v1554_v8 = vpop.f32.mrb[77].mxu1  ;;  %v6378_v30 = vld [vmem:[#allocation43_spill] sm:$0xff] }
 0x3f3   :  { %v1620_v44 = vadd.f32 %v1612_v49, %v475_v55  ;;  %v1597_v41 = vadd.f32 0.5, %v1589_v3  ;;  %v487_v2 = vadd.f32 %v6378_v30, %v5109_v45 }
 0x3f4   :  { %v4171_v36 = vpop.eup %4170  ;;  %v1577_v47 = vmul.f32 0.5, %v1569_v15 }
 0x3f5   :  { %v1613_v35 = vmul.f32 %v1605_v22, %v1597_v41  ;;  %v1590_v12 = vmul.f32 0.5, %v4171_v36  ;;  %1639 = vrot.lane.b32.xlu0 %v1597_v41, %s4386_s0  ;;  %v1558_v6 = vpop.f32.mrb[78].mxu1  ;;  %v3731_v60 = vpop.f32.mrb[110].mxu0 }
 0x3f6   :  { %4176 = vtanh.f32 %v1577_v47  ;;  %v1570_v21 = vadd.f32 %v1558_v6, %v509_v5  ;;  %v3205_v28 = vadd.f32 %v3731_v60, %v5394_v1  ;;  %v1560_v24 = vpop.f32.mrb[79].mxu1  ;;  %v3199_v29 = vpop.f32.mrb[111].mxu0  ;;  %v6379_v5 = vld [vmem:[#allocation45_spill] sm:$0xff] }
 0x3f7   :  { %v1621_v4 = vadd.f32 %v1613_v35, %v481_v57  ;;  %v1598_v16 = vadd.f32 0.5, %v1590_v12  ;;  %v3200_v37 = vadd.f32 %v5394_v1, %v3199_v29  ;;  %v493_v15 = vadd.f32 %v6379_v5, %v5109_v45  ;;  %v6380_v35 = vld [vmem:[#allocation47_spill] sm:$0xff] }
 0x3f8   :  { %v4173_v14 = vpop.eup %4172  ;;  %v1578_v61 = vmul.f32 0.5, %v1570_v21  ;;  %3463 = vst [vmem:[#allocation4 + $0x78] sm:$0xff] %v3205_v28  ;;  %v499_v12 = vadd.f32 %v6380_v35, %v5109_v45  ;;  %v1609_v28 = vadd.f32 %v5544_v17, %v1554_v8  ;;  %v1610_v30 = vadd.f32 %v5544_v17, %v1560_v24 }
 0x3f9   :  { %v1614_v55 = vmul.f32 %v1606_v39, %v1598_v16  ;;  %v1591_v49 = vmul.f32 0.5, %v4173_v14  ;;  %3462 = vst [vmem:[#allocation4 + $0x70] sm:$0xff] %v3200_v37  ;;  %1641 = vrot.lane.b32.xlu1 %v1598_v16, %s4386_s0  ;;  %v6381_v16 = vld [vmem:[#allocation49_spill] sm:$0xff] }
 0x3fa   :  { %4178 = vtanh.f32 %v1578_v61  ;;  %v505_v39 = vadd.f32 %v6381_v16, %v5109_v45 }
 0x3fb   :  { %v1622_v3 = vadd.f32 %v1614_v55, %v487_v2  ;;  %v1599_v52 = vadd.f32 0.5, %v1591_v49  ;;  %v6382_v2 = vld [vmem:[#allocation51_spill] sm:$0xff]  ;;  %4180 = vtanh.f32 %v5553_v54 }
 0x3fc   :  { %v4175_v51 = vpop.eup %4174  ;;  %v511_v55 = vadd.f32 %v6382_v2, %v5109_v45  ;;  %4182 = vtanh.f32 %v1620_v44 }
 0x3fd   :  { %v1615_v41 = vmul.f32 %v1607_v0, %v1599_v52  ;;  %v1592_v22 = vmul.f32 0.5, %v4175_v51  ;;  %1643 = vrot.lane.b32.xlu0 %v1599_v52, %s4386_s0  ;;  %4184 = vtanh.f32 %v1621_v4 }
 0x3fe   :  { %4186 = vtanh.f32 %v1622_v3 }
 0x3ff   :  { %v1623_v36 = vadd.f32 %v1615_v41, %v493_v15  ;;  %v1600_v47 = vadd.f32 0.5, %v1592_v22 }
 0x400   :  { %v4177_v57 = vpop.eup %4176 }
 0x401   :  { %v1616_v6 = vmul.f32 %v1608_v20, %v1600_v47  ;;  %v1593_v60 = vmul.f32 0.5, %v4177_v57  ;;  %1645 = vrot.lane.b32.xlu1 %v1600_v47, %s4386_s0  ;;  %4188 = vtanh.f32 %v1623_v36 }
 0x403   :  { %v1624_v46 = vadd.f32 %v1616_v6, %v499_v12  ;;  %v1601_v21 = vadd.f32 0.5, %v1593_v60 }
 0x404   :  { %v4179_v29 = vpop.eup %4178 }
 0x405   :  { %v1617_v37 = vmul.f32 %v1609_v28, %v1601_v21  ;;  %v1594_v14 = vmul.f32 0.5, %v4179_v29  ;;  %1647 = vrot.lane.b32.xlu0 %v1601_v21, %s4386_s0  ;;  %v4181_v51 = vpop.eup %4180  ;;  %4190 = vtanh.f32 %v1624_v46 }
 0x406   :  { %v4183_v47 = vpop.eup %4182 }
 0x407   :  { %v1625_v43 = vadd.f32 %v1617_v37, %v505_v39  ;;  %v1602_v61 = vadd.f32 0.5, %v1594_v14  ;;  %v4185_v4 = vpop.eup %4184 }
 0x408   :  { %v4187_v6 = vpop.eup %4186 }
 0x409   :  { %v1618_v49 = vmul.f32 %v1610_v30, %v1602_v61  ;;  %1649 = vrot.lane.b32.xlu1 %v1602_v61, %s4386_s0  ;;  %4192 = vtanh.f32 %v1625_v43 }
 0x40b   :  { %v1626_v52 = vadd.f32 %v1618_v49, %v511_v55  ;;  %v4189_v29 = vpop.eup %4188 }
 0x40d   :  { %4194 = vtanh.f32 %v1626_v52 }
 0x40f   :  { %v4191_v43 = vpop.eup %4190 }
 0x413   :  { %v4193_v49 = vpop.eup %4192 }
 0x45f   :  { %v1636_v8 = vpop.permute.xlu0 %1635 }
 0x460   :  { %v1651_v0 = vsub.f32 1.0, %v1636_v8  ;;  %v1667_v15 = vmul.f32 %v1636_v8, %v5458_v31 }
 0x462   :  { %v1659_v5 = vmul.f32 %v4181_v51, %v1651_v0 }
 0x463   :  { %v1638_v41 = vpop.permute.xlu1 %1637 }
 0x464   :  { %v5592_v24 = vadd.f32 %v1667_v15, %v1659_v5  ;;  %v1652_v22 = vsub.f32 1.0, %v1638_v41  ;;  %v1668_v57 = vmul.f32 %v1638_v41, %v5465_v34  ;;  %v4195_v5 = vpop.eup %4194 }
 0x466   :  { %v1660_v20 = vmul.f32 %v4183_v47, %v1652_v22  ;;  %1772 = vmatmul.mubr.f32.vlgmr.msra.gmra.mrb[80].mxu1 %v5592_v24  ;;  %3732 = vmatprep.mubr.f32.mxu0 %v5592_v24 }
 0x467   :  { %v1640_v54 = vpop.permute.xlu0 %1639  ;;  %1777 = vmatprep.mubr.f32.mxu1 %v6327_v11  ;;  %3935 = vmatpush1.bf16.msra.mxu1 %v4453_v9 }
 0x468   :  { %v5599_v31 = vadd.f32 %v1668_v57, %v1660_v20  ;;  %v1653_v44 = vsub.f32 1.0, %v1640_v54  ;;  %3937 = vmatprep.subr.bf16.mxu1 %v4466_v13  ;;  %v1669_v35 = vmul.f32 %v1640_v54, %v5473_v10  ;;  %v6384_v20 = vld [vmem:[#allocation54_spill] sm:$0xff] }
 0x469   :  { %v521_v57 = vadd.f32 %v6384_v20, %v5051_v63 }
 0x46a   :  { %v1661_v3 = vmul.f32 %v4185_v4, %v1653_v44  ;;  %1778 = vmatmul.mubr.f32.gmra.mrb[82].mxu1 %v5599_v31  ;;  %3733 = vmatmul.mubr.f32.gmra.mrb[112].mxu0 %v5599_v31 }
 0x46b   :  { %v1642_v34 = vpop.permute.xlu1 %1641  ;;  %1783 = vmatprep.mubr.f32.mxu1 %v6327_v11  ;;  %3939 = vmatpush1.bf16.msra.mxu1 %v4485_v18 }
 0x46c   :  { %v5607_v36 = vadd.f32 %v1669_v35, %v1661_v3  ;;  %v1654_v12 = vsub.f32 1.0, %v1642_v34  ;;  %3941 = vmatprep.subr.bf16.mxu1 %v4488_v19  ;;  %v1670_v21 = vmul.f32 %v1642_v34, %v5481_v27  ;;  %v6385_v34 = vld [vmem:[#allocation56_spill] sm:$0xff] }
 0x46e   :  { %v1662_v60 = vmul.f32 %v4187_v6, %v1654_v12  ;;  %1784 = vmatmul.mubr.f32.gmra.mrb[84].mxu1 %v5607_v36  ;;  %3735 = vmatprep.mubr.f32.mxu0 %v5607_v36  ;;  %v527_v12 = vadd.f32 %v6385_v34, %v5051_v63 }
 0x46f   :  { %v1644_v10 = vpop.permute.xlu0 %1643  ;;  %1789 = vmatprep.mubr.f32.mxu1 %v6327_v11  ;;  %3943 = vmatpush1.bf16.msra.mxu1 %v4508_v25 }
 0x470   :  { %v5615_v46 = vadd.f32 %v1670_v21, %v1662_v60  ;;  %v1655_v28 = vsub.f32 1.0, %v1644_v10  ;;  %3945 = vmatprep.subr.bf16.mxu1 %v4511_v26  ;;  %v1671_v39 = vmul.f32 %v1644_v10, %v5489_v23 }
 0x472   :  { %v1663_v16 = vmul.f32 %v4189_v29, %v1655_v28  ;;  %1790 = vmatmul.mubr.f32.gmra.mrb[86].mxu1 %v5615_v46  ;;  %3736 = vmatmul.mubr.f32.gmra.mrb[114].mxu0 %v5615_v46 }
 0x473   :  { %v1646_v27 = vpop.permute.xlu1 %1645  ;;  %1795 = vmatprep.mubr.f32.mxu1 %v6327_v11  ;;  %3947 = vmatpush1.bf16.msra.mxu1 %v4531_v32 }
 0x474   :  { %v5623_v37 = vadd.f32 %v1671_v39, %v1663_v16  ;;  %v1656_v14 = vsub.f32 1.0, %v1646_v27  ;;  %3949 = vmatprep.subr.bf16.mxu1 %v4534_v33  ;;  %v1672_v30 = vmul.f32 %v1646_v27, %v5497_v59  ;;  %v6386_v39 = vld [vmem:[#allocation58_spill] sm:$0xff] }
 0x475   :  { %v533_v27 = vadd.f32 %v6386_v39, %v5051_v63  ;;  %v5684_v39 = vld [vmem:[%s6272_s6] ss:$0 sm:$0xff] }
 0x476   :  { %v1664_v61 = vmul.f32 %v4191_v43, %v1656_v14  ;;  %1796 = vmatmul.mubr.f32.gmra.mrb[88].mxu1 %v5623_v37  ;;  %3738 = vmatprep.mubr.f32.mxu0 %v5623_v37 }
 0x477   :  { %v1648_v23 = vpop.permute.xlu0 %1647  ;;  %1801 = vmatprep.mubr.f32.mxu1 %v6327_v11  ;;  %3951 = vmatpush1.bf16.msra.mxu1 %v4558_v40 }
 0x478   :  { %v5631_v2 = vadd.f32 %v1672_v30, %v1664_v61  ;;  %v1657_v55 = vsub.f32 1.0, %v1648_v23  ;;  %3953 = vmatprep.subr.bf16.mxu1 %v4564_v42  ;;  %v1673_v8 = vmul.f32 %v1648_v23, %v5505_v53 }
 0x47a   :  { %v1665_v52 = vmul.f32 %v4193_v49, %v1657_v55  ;;  %1802 = vmatmul.mubr.f32.gmra.mrb[90].mxu1 %v5631_v2  ;;  %3739 = vmatmul.mubr.f32.gmra.mrb[116].mxu0 %v5631_v2  ;;  %v6387_v55 = vld [vmem:[#allocation60_spill] sm:$0xff] }
 0x47b   :  { %v1650_v59 = vpop.permute.xlu1 %1649  ;;  %1807 = vmatprep.mubr.f32.mxu1 %v6327_v11  ;;  %3955 = vmatpush1.bf16.msra.mxu1 %v4586_v48  ;;  %v539_v49 = vadd.f32 %v6387_v55, %v5051_v63 }
 0x47c   :  { %v5639_v0 = vadd.f32 %v1673_v8, %v1665_v52  ;;  %v1658_v51 = vsub.f32 1.0, %v1650_v59  ;;  %3957 = vmatprep.subr.bf16.mxu1 %v4592_v50  ;;  %v1674_v41 = vmul.f32 %v1650_v59, %v5513_v38  ;;  %v6383_v38 = vld [vmem:[#allocation52_spill] sm:$0xff] }
 0x47d   :  { %v515_v22 = vadd.f32 %v6383_v38, %v5051_v63 }
 0x47e   :  { %v1666_v15 = vmul.f32 %v4195_v5, %v1658_v51  ;;  %1808 = vmatmul.mubr.f32.gmra.mrb[92].mxu1 %v5639_v0  ;;  %3741 = vmatprep.mubr.f32.mxu0 %v5639_v0 }
 0x47f   :  { %1813 = vmatprep.mubr.f32.mxu1 %v6327_v11  ;;  %3959 = vmatpush1.bf16.msra.mxu1 %v4614_v56 }
 0x480   :  { %v5647_v53 = vadd.f32 %v1674_v41, %v1666_v15  ;;  %3961 = vmatprep.subr.bf16.mxu1 %v4620_v58 }
 0x482   :  { %1814 = vmatmul.mubr.f32.gmra.mrb[94].mxu1 %v5647_v53  ;;  %3742 = vmatmul.mubr.f32.gmra.mrb[118].mxu0 %v5647_v53 }
 0x483   :  { %3963 = vmatpush1.bf16.msra.mxu1 %v4636_v62  ;;  %2028 = vmatprep.mubr.f32.mxu1 %v6327_v11 }
 0x484   :  { %3965 = vmatprep.subr.bf16.mxu1 %v4447_v7 }
 0x539   :  { %v1773_v47 = vpop.f32.mrb[80].mxu1 }
 0x53a   :  { %v1820_v54 = vadd.f32 %v1773_v47, %v515_v22  ;;  %v1775_v44 = vpop.f32.mrb[81].mxu1  ;;  %v6388_v47 = vld [vmem:[#allocation62_spill] sm:$0xff] }
 0x53b   :  { %v545_v20 = vadd.f32 %v6388_v47, %v5051_v63 }
 0x53c   :  { %v1828_v4 = vmul.f32 0.5, %v1820_v54 }
 0x53d   :  { %v1779_v3 = vpop.f32.mrb[82].mxu1  ;;  %v3734_v35 = vpop.f32.mrb[112].mxu0 }
 0x53e   :  { %4196 = vtanh.f32 %v1828_v4  ;;  %v1821_v6 = vadd.f32 %v1779_v3, %v521_v57  ;;  %v3215_v60 = vadd.f32 %v3734_v35, %v5394_v1  ;;  %v1781_v21 = vpop.f32.mrb[83].mxu1  ;;  %v3209_v10 = vpop.f32.mrb[113].mxu0  ;;  %v1860_v3 = vadd.f32 %v5544_v17, %v1775_v44 }
 0x53f   :  { %v3210_v28 = vadd.f32 %v5394_v1, %v3209_v10  ;;  %v1861_v55 = vadd.f32 %v5544_v17, %v1781_v21 }
 0x540   :  { %v1829_v29 = vmul.f32 0.5, %v1821_v6  ;;  %3465 = vst [vmem:[#allocation4 + $0x88] sm:$0xff] %v3215_v60 }
 0x541   :  { %3464 = vst [vmem:[#allocation4 + $0x80] sm:$0xff] %v3210_v28  ;;  %v1785_v16 = vpop.f32.mrb[84].mxu1 }
 0x542   :  { %4198 = vtanh.f32 %v1829_v29  ;;  %v1822_v14 = vadd.f32 %v1785_v16, %v527_v12  ;;  %v1787_v43 = vpop.f32.mrb[85].mxu1  ;;  %v6390_v29 = vld [vmem:[#allocation64_spill] sm:$0xff] }
 0x543   :  { %v551_v16 = vadd.f32 %v6390_v29, %v5051_v63 }
 0x544   :  { %v1830_v61 = vmul.f32 0.5, %v1822_v14 }
 0x545   :  { %v1791_v30 = vpop.f32.mrb[86].mxu1  ;;  %v3737_v23 = vpop.f32.mrb[114].mxu0 }
 0x546   :  { %4200 = vtanh.f32 %v1830_v61  ;;  %v1823_v52 = vadd.f32 %v1791_v30, %v533_v27  ;;  %v3225_v8 = vadd.f32 %v3737_v23, %v5394_v1  ;;  %v5668_v59 = vpop.f32.mrb[87].mxu1  ;;  %v3219_v51 = vpop.f32.mrb[115].mxu0 }
 0x547   :  { %v3220_v5 = vadd.f32 %v5394_v1, %v3219_v51  ;;  %v6389_v1 = vld [vmem:[#allocation53_spill] sm:$0xff]  ;;  %v6391_v51 = vld [vmem:[#allocation55_spill] sm:$0xff] }
 0x548   :  { %v4197_v15 = vpop.eup %4196  ;;  %v1831_v41 = vmul.f32 0.5, %v1823_v52  ;;  %3467 = vst [vmem:[#allocation4 + $0x98] sm:$0xff] %v3225_v8  ;;  %v517_v12 = vadd.f32 %v6389_v1, %v5109_v45  ;;  %v6393_v1 = vld [vmem:[#allocation57_spill] sm:$0xff] }
 0x549   :  { %v1844_v38 = vmul.f32 0.5, %v4197_v15  ;;  %3466 = vst [vmem:[#allocation4 + $0x90] sm:$0xff] %v3220_v5  ;;  %v1797_v22 = vpop.f32.mrb[88].mxu1  ;;  %v523_v5 = vadd.f32 %v6391_v51, %v5109_v45 }
 0x54a   :  { %4202 = vtanh.f32 %v1831_v41  ;;  %v1824_v57 = vadd.f32 %v1797_v22, %v539_v49  ;;  %v5673_v54 = vpop.f32.mrb[89].mxu1  ;;  %v6392_v22 = vld [vmem:[#allocation66_spill] sm:$0xff] }
 0x54b   :  { %v1852_v4 = vadd.f32 0.5, %v1844_v38  ;;  %v557_v47 = vadd.f32 %v6392_v22, %v5051_v63  ;;  %v1864_v22 = vadd.f32 %v5544_v17, %v5673_v54 }
 0x54c   :  { %v4199_v35 = vpop.eup %4198  ;;  %v1832_v34 = vmul.f32 0.5, %v1824_v57 }
 0x54d   :  { %v1868_v6 = vmul.f32 %v1860_v3, %v1852_v4  ;;  %v1845_v60 = vmul.f32 0.5, %v4199_v35  ;;  %v3740_v10 = vpop.f32.mrb[116].mxu0  ;;  %1892 = vrot.lane.b32.xlu0 %v1852_v4, %s4386_s0  ;;  %v1803_v28 = vpop.f32.mrb[90].mxu1  ;;  %v1862_v3 = vadd.f32 %v5544_v17, %v1787_v43  ;;  %v1863_v43 = vadd.f32 %v5544_v17, %v5668_v59 }
 0x54e   :  { %4204 = vtanh.f32 %v1832_v34  ;;  %v3235_v44 = vadd.f32 %v5684_v39, %v3740_v10  ;;  %v1825_v27 = vadd.f32 %v1803_v28, %v545_v20  ;;  %v1805_v14 = vpop.f32.mrb[91].mxu1  ;;  %v3229_v61 = vpop.f32.mrb[117].mxu0 }
 0x54f   :  { %v5687_v30 = vadd.f32 %v1868_v6, %v517_v12  ;;  %v1853_v23 = vadd.f32 0.5, %v1845_v60  ;;  %v3230_v49 = vadd.f32 %v5684_v39, %v3229_v61  ;;  %v529_v12 = vadd.f32 %v6393_v1, %v5109_v45 }
 0x550   :  { %v4201_v52 = vpop.eup %4200  ;;  %3469 = vst [vmem:[#allocation4 + $0xa8] sm:$0xff] %v3235_v44  ;;  %v1833_v8 = vmul.f32 0.5, %v1825_v27  ;;  %v1865_v1 = vadd.f32 %v5544_v17, %v1805_v14 }
 0x551   :  { %v1869_v15 = vmul.f32 %v1861_v55, %v1853_v23  ;;  %v1846_v41 = vmul.f32 0.5, %v4201_v52  ;;  %3468 = vst [vmem:[#allocation4 + $0xa0] sm:$0xff] %v3230_v49  ;;  %1894 = vrot.lane.b32.xlu1 %v1853_v23, %s4386_s0  ;;  %v1809_v38 = vpop.f32.mrb[92].mxu1 }
 0x552   :  { %4206 = vtanh.f32 %v1833_v8  ;;  %v1826_v20 = vadd.f32 %v1809_v38, %v551_v16  ;;  %v1811_v21 = vpop.f32.mrb[93].mxu1  ;;  %v6394_v8 = vld [vmem:[#allocation59_spill] sm:$0xff] }
 0x553   :  { %v1877_v57 = vadd.f32 %v1869_v15, %v523_v5  ;;  %v1854_v4 = vadd.f32 0.5, %v1846_v41  ;;  %v535_v51 = vadd.f32 %v6394_v8, %v5109_v45 }
 0x554   :  { %v4203_v35 = vpop.eup %4202  ;;  %v1834_v34 = vmul.f32 0.5, %v1826_v20 }
 0x555   :  { %v1870_v6 = vmul.f32 %v1862_v3, %v1854_v4  ;;  %v1847_v60 = vmul.f32 0.5, %v4203_v35  ;;  %1896 = vrot.lane.b32.xlu0 %v1854_v4, %s4386_s0  ;;  %v1815_v10 = vpop.f32.mrb[94].mxu1  ;;  %v3743_v28 = vpop.f32.mrb[118].mxu0 }
 0x556   :  { %4208 = vtanh.f32 %v1834_v34  ;;  %v1827_v29 = vadd.f32 %v1815_v10, %v557_v47  ;;  %v3245_v16 = vadd.f32 %v5684_v39, %v3743_v28  ;;  %v1817_v44 = vpop.f32.mrb[95].mxu1  ;;  %v3239_v27 = vpop.f32.mrb[119].mxu0  ;;  %v6395_v47 = vld [vmem:[#allocation61_spill] sm:$0xff] }
 0x557   :  { %v1878_v61 = vadd.f32 %v1870_v6, %v529_v12  ;;  %v1855_v23 = vadd.f32 0.5, %v1847_v60  ;;  %v3240_v55 = vadd.f32 %v5684_v39, %v3239_v27  ;;  %v541_v20 = vadd.f32 %v6395_v47, %v5109_v45  ;;  %v6396_v6 = vld [vmem:[#allocation63_spill] sm:$0xff] }
 0x558   :  { %v4205_v49 = vpop.eup %4204  ;;  %v1835_v52 = vmul.f32 0.5, %v1827_v29  ;;  %3471 = vst [vmem:[#allocation4 + $0xb8] sm:$0xff] %v3245_v16  ;;  %v547_v60 = vadd.f32 %v6396_v6, %v5109_v45  ;;  %v1866_v16 = vadd.f32 %v5544_v17, %v1811_v21  ;;  %v1867_v8 = vadd.f32 %v5544_v17, %v1817_v44 }
 0x559   :  { %v1871_v5 = vmul.f32 %v1863_v43, %v1855_v23  ;;  %v1848_v15 = vmul.f32 0.5, %v4205_v49  ;;  %3470 = vst [vmem:[#allocation4 + $0xb0] sm:$0xff] %v3240_v55  ;;  %1898 = vrot.lane.b32.xlu1 %v1855_v23, %s4386_s0  ;;  %v6397_v23 = vld [vmem:[#allocation65_spill] sm:$0xff] }
 0x55a   :  { %4210 = vtanh.f32 %v1835_v52  ;;  %v553_v43 = vadd.f32 %v6397_v23, %v5109_v45 }
 0x55b   :  { %v1879_v41 = vadd.f32 %v1871_v5, %v535_v51  ;;  %v1856_v38 = vadd.f32 0.5, %v1848_v15  ;;  %v6398_v51 = vld [vmem:[#allocation67_spill] sm:$0xff]  ;;  %4212 = vtanh.f32 %v5687_v30 }
 0x55c   :  { %v4207_v59 = vpop.eup %4206  ;;  %v559_v5 = vadd.f32 %v6398_v51, %v5109_v45  ;;  %4214 = vtanh.f32 %v1877_v57 }
 0x55d   :  { %v1872_v4 = vmul.f32 %v1864_v22, %v1856_v38  ;;  %v1849_v3 = vmul.f32 0.5, %v4207_v59  ;;  %1900 = vrot.lane.b32.xlu0 %v1856_v38, %s4386_s0  ;;  %4216 = vtanh.f32 %v1878_v61 }
 0x55e   :  { %4218 = vtanh.f32 %v1879_v41 }
 0x55f   :  { %v1880_v35 = vadd.f32 %v1872_v4, %v541_v20  ;;  %v1857_v34 = vadd.f32 0.5, %v1849_v3 }
 0x560   :  { %v4209_v12 = vpop.eup %4208 }
 0x561   :  { %v1873_v10 = vmul.f32 %v1865_v1, %v1857_v34  ;;  %v1850_v28 = vmul.f32 0.5, %v4209_v12  ;;  %1902 = vrot.lane.b32.xlu1 %v1857_v34, %s4386_s0  ;;  %4220 = vtanh.f32 %v1880_v35 }
 0x563   :  { %v1881_v54 = vadd.f32 %v1873_v10, %v547_v60  ;;  %v1858_v29 = vadd.f32 0.5, %v1850_v28 }
 0x564   :  { %v4211_v27 = vpop.eup %4210 }
 0x565   :  { %v1874_v55 = vmul.f32 %v1866_v16, %v1858_v29  ;;  %v1851_v49 = vmul.f32 0.5, %v4211_v27  ;;  %1904 = vrot.lane.b32.xlu0 %v1858_v29, %s4386_s0  ;;  %v4213_v59 = vpop.eup %4212  ;;  %4222 = vtanh.f32 %v1881_v54 }
 0x566   :  { %v4215_v34 = vpop.eup %4214 }
 0x567   :  { %v1882_v14 = vadd.f32 %v1874_v55, %v553_v43  ;;  %v1859_v52 = vadd.f32 0.5, %v1851_v49  ;;  %v4217_v61 = vpop.eup %4216 }
 0x568   :  { %v4219_v10 = vpop.eup %4218 }
 0x569   :  { %v1875_v15 = vmul.f32 %v1867_v8, %v1859_v52  ;;  %1906 = vrot.lane.b32.xlu1 %v1859_v52, %s4386_s0  ;;  %4224 = vtanh.f32 %v1882_v14 }
 0x56b   :  { %v1883_v38 = vadd.f32 %v1875_v15, %v559_v5  ;;  %v4221_v27 = vpop.eup %4220 }
 0x56d   :  { %4226 = vtanh.f32 %v1883_v38 }
 0x56f   :  { %v4223_v14 = vpop.eup %4222 }
 0x573   :  { %v4225_v15 = vpop.eup %4224 }
 0x5bf   :  { %v1893_v21 = vpop.permute.xlu0 %1892 }
 0x5c0   :  { %v1908_v22 = vsub.f32 1.0, %v1893_v21  ;;  %v1924_v20 = vmul.f32 %v1893_v21, %v5592_v24 }
 0x5c2   :  { %v1916_v47 = vmul.f32 %v4213_v59, %v1908_v22 }
 0x5c3   :  { %v1895_v4 = vpop.permute.xlu1 %1894 }
 0x5c4   :  { %v5726_v44 = vadd.f32 %v1924_v20, %v1916_v47  ;;  %v1909_v3 = vsub.f32 1.0, %v1895_v4  ;;  %v1925_v12 = vmul.f32 %v1895_v4, %v5599_v31  ;;  %v4227_v47 = vpop.eup %4226 }
 0x5c6   :  { %v1917_v1 = vmul.f32 %v4215_v34, %v1909_v3  ;;  %2029 = vmatmul.mubr.f32.vlgmr.msra.gmra.mrb[96].mxu1 %v5726_v44  ;;  %3744 = vmatprep.mubr.f32.mxu0 %v5726_v44 }
 0x5c7   :  { %v1897_v30 = vpop.permute.xlu0 %1896  ;;  %2034 = vmatprep.mubr.f32.mxu1 %v6327_v11  ;;  %3967 = vmatpush1.bf16.msra.mxu1 %v4453_v9 }
 0x5c8   :  { %v5733_v24 = vadd.f32 %v1925_v12, %v1917_v1  ;;  %v1910_v57 = vsub.f32 1.0, %v1897_v30  ;;  %3969 = vmatprep.subr.bf16.mxu1 %v4466_v13  ;;  %v1926_v6 = vmul.f32 %v1897_v30, %v5607_v36  ;;  %v6400_v1 = vld [vmem:[#allocation70_spill] sm:$0xff] }
 0x5c9   :  { %v569_v12 = vadd.f32 %v6400_v1, %v5051_v63 }
 0x5ca   :  { %v1918_v41 = vmul.f32 %v4217_v61, %v1910_v57  ;;  %2035 = vmatmul.mubr.f32.gmra.mrb[98].mxu1 %v5733_v24  ;;  %3745 = vmatmul.mubr.f32.gmra.mrb[120].mxu0 %v5733_v24 }
 0x5cb   :  { %v1899_v31 = vpop.permute.xlu1 %1898  ;;  %2040 = vmatprep.mubr.f32.mxu1 %v6327_v11  ;;  %3971 = vmatpush1.bf16.msra.mxu1 %v4485_v18 }
 0x5cc   :  { %v5741_v35 = vadd.f32 %v1926_v6, %v1918_v41  ;;  %v1911_v60 = vsub.f32 1.0, %v1899_v31  ;;  %3973 = vmatprep.subr.bf16.mxu1 %v4488_v19  ;;  %v1927_v29 = vmul.f32 %v1899_v31, %v5615_v46  ;;  %v6401_v31 = vld [vmem:[#allocation72_spill] sm:$0xff] }
 0x5ce   :  { %v1919_v28 = vmul.f32 %v4219_v10, %v1911_v60  ;;  %2041 = vmatmul.mubr.f32.gmra.mrb[100].mxu1 %v5741_v35  ;;  %3747 = vmatprep.mubr.f32.mxu0 %v5741_v35  ;;  %v575_v60 = vadd.f32 %v6401_v31, %v5051_v63 }
 0x5cf   :  { %v1901_v36 = vpop.permute.xlu0 %1900  ;;  %2046 = vmatprep.mubr.f32.mxu1 %v6327_v11  ;;  %3975 = vmatpush1.bf16.msra.mxu1 %v4508_v25 }
 0x5d0   :  { %v5749_v54 = vadd.f32 %v1927_v29, %v1919_v28  ;;  %v1912_v16 = vsub.f32 1.0, %v1901_v36  ;;  %3977 = vmatprep.subr.bf16.mxu1 %v4511_v26  ;;  %v1928_v43 = vmul.f32 %v1901_v36, %v5623_v37 }
 0x5d2   :  { %v1920_v23 = vmul.f32 %v4221_v27, %v1912_v16  ;;  %2047 = vmatmul.mubr.f32.gmra.mrb[102].mxu1 %v5749_v54  ;;  %3748 = vmatmul.mubr.f32.gmra.mrb[122].mxu0 %v5749_v54 }
 0x5d3   :  { %v1903_v46 = vpop.permute.xlu1 %1902  ;;  %2052 = vmatprep.mubr.f32.mxu1 %v6327_v11  ;;  %3979 = vmatpush1.bf16.msra.mxu1 %v4531_v32 }
 0x5d4   :  { %v5757_v55 = vadd.f32 %v1928_v43, %v1920_v23  ;;  %v1913_v49 = vsub.f32 1.0, %v1903_v46  ;;  %3981 = vmatprep.subr.bf16.mxu1 %v4534_v33  ;;  %v1929_v8 = vmul.f32 %v1903_v46, %v5631_v2  ;;  %v6402_v43 = vld [vmem:[#allocation74_spill] sm:$0xff] }
 0x5d5   :  { %v581_v46 = vadd.f32 %v6402_v43, %v5051_v63 }
 0x5d6   :  { %v1921_v52 = vmul.f32 %v4223_v14, %v1913_v49  ;;  %2053 = vmatmul.mubr.f32.gmra.mrb[104].mxu1 %v5757_v55  ;;  %3750 = vmatprep.mubr.f32.mxu0 %v5757_v55 }
 0x5d7   :  { %v1905_v37 = vpop.permute.xlu0 %1904  ;;  %2058 = vmatprep.mubr.f32.mxu1 %v6327_v11  ;;  %3983 = vmatpush1.bf16.msra.mxu1 %v4558_v40 }
 0x5d8   :  { %v5765_v51 = vadd.f32 %v1929_v8, %v1921_v52  ;;  %v1914_v5 = vsub.f32 1.0, %v1905_v37  ;;  %3985 = vmatprep.subr.bf16.mxu1 %v4564_v42  ;;  %v1930_v21 = vmul.f32 %v1905_v37, %v5639_v0 }
 0x5da   :  { %v1922_v38 = vmul.f32 %v4225_v15, %v1914_v5  ;;  %2059 = vmatmul.mubr.f32.gmra.mrb[106].mxu1 %v5765_v51  ;;  %3751 = vmatmul.mubr.f32.gmra.mrb[124].mxu0 %v5765_v51  ;;  %v6403_v5 = vld [vmem:[#allocation76_spill] sm:$0xff] }
 0x5db   :  { %v1907_v2 = vpop.permute.xlu1 %1906  ;;  %2064 = vmatprep.mubr.f32.mxu1 %v6327_v11  ;;  %3987 = vmatpush1.bf16.msra.mxu1 %v4586_v48  ;;  %v587_v15 = vadd.f32 %v6403_v5, %v5051_v63 }
 0x5dc   :  { %v5773_v22 = vadd.f32 %v1930_v21, %v1922_v38  ;;  %v1915_v59 = vsub.f32 1.0, %v1907_v2  ;;  %3989 = vmatprep.subr.bf16.mxu1 %v4592_v50  ;;  %v1931_v4 = vmul.f32 %v1907_v2, %v5647_v53  ;;  %v6399_v53 = vld [vmem:[#allocation68_spill] sm:$0xff] }
 0x5dd   :  { %v563_v3 = vadd.f32 %v6399_v53, %v5051_v63 }
 0x5de   :  { %v1923_v20 = vmul.f32 %v4227_v47, %v1915_v59  ;;  %2065 = vmatmul.mubr.f32.gmra.mrb[108].mxu1 %v5773_v22  ;;  %3753 = vmatprep.mubr.f32.mxu0 %v5773_v22 }
 0x5df   :  { %2070 = vmatprep.mubr.f32.mxu1 %v6327_v11  ;;  %3991 = vmatpush1.bf16.msra.mxu1 %v4614_v56 }
 0x5e0   :  { %v5781_v0 = vadd.f32 %v1931_v4, %v1923_v20  ;;  %3993 = vmatprep.subr.bf16.mxu1 %v4620_v58 }
 0x5e2   :  { %2071 = vmatmul.mubr.f32.gmra.mrb[110].mxu1 %v5781_v0  ;;  %3754 = vmatmul.mubr.f32.gmra.mrb[126].mxu0 %v5781_v0 }
 0x5e3   :  { %3995 = vmatpush1.bf16.msra.mxu1 %v4636_v62  ;;  %2285 = vmatprep.mubr.f32.mxu1 %v6327_v11 }
 0x5e4   :  { %3997 = vmatprep.subr.bf16.mxu1 %v4447_v7 }
 0x699   :  { %v2030_v34 = vpop.f32.mrb[96].mxu1 }
 0x69a   :  { %v2077_v30 = vadd.f32 %v2030_v34, %v563_v3  ;;  %v2032_v57 = vpop.f32.mrb[97].mxu1  ;;  %v6404_v34 = vld [vmem:[#allocation78_spill] sm:$0xff] }
 0x69b   :  { %v593_v1 = vadd.f32 %v6404_v34, %v5051_v63 }
 0x69c   :  { %v2085_v61 = vmul.f32 0.5, %v2077_v30 }
 0x69d   :  { %v2036_v41 = vpop.f32.mrb[98].mxu1  ;;  %v3746_v6 = vpop.f32.mrb[120].mxu0 }
 0x69e   :  { %4228 = vtanh.f32 %v2085_v61  ;;  %v2078_v10 = vadd.f32 %v2036_v41, %v569_v12  ;;  %v3255_v28 = vadd.f32 %v5684_v39, %v3746_v6  ;;  %v2038_v29 = vpop.f32.mrb[99].mxu1  ;;  %v3249_v36 = vpop.f32.mrb[121].mxu0  ;;  %v2117_v41 = vadd.f32 %v5544_v17, %v2032_v57 }
 0x69f   :  { %v3250_v16 = vadd.f32 %v5684_v39, %v3249_v36  ;;  %v2118_v5 = vadd.f32 %v5544_v17, %v2038_v29 }
 0x6a0   :  { %v2086_v27 = vmul.f32 0.5, %v2078_v10  ;;  %3473 = vst [vmem:[#allocation4 + $0xc8] sm:$0xff] %v3255_v28 }
 0x6a1   :  { %3472 = vst [vmem:[#allocation4 + $0xc0] sm:$0xff] %v3250_v16  ;;  %v2042_v23 = vpop.f32.mrb[100].mxu1 }
 0x6a2   :  { %4230 = vtanh.f32 %v2086_v27  ;;  %v2079_v49 = vadd.f32 %v2042_v23, %v575_v60  ;;  %v2044_v14 = vpop.f32.mrb[101].mxu1  ;;  %v6405_v60 = vld [vmem:[#allocation69_spill] sm:$0xff]  ;;  %v6406_v23 = vld [vmem:[#allocation80_spill] sm:$0xff] }
 0x6a3   :  { %v565_v10 = vadd.f32 %v6405_v60, %v5109_v45  ;;  %v599_v43 = vadd.f32 %v6406_v23, %v5051_v63  ;;  %v6409_v60 = vld [vmem:[#allocation73_spill] sm:$0xff] }
 0x6a4   :  { %v2087_v52 = vmul.f32 0.5, %v2079_v49 }
 0x6a5   :  { %v2048_v8 = vpop.f32.mrb[102].mxu1  ;;  %v3749_v37 = vpop.f32.mrb[122].mxu0 }
 0x6a6   :  { %4232 = vtanh.f32 %v2087_v52  ;;  %v2080_v38 = vadd.f32 %v2048_v8, %v581_v46  ;;  %v3265_v21 = vadd.f32 %v5684_v39, %v3749_v37  ;;  %v5802_v2 = vpop.f32.mrb[103].mxu1  ;;  %v3259_v59 = vpop.f32.mrb[123].mxu0 }
 0x6a7   :  { %v3260_v47 = vadd.f32 %v5684_v39, %v3259_v59  ;;  %v6407_v59 = vld [vmem:[#allocation71_spill] sm:$0xff] }
 0x6a8   :  { %v4229_v20 = vpop.eup %4228  ;;  %v2088_v4 = vmul.f32 0.5, %v2080_v38  ;;  %3475 = vst [vmem:[#allocation4 + $0xd8] sm:$0xff] %v3265_v21 }
 0x6a9   :  { %v2101_v53 = vmul.f32 0.5, %v4229_v20  ;;  %3474 = vst [vmem:[#allocation4 + $0xd0] sm:$0xff] %v3260_v47  ;;  %v2054_v3 = vpop.f32.mrb[104].mxu1  ;;  %v571_v47 = vadd.f32 %v6407_v59, %v5109_v45 }
 0x6aa   :  { %4234 = vtanh.f32 %v2088_v4  ;;  %v2081_v12 = vadd.f32 %v2054_v3, %v587_v15  ;;  %v5807_v30 = vpop.f32.mrb[105].mxu1  ;;  %v6408_v3 = vld [vmem:[#allocation82_spill] sm:$0xff] }
 0x6ab   :  { %v2109_v61 = vadd.f32 0.5, %v2101_v53  ;;  %v605_v34 = vadd.f32 %v6408_v3, %v5051_v63 }
 0x6ac   :  { %v4231_v6 = vpop.eup %4230  ;;  %v2089_v31 = vmul.f32 0.5, %v2081_v12 }
 0x6ad   :  { %v2125_v28 = vmul.f32 %v2117_v41, %v2109_v61  ;;  %v2102_v36 = vmul.f32 0.5, %v4231_v6  ;;  %v3752_v16 = vpop.f32.mrb[124].mxu0  ;;  %2149 = vrot.lane.b32.xlu0 %v2109_v61, %s4386_s0  ;;  %v2060_v27 = vpop.f32.mrb[106].mxu1  ;;  %v2119_v41 = vadd.f32 %v5544_v17, %v2044_v14  ;;  %v5833_v17 = vld [vmem:[%s6270_s4] ss:$0 sm:$0xff] }
 0x6ae   :  { %4236 = vtanh.f32 %v2089_v31  ;;  %v3275_v46 = vadd.f32 %v5684_v39, %v3752_v16  ;;  %v2082_v49 = vadd.f32 %v2060_v27, %v593_v1  ;;  %v2062_v52 = vpop.f32.mrb[107].mxu1  ;;  %v3269_v57 = vpop.f32.mrb[125].mxu0  ;;  %v2120_v14 = vadd.f32 %v5833_v17, %v5802_v2 }
 0x6af   :  { %v5816_v8 = vadd.f32 %v2125_v28, %v565_v10  ;;  %v2110_v37 = vadd.f32 0.5, %v2102_v36  ;;  %v3270_v15 = vadd.f32 %v5684_v39, %v3269_v57  ;;  %v577_v10 = vadd.f32 %v6409_v60, %v5109_v45 }
 0x6b0   :  { %v4233_v38 = vpop.eup %4232  ;;  %3477 = vst [vmem:[#allocation4 + $0xe8] sm:$0xff] %v3275_v46  ;;  %v2090_v21 = vmul.f32 0.5, %v2082_v49  ;;  %v2121_v3 = vadd.f32 %v5833_v17, %v5807_v30  ;;  %v2122_v60 = vadd.f32 %v5833_v17, %v2062_v52 }
 0x6b1   :  { %v2126_v20 = vmul.f32 %v2118_v5, %v2110_v37  ;;  %v2103_v4 = vmul.f32 0.5, %v4233_v38  ;;  %3476 = vst [vmem:[#allocation4 + $0xe0] sm:$0xff] %v3270_v15  ;;  %2151 = vrot.lane.b32.xlu1 %v2110_v37, %s4386_s0  ;;  %v2066_v53 = vpop.f32.mrb[108].mxu1 }
 0x6b2   :  { %4238 = vtanh.f32 %v2090_v21  ;;  %v2083_v1 = vadd.f32 %v2066_v53, %v599_v43  ;;  %v2068_v29 = vpop.f32.mrb[109].mxu1  ;;  %v6410_v21 = vld [vmem:[#allocation75_spill] sm:$0xff] }
 0x6b3   :  { %v2134_v12 = vadd.f32 %v2126_v20, %v571_v47  ;;  %v2111_v61 = vadd.f32 0.5, %v2103_v4  ;;  %v583_v59 = vadd.f32 %v6410_v21, %v5109_v45 }
 0x6b4   :  { %v4235_v6 = vpop.eup %4234  ;;  %v2091_v31 = vmul.f32 0.5, %v2083_v1 }
 0x6b5   :  { %v2127_v28 = vmul.f32 %v2119_v41, %v2111_v61  ;;  %v2104_v36 = vmul.f32 0.5, %v4235_v6  ;;  %2153 = vrot.lane.b32.xlu0 %v2111_v61, %s4386_s0  ;;  %v2072_v16 = vpop.f32.mrb[110].mxu1  ;;  %v3755_v27 = vpop.f32.mrb[126].mxu0 }
 0x6b6   :  { %4240 = vtanh.f32 %v2091_v31  ;;  %v2084_v23 = vadd.f32 %v2072_v16, %v605_v34  ;;  %v3285_v43 = vadd.f32 %v5684_v39, %v3755_v27  ;;  %v2074_v46 = vpop.f32.mrb[111].mxu1  ;;  %v3279_v49 = vpop.f32.mrb[127].mxu0  ;;  %v6411_v34 = vld [vmem:[#allocation77_spill] sm:$0xff] }
 0x6b7   :  { %v2135_v57 = vadd.f32 %v2127_v28, %v577_v10  ;;  %v2112_v37 = vadd.f32 0.5, %v2104_v36  ;;  %v3280_v5 = vadd.f32 %v5684_v39, %v3279_v49  ;;  %v589_v1 = vadd.f32 %v6411_v34, %v5109_v45  ;;  %v6412_v28 = vld [vmem:[#allocation79_spill] sm:$0xff] }
 0x6b8   :  { %v4237_v15 = vpop.eup %4236  ;;  %v2092_v38 = vmul.f32 0.5, %v2084_v23  ;;  %3479 = vst [vmem:[#allocation4 + $0xf8] sm:$0xff] %v3285_v43  ;;  %v595_v36 = vadd.f32 %v6412_v28, %v5109_v45  ;;  %v2123_v43 = vadd.f32 %v5833_v17, %v2068_v29  ;;  %v2124_v21 = vadd.f32 %v5833_v17, %v2074_v46 }
 0x6b9   :  { %v2128_v47 = vmul.f32 %v2120_v14, %v2112_v37  ;;  %v2105_v20 = vmul.f32 0.5, %v4237_v15  ;;  %3478 = vst [vmem:[#allocation4 + $0xf0] sm:$0xff] %v3280_v5  ;;  %2155 = vrot.lane.b32.xlu1 %v2112_v37, %s4386_s0  ;;  %v6413_v37 = vld [vmem:[#allocation81_spill] sm:$0xff] }
 0x6ba   :  { %4242 = vtanh.f32 %v2092_v38  ;;  %v601_v14 = vadd.f32 %v6413_v37, %v5109_v45 }
 0x6bb   :  { %v2136_v4 = vadd.f32 %v2128_v47, %v583_v59  ;;  %v2113_v53 = vadd.f32 0.5, %v2105_v20  ;;  %v6414_v59 = vld [vmem:[#allocation83_spill] sm:$0xff]  ;;  %4244 = vtanh.f32 %v5816_v8 }
 0x6bc   :  { %v4239_v2 = vpop.eup %4238  ;;  %v607_v47 = vadd.f32 %v6414_v59, %v5109_v45  ;;  %4246 = vtanh.f32 %v2134_v12 }
 0x6bd   :  { %v2129_v61 = vmul.f32 %v2121_v3, %v2113_v53  ;;  %v2106_v41 = vmul.f32 0.5, %v4239_v2  ;;  %2157 = vrot.lane.b32.xlu0 %v2113_v53, %s4386_s0  ;;  %4248 = vtanh.f32 %v2135_v57 }
 0x6be   :  { %4250 = vtanh.f32 %v2136_v4 }
 0x6bf   :  { %v2137_v6 = vadd.f32 %v2129_v61, %v589_v1  ;;  %v2114_v31 = vadd.f32 0.5, %v2106_v41 }
 0x6c0   :  { %v4241_v10 = vpop.eup %4240 }
 0x6c1   :  { %v2130_v16 = vmul.f32 %v2122_v60, %v2114_v31  ;;  %v2107_v27 = vmul.f32 0.5, %v4241_v10  ;;  %2159 = vrot.lane.b32.xlu1 %v2114_v31, %s4386_s0  ;;  %4252 = vtanh.f32 %v2137_v6 }
 0x6c3   :  { %v2138_v30 = vadd.f32 %v2130_v16, %v595_v36  ;;  %v2115_v23 = vadd.f32 0.5, %v2107_v27 }
 0x6c4   :  { %v4243_v49 = vpop.eup %4242 }
 0x6c5   :  { %v2131_v5 = vmul.f32 %v2123_v43, %v2115_v23  ;;  %v2108_v15 = vmul.f32 0.5, %v4243_v49  ;;  %2161 = vrot.lane.b32.xlu0 %v2115_v23, %s4386_s0  ;;  %v4245_v2 = vpop.eup %4244  ;;  %4254 = vtanh.f32 %v2138_v30 }
 0x6c6   :  { %v4247_v31 = vpop.eup %4246 }
 0x6c7   :  { %v2139_v52 = vadd.f32 %v2131_v5, %v601_v14  ;;  %v2116_v38 = vadd.f32 0.5, %v2108_v15  ;;  %v4249_v57 = vpop.eup %4248 }
 0x6c8   :  { %v4251_v16 = vpop.eup %4250 }
 0x6c9   :  { %v2132_v20 = vmul.f32 %v2124_v21, %v2116_v38  ;;  %2163 = vrot.lane.b32.xlu1 %v2116_v38, %s4386_s0  ;;  %4256 = vtanh.f32 %v2139_v52 }
 0x6cb   :  { %v2140_v53 = vadd.f32 %v2132_v20, %v607_v47  ;;  %v4253_v49 = vpop.eup %4252 }
 0x6cd   :  { %4258 = vtanh.f32 %v2140_v53 }
 0x6cf   :  { %v4255_v52 = vpop.eup %4254 }
 0x6d3   :  { %v4257_v20 = vpop.eup %4256 }
 0x71f   :  { %v2150_v29 = vpop.permute.xlu0 %2149 }
 0x720   :  { %v2165_v3 = vsub.f32 1.0, %v2150_v29  ;;  %v2181_v1 = vmul.f32 %v2150_v29, %v5726_v44 }
 0x722   :  { %v2173_v34 = vmul.f32 %v4245_v2, %v2165_v3 }
 0x723   :  { %v2152_v61 = vpop.permute.xlu1 %2151 }
 0x724   :  { %v5860_v46 = vadd.f32 %v2181_v1, %v2173_v34  ;;  %v2166_v41 = vsub.f32 1.0, %v2152_v61  ;;  %v2182_v10 = vmul.f32 %v2152_v61, %v5733_v24  ;;  %v4259_v34 = vpop.eup %4258 }
 0x726   :  { %v2174_v60 = vmul.f32 %v4247_v31, %v2166_v41  ;;  %2286 = vmatmul.mubr.f32.vlgmr.msra.gmra.mrb[112].mxu1 %v5860_v46  ;;  %3756 = vmatprep.mubr.f32.mxu0 %v5860_v46 }
 0x727   :  { %v2154_v8 = vpop.permute.xlu0 %2153  ;;  %2291 = vmatprep.mubr.f32.mxu1 %v6327_v11  ;;  %3999 = vmatpush1.bf16.msra.mxu1 %v4453_v9 }
 0x728   :  { %v5867_v44 = vadd.f32 %v2182_v10, %v2174_v60  ;;  %v2167_v12 = vsub.f32 1.0, %v2154_v8  ;;  %4001 = vmatprep.subr.bf16.mxu1 %v4466_v13  ;;  %v2183_v28 = vmul.f32 %v2154_v8, %v5741_v35  ;;  %v6416_v60 = vld [vmem:[#allocation86_spill] sm:$0xff] }
 0x729   :  { %v617_v10 = vadd.f32 %v6416_v60, %v5051_v63 }
 0x72a   :  { %v2175_v4 = vmul.f32 %v4249_v57, %v2167_v12  ;;  %2292 = vmatmul.mubr.f32.gmra.mrb[114].mxu1 %v5867_v44  ;;  %3757 = vmatmul.mubr.f32.gmra.mrb[128].mxu0 %v5867_v44 }
 0x72b   :  { %v2156_v24 = vpop.permute.xlu1 %2155  ;;  %2297 = vmatprep.mubr.f32.mxu1 %v6327_v11  ;;  %4003 = vmatpush1.bf16.msra.mxu1 %v4485_v18 }
 0x72c   :  { %v5875_v6 = vadd.f32 %v2183_v28, %v2175_v4  ;;  %v2168_v36 = vsub.f32 1.0, %v2156_v24  ;;  %4005 = vmatprep.subr.bf16.mxu1 %v4488_v19  ;;  %v2184_v23 = vmul.f32 %v2156_v24, %v5749_v54  ;;  %v6417_v24 = vld [vmem:[#allocation88_spill] sm:$0xff] }
 0x72e   :  { %v2176_v27 = vmul.f32 %v4251_v16, %v2168_v36  ;;  %2298 = vmatmul.mubr.f32.gmra.mrb[116].mxu1 %v5875_v6  ;;  %3759 = vmatprep.mubr.f32.mxu0 %v5875_v6  ;;  %v623_v36 = vadd.f32 %v6417_v24, %v5051_v63  ;;  %v6421_v24 = vld [vmem:[#allocation85_spill] sm:$0xff] }
 0x72f   :  { %v2158_v35 = vpop.permute.xlu0 %2157  ;;  %2303 = vmatprep.mubr.f32.mxu1 %v6327_v11  ;;  %4007 = vmatpush1.bf16.msra.mxu1 %v4508_v25 }
 0x730   :  { %v5883_v30 = vadd.f32 %v2184_v23, %v2176_v27  ;;  %v2169_v43 = vsub.f32 1.0, %v2158_v35  ;;  %4009 = vmatprep.subr.bf16.mxu1 %v4511_v26  ;;  %v2185_v14 = vmul.f32 %v2158_v35, %v5757_v55 }
 0x732   :  { %v2177_v37 = vmul.f32 %v4253_v49, %v2169_v43  ;;  %2304 = vmatmul.mubr.f32.gmra.mrb[118].mxu1 %v5883_v30  ;;  %3760 = vmatmul.mubr.f32.gmra.mrb[130].mxu0 %v5883_v30 }
 0x733   :  { %v2160_v54 = vpop.permute.xlu1 %2159  ;;  %2309 = vmatprep.mubr.f32.mxu1 %v6327_v11  ;;  %4011 = vmatpush1.bf16.msra.mxu1 %v4531_v32 }
 0x734   :  { %v5891_v5 = vadd.f32 %v2185_v14, %v2177_v37  ;;  %v2170_v15 = vsub.f32 1.0, %v2160_v54  ;;  %4013 = vmatprep.subr.bf16.mxu1 %v4534_v33  ;;  %v2186_v21 = vmul.f32 %v2160_v54, %v5765_v51  ;;  %v6418_v37 = vld [vmem:[#allocation90_spill] sm:$0xff] }
 0x735   :  { %v629_v14 = vadd.f32 %v6418_v37, %v5051_v63 }
 0x736   :  { %v2178_v38 = vmul.f32 %v4255_v52, %v2170_v15  ;;  %2310 = vmatmul.mubr.f32.gmra.mrb[120].mxu1 %v5891_v5  ;;  %3762 = vmatprep.mubr.f32.mxu0 %v5891_v5 }
 0x737   :  { %v2162_v55 = vpop.permute.xlu0 %2161  ;;  %2315 = vmatprep.mubr.f32.mxu1 %v6327_v11  ;;  %4015 = vmatpush1.bf16.msra.mxu1 %v4558_v40 }
 0x738   :  { %v5899_v59 = vadd.f32 %v2186_v21, %v2178_v38  ;;  %v2171_v47 = vsub.f32 1.0, %v2162_v55  ;;  %4017 = vmatprep.subr.bf16.mxu1 %v4564_v42  ;;  %v2187_v29 = vmul.f32 %v2162_v55, %v5773_v22  ;;  %v6419_v55 = vld [vmem:[#allocation92_spill] sm:$0xff] }
 0x73a   :  { %v2179_v53 = vmul.f32 %v4257_v20, %v2171_v47  ;;  %2316 = vmatmul.mubr.f32.gmra.mrb[122].mxu1 %v5899_v59  ;;  %3763 = vmatmul.mubr.f32.gmra.mrb[132].mxu0 %v5899_v59  ;;  %v635_v47 = vadd.f32 %v6419_v55, %v5051_v63 }
 0x73b   :  { %v2164_v51 = vpop.permute.xlu1 %2163  ;;  %2321 = vmatprep.mubr.f32.mxu1 %v6327_v11  ;;  %4019 = vmatpush1.bf16.msra.mxu1 %v4586_v48 }
 0x73c   :  { %v5907_v3 = vadd.f32 %v2187_v29, %v2179_v53  ;;  %v2172_v2 = vsub.f32 1.0, %v2164_v51  ;;  %4021 = vmatprep.subr.bf16.mxu1 %v4592_v50  ;;  %v2188_v61 = vmul.f32 %v2164_v51, %v5781_v0  ;;  %v6415_v0 = vld [vmem:[#allocation84_spill] sm:$0xff] }
 0x73d   :  { %v611_v41 = vadd.f32 %v6415_v0, %v5051_v63 }
 0x73e   :  { %v2180_v1 = vmul.f32 %v4259_v34, %v2172_v2  ;;  %2322 = vmatmul.mubr.f32.gmra.mrb[124].mxu1 %v5907_v3  ;;  %3765 = vmatprep.mubr.f32.mxu0 %v5907_v3 }
 0x73f   :  { %2327 = vmatprep.mubr.f32.mxu1 %v6327_v11  ;;  %4023 = vmatpush1.bf16.msra.mxu1 %v4614_v56 }
 0x740   :  { %v5915_v22 = vadd.f32 %v2188_v61, %v2180_v1  ;;  %4025 = vmatprep.subr.bf16.mxu1 %v4620_v58 }
 0x742   :  { %2328 = vmatmul.mubr.f32.gmra.mrb[126].mxu1 %v5915_v22  ;;  %3766 = vmatmul.mubr.f32.gmra.mrb[134].mxu0 %v5915_v22 }
 0x743   :  { %4027 = vmatpush1.bf16.msra.mxu1 %v4636_v62  ;;  %2542 = vmatprep.mubr.f32.mxu1 %v6327_v11 }
 0x744   :  { %4029 = vmatprep.subr.bf16.mxu1 %v4447_v7 }
 0x7f9   :  { %v2287_v31 = vpop.f32.mrb[112].mxu1 }
 0x7fa   :  { %v2334_v8 = vadd.f32 %v2287_v31, %v611_v41  ;;  %v2289_v12 = vpop.f32.mrb[113].mxu1  ;;  %v6420_v41 = vld [vmem:[#allocation94_spill] sm:$0xff] }
 0x7fb   :  { %v641_v31 = vadd.f32 %v6420_v41, %v5051_v63 }
 0x7fc   :  { %v2342_v57 = vmul.f32 0.5, %v2334_v8 }
 0x7fd   :  { %v2293_v4 = vpop.f32.mrb[114].mxu1  ;;  %v3758_v28 = vpop.f32.mrb[128].mxu0 }
 0x7fe   :  { %4260 = vtanh.f32 %v2342_v57  ;;  %v2335_v16 = vadd.f32 %v2293_v4, %v617_v10  ;;  %v3295_v27 = vadd.f32 %v5684_v39, %v3758_v28  ;;  %v2295_v7 = vpop.f32.mrb[115].mxu1  ;;  %v3289_v23 = vpop.f32.mrb[129].mxu0  ;;  %v2374_v57 = vadd.f32 %v5833_v17, %v2289_v12 }
 0x7ff   :  { %v3290_v35 = vadd.f32 %v5684_v39, %v3289_v23 }
 0x800   :  { %v2343_v43 = vmul.f32 0.5, %v2335_v16  ;;  %3481 = vst [vmem:[#allocation4 + $0x108] sm:$0xff] %v3295_v27 }
 0x801   :  { %3480 = vst [vmem:[#allocation4 + $0x100] sm:$0xff] %v3290_v35  ;;  %v2299_v49 = vpop.f32.mrb[116].mxu1 }
 0x802   :  { %4262 = vtanh.f32 %v2343_v43  ;;  %v2336_v54 = vadd.f32 %v2299_v49, %v623_v36  ;;  %v2301_v15 = vpop.f32.mrb[117].mxu1  ;;  %v613_v36 = vadd.f32 %v6421_v24, %v5109_v45  ;;  %v6422_v43 = vld [vmem:[#allocation96_spill] sm:$0xff] }
 0x803   :  { %v647_v49 = vadd.f32 %v6422_v43, %v5051_v63 }
 0x804   :  { %v2344_v52 = vmul.f32 0.5, %v2336_v54 }
 0x805   :  { %v2305_v38 = vpop.f32.mrb[118].mxu1  ;;  %v3761_v21 = vpop.f32.mrb[130].mxu0 }
 0x806   :  { %4264 = vtanh.f32 %v2344_v52  ;;  %v2337_v20 = vadd.f32 %v2305_v38, %v629_v14  ;;  %v3305_v53 = vadd.f32 %v5684_v39, %v3761_v21  ;;  %v5936_v29 = vpop.f32.mrb[119].mxu1  ;;  %v3299_v51 = vpop.f32.mrb[131].mxu0  ;;  %v2375_v21 = vadd.f32 %v5833_v17, %v2295_v7 }
 0x807   :  { %v3300_v2 = vadd.f32 %v5684_v39, %v3299_v51 }
 0x808   :  { %v4261_v34 = vpop.eup %4260  ;;  %v2345_v1 = vmul.f32 0.5, %v2337_v20  ;;  %3483 = vst [vmem:[#allocation4 + $0x118] sm:$0xff] %v3305_v53  ;;  %v6423_v53 = vld [vmem:[#allocation87_spill] sm:$0xff] }
 0x809   :  { %v2358_v61 = vmul.f32 0.5, %v4261_v34  ;;  %3482 = vst [vmem:[#allocation4 + $0x110] sm:$0xff] %v3300_v2  ;;  %v2311_v0 = vpop.f32.mrb[120].mxu1  ;;  %v619_v51 = vadd.f32 %v6423_v53, %v5109_v45 }
 0x80a   :  { %4266 = vtanh.f32 %v2345_v1  ;;  %v2338_v60 = vadd.f32 %v2311_v0, %v635_v47  ;;  %v5941_v10 = vpop.f32.mrb[121].mxu1 }
 0x80b   :  { %v2366_v8 = vadd.f32 0.5, %v2358_v61  ;;  %v6424_v61 = vld [vmem:[#allocation98_spill] sm:$0xff] }
 0x80c   :  { %v4263_v4 = vpop.eup %4262  ;;  %v2346_v28 = vmul.f32 0.5, %v2338_v60  ;;  %v653_v0 = vadd.f32 %v6424_v61, %v5051_v63 }
 0x80d   :  { %v2382_v16 = vmul.f32 %v2374_v57, %v2366_v8  ;;  %v2359_v27 = vmul.f32 0.5, %v4263_v4  ;;  %v3764_v23 = vpop.f32.mrb[132].mxu0  ;;  %2406 = vrot.lane.b32.xlu0 %v2366_v8, %s4386_s0  ;;  %v2317_v35 = vpop.f32.mrb[122].mxu1  ;;  %v2376_v8 = vadd.f32 %v5833_v17, %v2301_v15  ;;  %v2377_v15 = vadd.f32 %v5833_v17, %v5936_v29 }
 0x80e   :  { %4268 = vtanh.f32 %v2346_v28  ;;  %v3315_v37 = vadd.f32 %v5684_v39, %v3764_v23  ;;  %v2339_v14 = vadd.f32 %v2317_v35, %v641_v31  ;;  %v2319_v54 = vpop.f32.mrb[123].mxu1  ;;  %v3309_v12 = vpop.f32.mrb[133].mxu0  ;;  %v6425_v28 = vld [vmem:[#allocation89_spill] sm:$0xff] }
 0x80f   :  { %v5950_v52 = vadd.f32 %v2382_v16, %v613_v36  ;;  %v2367_v38 = vadd.f32 0.5, %v2359_v27  ;;  %v3310_v55 = vadd.f32 %v5684_v39, %v3309_v12  ;;  %v625_v24 = vadd.f32 %v6425_v28, %v5109_v45  ;;  %v6428_v28 = vld [vmem:[#allocation95_spill] sm:$0xff] }
 0x810   :  { %v4265_v47 = vpop.eup %4264  ;;  %3485 = vst [vmem:[#allocation4 + $0x128] sm:$0xff] %v3315_v37  ;;  %v2347_v20 = vmul.f32 0.5, %v2339_v14 }
 0x811   :  { %v2383_v2 = vmul.f32 %v2375_v21, %v2367_v38  ;;  %v2360_v34 = vmul.f32 0.5, %v4265_v47  ;;  %3484 = vst [vmem:[#allocation4 + $0x120] sm:$0xff] %v3310_v55  ;;  %2408 = vrot.lane.b32.xlu1 %v2367_v38, %s4386_s0  ;;  %v2323_v1 = vpop.f32.mrb[124].mxu1  ;;  %v6426_v47 = vld [vmem:[#allocation91_spill] sm:$0xff] }
 0x812   :  { %4270 = vtanh.f32 %v2347_v20  ;;  %v2340_v41 = vadd.f32 %v2323_v1, %v647_v49  ;;  %v2325_v7 = vpop.f32.mrb[125].mxu1  ;;  %v631_v20 = vadd.f32 %v6426_v47, %v5109_v45  ;;  %v2378_v1 = vadd.f32 %v5833_v17, %v5941_v10 }
 0x813   :  { %v2391_v31 = vadd.f32 %v2383_v2, %v619_v51  ;;  %v2368_v60 = vadd.f32 0.5, %v2360_v34 }
 0x814   :  { %v4267_v57 = vpop.eup %4266  ;;  %v2348_v4 = vmul.f32 0.5, %v2340_v41 }
 0x815   :  { %v2384_v36 = vmul.f32 %v2376_v8, %v2368_v60  ;;  %v2361_v16 = vmul.f32 0.5, %v4267_v57  ;;  %2410 = vrot.lane.b32.xlu0 %v2368_v60, %s4386_s0  ;;  %v2329_v27 = vpop.f32.mrb[126].mxu1  ;;  %v3767_v23 = vpop.f32.mrb[134].mxu0  ;;  %v2379_v57 = vadd.f32 %v5833_v17, %v2319_v54 }
 0x816   :  { %4272 = vtanh.f32 %v2348_v4  ;;  %v2341_v35 = vadd.f32 %v2329_v27, %v653_v0  ;;  %v3325_v43 = vadd.f32 %v5684_v39, %v3767_v23  ;;  %v2331_v49 = vpop.f32.mrb[127].mxu1  ;;  %v3319_v37 = vpop.f32.mrb[135].mxu0  ;;  %v2380_v23 = vadd.f32 %v5833_v17, %v2325_v7 }
 0x817   :  { %v2392_v14 = vadd.f32 %v2384_v36, %v625_v24  ;;  %v2369_v12 = vadd.f32 0.5, %v2361_v16  ;;  %v3320_v38 = vadd.f32 %v5684_v39, %v3319_v37  ;;  %v6427_v39 = vld [vmem:[#allocation93_spill] sm:$0xff]  ;;  %v643_v24 = vadd.f32 %v6428_v28, %v5109_v45 }
 0x818   :  { %v4269_v21 = vpop.eup %4268  ;;  %v2349_v55 = vmul.f32 0.5, %v2341_v35  ;;  %3487 = vst [vmem:[#allocation4 + $0x138] sm:$0xff] %v3325_v43  ;;  %v637_v61 = vadd.f32 %v6427_v39, %v5109_v45  ;;  %v6429_v43 = vld [vmem:[#allocation97_spill] sm:$0xff] }
 0x819   :  { %v2385_v53 = vmul.f32 %v2377_v15, %v2369_v12  ;;  %v2362_v51 = vmul.f32 0.5, %v4269_v21  ;;  %3486 = vst [vmem:[#allocation4 + $0x130] sm:$0xff] %v3320_v38  ;;  %2412 = vrot.lane.b32.xlu1 %v2369_v12, %s4386_s0  ;;  %v649_v37 = vadd.f32 %v6429_v43, %v5109_v45  ;;  %v2381_v21 = vadd.f32 %v5833_v17, %v2331_v49 }
 0x81a   :  { %4274 = vtanh.f32 %v2349_v55  ;;  %v6430_v55 = vld [vmem:[#allocation99_spill] sm:$0xff] }
 0x81b   :  { %v2393_v2 = vadd.f32 %v2385_v53, %v631_v20  ;;  %v2370_v34 = vadd.f32 0.5, %v2362_v51  ;;  %v655_v47 = vadd.f32 %v6430_v55, %v5109_v45  ;;  %4276 = vtanh.f32 %v5950_v52 }
 0x81c   :  { %v4271_v29 = vpop.eup %4270  ;;  %4278 = vtanh.f32 %v2391_v31 }
 0x81d   :  { %v2386_v0 = vmul.f32 %v2378_v1, %v2370_v34  ;;  %v2363_v41 = vmul.f32 0.5, %v4271_v29  ;;  %2414 = vrot.lane.b32.xlu0 %v2370_v34, %s4386_s0  ;;  %4280 = vtanh.f32 %v2392_v14 }
 0x81e   :  { %4282 = vtanh.f32 %v2393_v2 }
 0x81f   :  { %v2394_v60 = vadd.f32 %v2386_v0, %v637_v61  ;;  %v2371_v8 = vadd.f32 0.5, %v2363_v41 }
 0x820   :  { %v4273_v4 = vpop.eup %4272 }
 0x821   :  { %v2387_v36 = vmul.f32 %v2379_v57, %v2371_v8  ;;  %v2364_v16 = vmul.f32 0.5, %v4273_v4  ;;  %2416 = vrot.lane.b32.xlu1 %v2371_v8, %s4386_s0  ;;  %4284 = vtanh.f32 %v2394_v60 }
 0x823   :  { %v2395_v10 = vadd.f32 %v2387_v36, %v643_v24  ;;  %v2372_v27 = vadd.f32 0.5, %v2364_v16 }
 0x824   :  { %v4275_v35 = vpop.eup %4274 }
 0x825   :  { %v2388_v12 = vmul.f32 %v2380_v23, %v2372_v27  ;;  %v2365_v15 = vmul.f32 0.5, %v4275_v35  ;;  %2418 = vrot.lane.b32.xlu0 %v2372_v27, %s4386_s0  ;;  %v4277_v34 = vpop.eup %4276  ;;  %4286 = vtanh.f32 %v2395_v10 }
 0x826   :  { %v4279_v0 = vpop.eup %4278 }
 0x827   :  { %v2396_v54 = vadd.f32 %v2388_v12, %v649_v37  ;;  %v2373_v38 = vadd.f32 0.5, %v2365_v15  ;;  %v4281_v14 = vpop.eup %4280 }
 0x829   :  { %v2389_v20 = vmul.f32 %v2381_v21, %v2373_v38  ;;  %2420 = vrot.lane.b32.xlu1 %v2373_v38, %s4386_s0  ;;  %4288 = vtanh.f32 %v2396_v54 }
 0x82b   :  { %v2397_v53 = vadd.f32 %v2389_v20, %v655_v47 }
 0x82d   :  { %4290 = vtanh.f32 %v2397_v53 }
 0x87f   :  { %v2407_v7 = vpop.permute.xlu0 %2406 }
 0x880   :  { %v2422_v51 = vsub.f32 1.0, %v2407_v7  ;;  %v2438_v29 = vmul.f32 %v2407_v7, %v5860_v46 }
 0x882   :  { %v2430_v1 = vmul.f32 %v4277_v34, %v2422_v51 }
 0x883   :  { %v2409_v39 = vpop.permute.xlu1 %2408 }
 0x884   :  { %v5989_v49 = vadd.f32 %v2438_v29, %v2430_v1  ;;  %v2423_v61 = vsub.f32 1.0, %v2409_v39  ;;  %v2439_v8 = vmul.f32 %v2409_v39, %v5867_v44  ;;  %v6433_v29 = vld [vmem:[#allocation11_spill] sm:$0xff] }
 0x885   :  { %v671_v39 = vadd.f32 %v6433_v29, %v5051_v63 }
 0x886   :  { %v2431_v41 = vmul.f32 %v4279_v0, %v2423_v61  ;;  %2543 = vmatmul.mubr.f32.vlgmr.msra.gmra.mrb[128].mxu1 %v5989_v49  ;;  %3768 = vmatprep.mubr.f32.mxu0 %v5989_v49 }
 0x887   :  { %v2411_v52 = vpop.permute.xlu0 %2410  ;;  %2548 = vmatprep.mubr.f32.mxu1 %v6327_v11  ;;  %4031 = vmatpush1.bf16.msra.mxu1 %v4453_v9 }
 0x888   :  { %v5996_v46 = vadd.f32 %v2439_v8, %v2431_v41  ;;  %v2424_v31 = vsub.f32 1.0, %v2411_v52  ;;  %4033 = vmatprep.subr.bf16.mxu1 %v4466_v13  ;;  %v2440_v57 = vmul.f32 %v2411_v52, %v5875_v6  ;;  %v4283_v13 = vpop.eup %4282  ;;  %v6434_v52 = vld [vmem:[#allocation13_spill] sm:$0xff] }
 0x88a   :  { %v2432_v2 = vmul.f32 %v4281_v14, %v2424_v31  ;;  %2549 = vmatmul.mubr.f32.gmra.mrb[130].mxu1 %v5996_v46  ;;  %3769 = vmatmul.mubr.f32.gmra.mrb[136].mxu0 %v5996_v46  ;;  %v677_v31 = vadd.f32 %v6434_v52, %v5051_v63 }
 0x88b   :  { %v2413_v44 = vpop.permute.xlu1 %2412  ;;  %2554 = vmatprep.mubr.f32.mxu1 %v6327_v11  ;;  %4035 = vmatpush1.bf16.msra.mxu1 %v4485_v18 }
 0x88c   :  { %v6004_v9 = vadd.f32 %v2440_v57, %v2432_v2  ;;  %v2425_v60 = vsub.f32 1.0, %v2413_v44  ;;  %4037 = vmatprep.subr.bf16.mxu1 %v4488_v19  ;;  %v2441_v28 = vmul.f32 %v2413_v44, %v5883_v30  ;;  %v4285_v19 = vpop.eup %4284 }
 0x88e   :  { %v2433_v4 = vmul.f32 %v4283_v13, %v2425_v60  ;;  %2555 = vmatmul.mubr.f32.gmra.mrb[132].mxu1 %v6004_v9  ;;  %3771 = vmatprep.mubr.f32.mxu0 %v6004_v9 }
 0x88f   :  { %v2415_v6 = vpop.permute.xlu0 %2414  ;;  %2560 = vmatprep.mubr.f32.mxu1 %v6327_v11  ;;  %4039 = vmatpush1.bf16.msra.mxu1 %v4508_v25 }
 0x890   :  { %v6012_v18 = vadd.f32 %v2441_v28, %v2433_v4  ;;  %v2426_v24 = vsub.f32 1.0, %v2415_v6  ;;  %4041 = vmatprep.subr.bf16.mxu1 %v4511_v26  ;;  %v2442_v16 = vmul.f32 %v2415_v6, %v5891_v5  ;;  %v4287_v26 = vpop.eup %4286 }
 0x891   :  { %v4289_v43 = vpop.eup %4288 }
 0x892   :  { %v2434_v36 = vmul.f32 %v4285_v19, %v2426_v24  ;;  %2561 = vmatmul.mubr.f32.gmra.mrb[134].mxu1 %v6012_v18  ;;  %3772 = vmatmul.mubr.f32.gmra.mrb[138].mxu0 %v6012_v18  ;;  %v4291_v15 = vpop.eup %4290  ;;  %v6435_v24 = vld [vmem:[#allocation15_spill] sm:$0xff] }
 0x893   :  { %v2417_v30 = vpop.permute.xlu1 %2416  ;;  %2566 = vmatprep.mubr.f32.mxu1 %v6327_v11  ;;  %4043 = vmatpush1.bf16.msra.mxu1 %v4531_v32  ;;  %v683_v19 = vadd.f32 %v6435_v24, %v5051_v63 }
 0x894   :  { %v6020_v25 = vadd.f32 %v2442_v16, %v2434_v36  ;;  %v2427_v10 = vsub.f32 1.0, %v2417_v30  ;;  %4045 = vmatprep.subr.bf16.mxu1 %v4534_v33  ;;  %v2443_v23 = vmul.f32 %v2417_v30, %v5899_v59 }
 0x896   :  { %v2435_v27 = vmul.f32 %v4287_v26, %v2427_v10  ;;  %2567 = vmatmul.mubr.f32.gmra.mrb[136].mxu1 %v6020_v25  ;;  %3774 = vmatprep.mubr.f32.mxu0 %v6020_v25 }
 0x897   :  { %v2419_v5 = vpop.permute.xlu0 %2418  ;;  %2572 = vmatprep.mubr.f32.mxu1 %v6327_v11  ;;  %4047 = vmatpush1.bf16.msra.mxu1 %v4558_v40 }
 0x898   :  { %v6028_v35 = vadd.f32 %v2443_v23, %v2435_v27  ;;  %v2428_v32 = vsub.f32 1.0, %v2419_v5  ;;  %4049 = vmatprep.subr.bf16.mxu1 %v4564_v42  ;;  %v2444_v37 = vmul.f32 %v2419_v5, %v5907_v3 }
 0x89a   :  { %v2436_v33 = vmul.f32 %v4289_v43, %v2428_v32  ;;  %2573 = vmatmul.mubr.f32.gmra.mrb[138].mxu1 %v6028_v35  ;;  %3775 = vmatmul.mubr.f32.gmra.mrb[140].mxu0 %v6028_v35  ;;  %v6436_v32 = vld [vmem:[#allocation17_spill] sm:$0xff] }
 0x89b   :  { %v2421_v59 = vpop.permute.xlu1 %2420  ;;  %2578 = vmatprep.mubr.f32.mxu1 %v6327_v11  ;;  %4051 = vmatpush1.bf16.msra.mxu1 %v4586_v48  ;;  %v6431_v48 = vld [vmem:[#allocation7_spill] sm:$0xff]  ;;  %v689_v43 = vadd.f32 %v6436_v32, %v5051_v63 }
 0x89c   :  { %v6036_v12 = vadd.f32 %v2444_v37, %v2436_v33  ;;  %v2429_v40 = vsub.f32 1.0, %v2421_v59  ;;  %4053 = vmatprep.subr.bf16.mxu1 %v4592_v50  ;;  %v2445_v54 = vmul.f32 %v2421_v59, %v5915_v22  ;;  %v659_v50 = vadd.f32 %v6431_v48, %v5051_v63  ;;  %v6437_v37 = vld [vmem:[#allocation8_spill] sm:$0xff] }
 0x89d   :  { %v661_v59 = vadd.f32 %v6437_v37, %v5109_v45 }
 0x89e   :  { %v2437_v42 = vmul.f32 %v4291_v15, %v2429_v40  ;;  %2579 = vmatmul.mubr.f32.gmra.mrb[140].mxu1 %v6036_v12  ;;  %3777 = vmatprep.mubr.f32.mxu0 %v6036_v12 }
 0x89f   :  { %2584 = vmatprep.mubr.f32.mxu1 %v6327_v11  ;;  %4055 = vmatpush1.bf16.msra.mxu1 %v4614_v56  ;;  %v6432_v56 = vld [vmem:[#allocation9_spill] sm:$0xff] }
 0x8a0   :  { %v6044_v3 = vadd.f32 %v2445_v54, %v2437_v42  ;;  %4057 = vmatprep.subr.bf16.mxu1 %v4620_v58  ;;  %v665_v55 = vadd.f32 %v6432_v56, %v5051_v63 }
 0x8a2   :  { %2585 = vmatmul.mubr.f32.gmra.mrb[142].mxu1 %v6044_v3  ;;  %3778 = vmatmul.mubr.f32.gmra.mrb[142].mxu0 %v6044_v3 }
 0x8a3   :  { %4059 = vmatpush1.bf16.msra.mxu1 %v4636_v62  ;;  %2799 = vmatprep.mubr.f32.mxu1 %v6327_v11  ;;  %v6058_v62 = vld [vmem:[%s6272_s6] ss:$0 sm:$0xff] }
 0x959   :  { %v2544_v22 = vpop.f32.mrb[128].mxu1 }
 0x95a   :  { %v2591_v38 = vadd.f32 %v2544_v22, %v659_v50  ;;  %v2546_v21 = vpop.f32.mrb[129].mxu1 }
 0x95b   :  { %v2631_v23 = vadd.f32 %v5833_v17, %v2546_v21 }
 0x95c   :  { %v2599_v47 = vmul.f32 0.5, %v2591_v38 }
 0x95d   :  { %v2550_v20 = vpop.f32.mrb[130].mxu1  ;;  %v3770_v58 = vpop.f32.mrb[136].mxu0 }
 0x95e   :  { %4292 = vtanh.f32 %v2599_v47  ;;  %v2592_v53 = vadd.f32 %v2550_v20, %v665_v55  ;;  %v3335_v7 = vadd.f32 %v6058_v62, %v3770_v58  ;;  %v2552_v51 = vpop.f32.mrb[131].mxu1  ;;  %v3329_v34 = vpop.f32.mrb[137].mxu0  ;;  %v6438_v58 = vld [vmem:[#allocation19_spill] sm:$0xff] }
 0x95f   :  { %v3330_v1 = vadd.f32 %v6058_v62, %v3329_v34  ;;  %v2632_v55 = vadd.f32 %v5833_v17, %v2552_v51  ;;  %v6439_v34 = vld [vmem:[#allocation10_spill] sm:$0xff] }
 0x960   :  { %v2600_v61 = vmul.f32 0.5, %v2592_v53  ;;  %3489 = vst [vmem:[#allocation4 + $0x148] sm:$0xff] %v3335_v7  ;;  %v695_v53 = vadd.f32 %v6438_v58, %v5051_v63 }
 0x961   :  { %3488 = vst [vmem:[#allocation4 + $0x140] sm:$0xff] %v3330_v1  ;;  %v2556_v0 = vpop.f32.mrb[132].mxu1  ;;  %v667_v1 = vadd.f32 %v6439_v34, %v5109_v45 }
 0x962   :  { %4294 = vtanh.f32 %v2600_v61  ;;  %v2593_v41 = vadd.f32 %v2556_v0, %v671_v39  ;;  %v2558_v8 = vpop.f32.mrb[133].mxu1 }
 0x964   :  { %v2601_v14 = vmul.f32 0.5, %v2593_v41 }
 0x965   :  { %v2562_v2 = vpop.f32.mrb[134].mxu1  ;;  %v3773_v57 = vpop.f32.mrb[138].mxu0 }
 0x966   :  { %4296 = vtanh.f32 %v2601_v14  ;;  %v2594_v44 = vadd.f32 %v2562_v2, %v677_v31  ;;  %v3345_v60 = vadd.f32 %v6058_v62, %v3773_v57  ;;  %v6067_v13 = vpop.f32.mrb[135].mxu1  ;;  %v3339_v4 = vpop.f32.mrb[139].mxu0  ;;  %v2633_v31 = vadd.f32 %v5833_v17, %v2558_v8  ;;  %v6440_v2 = vld [vmem:[#allocation21_spill] sm:$0xff] }
 0x967   :  { %v3340_v28 = vadd.f32 %v6058_v62, %v3339_v4  ;;  %v701_v57 = vadd.f32 %v6440_v2, %v5051_v63 }
 0x968   :  { %v4293_v6 = vpop.eup %4292  ;;  %v2602_v36 = vmul.f32 0.5, %v2594_v44  ;;  %3491 = vst [vmem:[#allocation4 + $0x158] sm:$0xff] %v3345_v60  ;;  %v6441_v60 = vld [vmem:[#allocation12_spill] sm:$0xff] }
 0x969   :  { %v2615_v16 = vmul.f32 0.5, %v4293_v6  ;;  %3490 = vst [vmem:[#allocation4 + $0x150] sm:$0xff] %v3340_v28  ;;  %v2568_v30 = vpop.f32.mrb[136].mxu1  ;;  %v673_v4 = vadd.f32 %v6441_v60, %v5109_v45 }
 0x96a   :  { %4298 = vtanh.f32 %v2602_v36  ;;  %v2595_v10 = vadd.f32 %v2568_v30, %v683_v19  ;;  %v6072_v26 = vpop.f32.mrb[137].mxu1 }
 0x96b   :  { %v2623_v27 = vadd.f32 0.5, %v2615_v16 }
 0x96c   :  { %v4295_v5 = vpop.eup %4294  ;;  %v2603_v33 = vmul.f32 0.5, %v2595_v10 }
 0x96d   :  { %v2639_v40 = vmul.f32 %v2631_v23, %v2623_v27  ;;  %v2616_v15 = vmul.f32 0.5, %v4295_v5  ;;  %v3776_v42 = vpop.f32.mrb[140].mxu0  ;;  %2663 = vrot.lane.b32.xlu0 %v2623_v27, %s4386_s0  ;;  %v2574_v54 = vpop.f32.mrb[138].mxu1  ;;  %v2634_v23 = vadd.f32 %v5833_v17, %v6067_v13 }
 0x96e   :  { %4300 = vtanh.f32 %v2603_v33  ;;  %v3355_v48 = vadd.f32 %v6058_v62, %v3776_v42  ;;  %v2596_v50 = vadd.f32 %v2574_v54, %v689_v43  ;;  %v2576_v22 = vpop.f32.mrb[139].mxu1  ;;  %v3349_v38 = vpop.f32.mrb[141].mxu0  ;;  %v6442_v33 = vld [vmem:[#allocation14_spill] sm:$0xff]  ;;  %v2635_v54 = vadd.f32 %v5833_v17, %v6072_v26 }
 0x96f   :  { %v6081_v21 = vadd.f32 %v2639_v40, %v661_v59  ;;  %v2624_v56 = vadd.f32 0.5, %v2616_v15  ;;  %v3350_v47 = vadd.f32 %v6058_v62, %v3349_v38  ;;  %v679_v37 = vadd.f32 %v6442_v33, %v5109_v45 }
 0x970   :  { %v4297_v20 = vpop.eup %4296  ;;  %3493 = vst [vmem:[#allocation4 + $0x168] sm:$0xff] %v3355_v48  ;;  %v2604_v7 = vmul.f32 0.5, %v2596_v50  ;;  %v6443_v48 = vld [vmem:[#allocation16_spill] sm:$0xff] }
 0x971   :  { %v2640_v29 = vmul.f32 %v2632_v55, %v2624_v56  ;;  %v2617_v39 = vmul.f32 0.5, %v4297_v20  ;;  %3492 = vst [vmem:[#allocation4 + $0x160] sm:$0xff] %v3350_v47  ;;  %2665 = vrot.lane.b32.xlu1 %v2624_v56, %s4386_s0  ;;  %v2580_v61 = vpop.f32.mrb[140].mxu1  ;;  %v685_v50 = vadd.f32 %v6443_v48, %v5109_v45  ;;  %v2636_v20 = vadd.f32 %v5833_v17, %v2576_v22 }
 0x972   :  { %4302 = vtanh.f32 %v2604_v7  ;;  %v2597_v0 = vadd.f32 %v2580_v61, %v695_v53  ;;  %v2582_v51 = vpop.f32.mrb[141].mxu1  ;;  %v6444_v53 = vld [vmem:[#allocation18_spill] sm:$0xff] }
 0x973   :  { %v2648_v41 = vadd.f32 %v2640_v29, %v667_v1  ;;  %v2625_v52 = vadd.f32 0.5, %v2617_v39  ;;  %v691_v7 = vadd.f32 %v6444_v53, %v5109_v45  ;;  %v2637_v39 = vadd.f32 %v5833_v17, %v2582_v51 }
 0x974   :  { %v4299_v14 = vpop.eup %4298  ;;  %v2605_v44 = vmul.f32 0.5, %v2597_v0  ;;  %v6445_v0 = vld [vmem:[#allocation20_spill] sm:$0xff] }
 0x975   :  { %v2641_v28 = vmul.f32 %v2633_v31, %v2625_v52  ;;  %v2618_v6 = vmul.f32 0.5, %v4299_v14  ;;  %2667 = vrot.lane.b32.xlu0 %v2625_v52, %s4386_s0  ;;  %v2586_v24 = vpop.f32.mrb[142].mxu1  ;;  %v3779_v19 = vpop.f32.mrb[142].mxu0  ;;  %v697_v52 = vadd.f32 %v6445_v0, %v5109_v45  ;;  %v6447_v0 = vld [vmem:[#allocation23_spill] sm:$0xff] }
 0x976   :  { %4304 = vtanh.f32 %v2605_v44  ;;  %v2598_v36 = vadd.f32 %v2586_v24, %v701_v57  ;;  %v3365_v16 = vadd.f32 %v6058_v62, %v3779_v19  ;;  %v2588_v30 = vpop.f32.mrb[143].mxu1  ;;  %v3359_v8 = vpop.f32.mrb[143].mxu0  ;;  %v6446_v44 = vld [vmem:[#allocation22_spill] sm:$0xff] }
 0x977   :  { %v2649_v10 = vadd.f32 %v2641_v28, %v673_v4  ;;  %v2626_v27 = vadd.f32 0.5, %v2618_v6  ;;  %v3360_v5 = vadd.f32 %v6058_v62, %v3359_v8  ;;  %v2638_v57 = vadd.f32 %v5833_v17, %v2588_v30 }
 0x978   :  { %v4301_v32 = vpop.eup %4300  ;;  %v2606_v43 = vmul.f32 0.5, %v2598_v36  ;;  %3495 = vst [vmem:[#allocation4 + $0x178] sm:$0xff] %v3365_v16  ;;  %v703_v60 = vadd.f32 %v6446_v44, %v5109_v45 }
 0x979   :  { %v2642_v59 = vmul.f32 %v2634_v23, %v2626_v27  ;;  %v2619_v40 = vmul.f32 0.5, %v4301_v32  ;;  %3494 = vst [vmem:[#allocation4 + $0x170] sm:$0xff] %v3360_v5  ;;  %2669 = vrot.lane.b32.xlu1 %v2626_v27, %s4386_s0 }
 0x97a   :  { %4306 = vtanh.f32 %v2606_v43 }
 0x97b   :  { %v2650_v15 = vadd.f32 %v2642_v59, %v679_v37  ;;  %v2627_v42 = vadd.f32 0.5, %v2619_v40  ;;  %4308 = vtanh.f32 %v6081_v21 }
 0x97c   :  { %v4303_v13 = vpop.eup %4302  ;;  %4310 = vtanh.f32 %v2648_v41 }
 0x97d   :  { %v2643_v38 = vmul.f32 %v2635_v54, %v2627_v42  ;;  %v2620_v56 = vmul.f32 0.5, %v4303_v13  ;;  %2671 = vrot.lane.b32.xlu0 %v2627_v42, %s4386_s0  ;;  %4312 = vtanh.f32 %v2649_v10 }
 0x97e   :  { %4314 = vtanh.f32 %v2650_v15 }
 0x97f   :  { %v2651_v55 = vadd.f32 %v2643_v38, %v685_v50  ;;  %v2628_v47 = vadd.f32 0.5, %v2620_v56 }
 0x980   :  { %v4305_v58 = vpop.eup %4304 }
 0x981   :  { %v2644_v34 = vmul.f32 %v2636_v20, %v2628_v47  ;;  %v2621_v1 = vmul.f32 0.5, %v4305_v58  ;;  %2673 = vrot.lane.b32.xlu1 %v2628_v47, %s4386_s0  ;;  %4316 = vtanh.f32 %v2651_v55 }
 0x983   :  { %v2652_v26 = vadd.f32 %v2644_v34, %v691_v7  ;;  %v2629_v29 = vadd.f32 0.5, %v2621_v1 }
 0x984   :  { %v4307_v61 = vpop.eup %4306 }
 0x985   :  { %v2645_v31 = vmul.f32 %v2637_v39, %v2629_v29  ;;  %v2622_v14 = vmul.f32 0.5, %v4307_v61  ;;  %2675 = vrot.lane.b32.xlu0 %v2629_v29, %s4386_s0  ;;  %v4309_v24 = vpop.eup %4308  ;;  %4318 = vtanh.f32 %v2652_v26 }
 0x986   :  { %v4311_v8 = vpop.eup %4310 }
 0x987   :  { %v2653_v22 = vadd.f32 %v2645_v31, %v697_v52  ;;  %v2630_v2 = vadd.f32 0.5, %v2622_v14  ;;  %v4313_v10 = vpop.eup %4312  ;;  %v707_v52 = vadd.f32 %v6447_v0, %v5051_v63 }
 0x988   :  { %v4315_v37 = vpop.eup %4314 }
 0x989   :  { %v2646_v4 = vmul.f32 %v2638_v57, %v2630_v2  ;;  %2677 = vrot.lane.b32.xlu1 %v2630_v2, %s4386_s0  ;;  %4320 = vtanh.f32 %v2653_v22 }
 0x98b   :  { %v2654_v28 = vadd.f32 %v2646_v4, %v703_v60  ;;  %v4317_v54 = vpop.eup %4316 }
 0x98d   :  { %4322 = vtanh.f32 %v2654_v28 }
 0x98f   :  { %v4319_v56 = vpop.eup %4318 }
 0x993   :  { %v4321_v53 = vpop.eup %4320 }
 0x997   :  { %v4323_v29 = vpop.eup %4322 }
 0x9df   :  { %v2664_v51 = vpop.permute.xlu0 %2663 }
 0x9e0   :  { %v2679_v6 = vsub.f32 1.0, %v2664_v51  ;;  %v2695_v36 = vmul.f32 %v2664_v51, %v5989_v49 }
 0x9e2   :  { %v2687_v19 = vmul.f32 %v4309_v24, %v2679_v6  ;;  %v6449_v24 = vld [vmem:[#allocation27_spill] sm:$0xff] }
 0x9e3   :  { %v2666_v16 = vpop.permute.xlu1 %2665 }
 0x9e4   :  { %v6122_v17 = vadd.f32 %v2695_v36, %v2687_v19  ;;  %v2680_v30 = vsub.f32 1.0, %v2666_v16  ;;  %v2696_v23 = vmul.f32 %v2666_v16, %v5996_v46  ;;  %v719_v19 = vadd.f32 %v6449_v24, %v5051_v63 }
 0x9e6   :  { %v2688_v27 = vmul.f32 %v4311_v8, %v2680_v30  ;;  %2800 = vmatmul.mubr.f32.vlgmr.msra.gmra.mrb[144].mxu1 %v6122_v17  ;;  %3780 = vmatprep.mubr.f32.mxu0 %v6122_v17 }
 0x9e7   :  { %v2668_v21 = vpop.permute.xlu0 %2667  ;;  %2805 = vmatprep.mubr.f32.mxu1 %v6327_v11 }
 0x9e8   :  { %v6128_v41 = vadd.f32 %v2696_v23, %v2688_v27  ;;  %v2681_v49 = vsub.f32 1.0, %v2668_v21  ;;  %v2697_v32 = vmul.f32 %v2668_v21, %v6004_v9  ;;  %v6450_v27 = vld [vmem:[#allocation29_spill] sm:$0xff] }
 0x9e9   :  { %v725_v23 = vadd.f32 %v6450_v27, %v5051_v63 }
 0x9ea   :  { %v2689_v5 = vmul.f32 %v4313_v10, %v2681_v49  ;;  %2806 = vmatmul.mubr.f32.gmra.mrb[146].mxu1 %v6128_v41  ;;  %3781 = vmatmul.mubr.f32.gmra.mrb[144].mxu0 %v6128_v41 }
 0x9eb   :  { %v2670_v46 = vpop.permute.xlu1 %2669  ;;  %2811 = vmatprep.mubr.f32.mxu1 %v6327_v11 }
 0x9ec   :  { %v6134_v43 = vadd.f32 %v2697_v32, %v2689_v5  ;;  %v2682_v33 = vsub.f32 1.0, %v2670_v46  ;;  %v2698_v40 = vmul.f32 %v2670_v46, %v6012_v18 }
 0x9ee   :  { %v2690_v59 = vmul.f32 %v4315_v37, %v2682_v33  ;;  %2812 = vmatmul.mubr.f32.gmra.mrb[148].mxu1 %v6134_v43  ;;  %3783 = vmatprep.mubr.f32.mxu0 %v6134_v43 }
 0x9ef   :  { %v2672_v9 = vpop.permute.xlu0 %2671  ;;  %2817 = vmatprep.mubr.f32.mxu1 %v6327_v11 }
 0x9f0   :  { %v6140_v15 = vadd.f32 %v2698_v40, %v2690_v59  ;;  %v2683_v42 = vsub.f32 1.0, %v2672_v9  ;;  %v2699_v48 = vmul.f32 %v2672_v9, %v6020_v25  ;;  %v6451_v40 = vld [vmem:[#allocation31_spill] sm:$0xff] }
 0x9f1   :  { %v731_v9 = vadd.f32 %v6451_v40, %v5051_v63 }
 0x9f2   :  { %v2691_v13 = vmul.f32 %v4317_v54, %v2683_v42  ;;  %2818 = vmatmul.mubr.f32.gmra.mrb[150].mxu1 %v6140_v15  ;;  %3784 = vmatmul.mubr.f32.gmra.mrb[146].mxu0 %v6140_v15 }
 0x9f3   :  { %v2674_v18 = vpop.permute.xlu1 %2673  ;;  %2823 = vmatprep.mubr.f32.mxu1 %v6327_v11 }
 0x9f4   :  { %v6146_v50 = vadd.f32 %v2699_v48, %v2691_v13  ;;  %v2684_v38 = vsub.f32 1.0, %v2674_v18  ;;  %v2700_v47 = vmul.f32 %v2674_v18, %v6028_v35 }
 0x9f6   :  { %v2692_v55 = vmul.f32 %v4319_v56, %v2684_v38  ;;  %2824 = vmatmul.mubr.f32.gmra.mrb[152].mxu1 %v6146_v50  ;;  %3786 = vmatprep.mubr.f32.mxu0 %v6146_v50  ;;  %v6189_v56 = vld [vmem:[%s6270_s4] ss:$0 sm:$0xff]  ;;  %s4387_s4 = smov [#allocation4]  }
 0x9f7   :  { %v2676_v25 = vpop.permute.xlu0 %2675  ;;  %2829 = vmatprep.mubr.f32.mxu1 %v6327_v11  ;;  %s3517_s16 = sshll.u32 %s4387_s4, 4  ;;  %s3518_s16 = int_to_ptr.vmem [resolvable:$true] %s3517_s16 }
 0x9f8   :  { %v6152_v20 = vadd.f32 %v2700_v47, %v2692_v55  ;;  %v2685_v58 = vsub.f32 1.0, %v2676_v25  ;;  %v2701_v34 = vmul.f32 %v2676_v25, %v6036_v12  ;;  %v6452_v25 = vld [vmem:[#allocation33_spill] sm:$0xff]  ;;  %s4361_s17 = scalar_lea.vmem %s3518_s16, 8192  ;;  %p4366_p1 = scmp.lt.s32.totalorder %s3518_s16, %s3518_s16 }
 0x9f9   :  { %p4362_p0 = scmp.ne.s32.totalorder %s3518_s16, %s4361_s17  ;;  %p4367_p2 = scmp.lt.s32.totalorder %s4361_s17, %s4361_s17 }
 0x9fa   :  { %v2693_v7 = vmul.f32 %v4321_v53, %v2685_v58  ;;  %2830 = vmatmul.mubr.f32.gmra.mrb[154].mxu1 %v6152_v20  ;;  %3787 = vmatmul.mubr.f32.gmra.mrb[148].mxu0 %v6152_v20  ;;  %v737_v58 = vadd.f32 %v6452_v25, %v5051_v63  ;;  %v6458_v25 = vld [vmem:[#allocation30_spill] sm:$0xff] }
 0x9fb   :  { %v2678_v1 = vpop.permute.xlu1 %2677  ;;  %2835 = vmatprep.mubr.f32.mxu1 %v6327_v11  ;;  %p4368_p3 = por %p4367_p2, %p4366_p1 }
 0x9fc   :  { %v6158_v35 = vadd.f32 %v2701_v34, %v2693_v7  ;;  %v2686_v26 = vsub.f32 1.0, %v2678_v1  ;;  %v2702_v61 = vmul.f32 %v2678_v1, %v6044_v3  ;;  %v6448_v3 = vld [vmem:[#allocation25_spill] sm:$0xff]  ;;  %v6453_v7 = vld [vmem:[#allocation24_spill] sm:$0xff] }
 0x9fd   :  { %v713_v2 = vadd.f32 %v6448_v3, %v5051_v63  ;;  %v709_v34 = vadd.f32 %v6453_v7, %v5109_v45  ;;  %p4369_p4 = pnand %p4368_p3, %p4362_p0 }
 0x9fe   :  { %v2694_v39 = vmul.f32 %v4323_v29, %v2686_v26  ;;  %2836 = vmatmul.mubr.f32.gmra.mrb[156].mxu1 %v6158_v35  ;;  %3789 = vmatprep.mubr.f32.mxu0 %v6158_v35 }
 0x9ff   :  { %2841 = vmatprep.mubr.f32.mxu1 %v6327_v11 }
 0xa00   :  { %v6164_v12 = vadd.f32 %v2702_v61, %v2694_v39 }
 0xa02   :  { %2842 = vmatmul.mubr.f32.gmra.mrb[158].mxu1 %v6164_v12  ;;  %3790 = vmatmul.mubr.f32.gmra.mrb[150].mxu0 %v6164_v12 }
 0xab9   :  { %v2801_v31 = vpop.f32.mrb[144].mxu1 }
 0xaba   :  { %v2848_v14 = vadd.f32 %v2801_v31, %v707_v52  ;;  %v2803_v22 = vpop.f32.mrb[145].mxu1 }
 0xabb   :  { %v2888_v55 = vadd.f32 %v6189_v56, %v2803_v22 }
 0xabc   :  { %v2856_v57 = vmul.f32 0.5, %v2848_v14 }
 0xabd   :  { %v2807_v44 = vpop.f32.mrb[146].mxu1  ;;  %v3782_v60 = vpop.f32.mrb[144].mxu0 }
 0xabe   :  { %4324 = vtanh.f32 %v2856_v57  ;;  %v2849_v11 = vadd.f32 %v2807_v44, %v713_v2  ;;  %v3375_v4 = vadd.f32 %v6058_v62, %v3782_v60  ;;  %v2809_v28 = vpop.f32.mrb[147].mxu1  ;;  %v3369_v51 = vpop.f32.mrb[145].mxu0  ;;  %v6454_v44 = vld [vmem:[#allocation35_spill] sm:$0xff] }
 0xabf   :  { %v3370_v6 = vadd.f32 %v6058_v62, %v3369_v51  ;;  %v2889_v3 = vadd.f32 %v6189_v56, %v2809_v28  ;;  %v743_v60 = vadd.f32 %v6454_v44, %v5051_v63 }
 0xac0   :  { %v2857_v36 = vmul.f32 0.5, %v2849_v11  ;;  %3497 = vst [vmem:[#allocation4 + $0x188] sm:$0xff] %v3375_v4  ;;  %v6455_v4 = vld [vmem:[#allocation26_spill] sm:$0xff] }
 0xac1   :  { %3496 = vst [vmem:[#allocation4 + $0x180] sm:$0xff] %v3370_v6  ;;  %v2813_v16 = vpop.f32.mrb[148].mxu1  ;;  %v715_v51 = vadd.f32 %v6455_v4, %v5109_v45 }
 0xac2   :  { %4326 = vtanh.f32 %v2857_v36  ;;  %v2850_v30 = vadd.f32 %v2813_v16, %v719_v19  ;;  %v2815_v8 = vpop.f32.mrb[149].mxu1 }
 0xac3   :  { %v2890_v27 = vadd.f32 %v6189_v56, %v2815_v8 }
 0xac4   :  { %v2858_v21 = vmul.f32 0.5, %v2850_v30 }
 0xac5   :  { %v2819_v49 = vpop.f32.mrb[150].mxu1  ;;  %v3785_v10 = vpop.f32.mrb[146].mxu0 }
 0xac6   :  { %4328 = vtanh.f32 %v2858_v21  ;;  %v2851_v5 = vadd.f32 %v2819_v49, %v725_v23  ;;  %v3385_v32 = vadd.f32 %v6058_v62, %v3785_v10  ;;  %v6179_v46 = vpop.f32.mrb[151].mxu1  ;;  %v3379_v33 = vpop.f32.mrb[147].mxu0  ;;  %v6456_v21 = vld [vmem:[#allocation37_spill] sm:$0xff] }
 0xac7   :  { %v3380_v37 = vadd.f32 %v6058_v62, %v3379_v33  ;;  %v749_v49 = vadd.f32 %v6456_v21, %v5051_v63  ;;  %v2891_v63 = vadd.f32 %v6189_v56, %v6179_v46  ;;  %v6462_v21 = vld [vmem:[#allocation38_spill] sm:$0xff] }
 0xac8   :  { %v4325_v59 = vpop.eup %4324  ;;  %v2859_v42 = vmul.f32 0.5, %v2851_v5  ;;  %3499 = vst [vmem:[#allocation4 + $0x198] sm:$0xff] %v3385_v32  ;;  %v6457_v5 = vld [vmem:[#allocation28_spill] sm:$0xff] }
 0xac9   :  { %v2872_v54 = vmul.f32 0.5, %v4325_v59  ;;  %3498 = vst [vmem:[#allocation4 + $0x190] sm:$0xff] %v3380_v37  ;;  %v2825_v13 = vpop.f32.mrb[152].mxu1  ;;  %v721_v32 = vadd.f32 %v6457_v5, %v5109_v45 }
 0xaca   :  { %4330 = vtanh.f32 %v2859_v42  ;;  %v2852_v48 = vadd.f32 %v2825_v13, %v731_v9  ;;  %v6184_v18 = vpop.f32.mrb[153].mxu1 }
 0xacb   :  { %v2880_v38 = vadd.f32 0.5, %v2872_v54 }
 0xacc   :  { %v4327_v47 = vpop.eup %4326  ;;  %v2860_v53 = vmul.f32 0.5, %v2852_v48 }
 0xacd   :  { %v2896_v1 = vmul.f32 %v2888_v55, %v2880_v38  ;;  %v2873_v26 = vmul.f32 0.5, %v4327_v47  ;;  %v3788_v29 = vpop.f32.mrb[148].mxu0  ;;  %2920 = vrot.lane.b32.xlu0 %v2880_v38, %s4386_s0  ;;  %v2831_v39 = vpop.f32.mrb[154].mxu1 }
 0xace   :  { %4332 = vtanh.f32 %v2860_v53  ;;  %v3395_v61 = vadd.f32 %v6058_v62, %v3788_v29  ;;  %v2853_v0 = vadd.f32 %v2831_v39, %v737_v58  ;;  %v2833_v52 = vpop.f32.mrb[155].mxu1  ;;  %v3389_v31 = vpop.f32.mrb[149].mxu0  ;;  %v727_v58 = vadd.f32 %v6458_v25, %v5109_v45  ;;  %v6459_v29 = vld [vmem:[#allocation32_spill] sm:$0xff] }
 0xacf   :  { %v6198_v14 = vadd.f32 %v2896_v1, %v709_v34  ;;  %v2881_v22 = vadd.f32 0.5, %v2873_v26  ;;  %v3390_v2 = vadd.f32 %v6058_v62, %v3389_v31  ;;  %v2892_v26 = vadd.f32 %v6189_v56, %v6184_v18 }
 0xad0   :  { %v4329_v57 = vpop.eup %4328  ;;  %3501 = vst [vmem:[#allocation4 + $0x1a8] sm:$0xff] %v3395_v61  ;;  %v2861_v11 = vmul.f32 0.5, %v2853_v0  ;;  %v733_v39 = vadd.f32 %v6459_v29, %v5109_v45 }
 0xad1   :  { %v2897_v6 = vmul.f32 %v2889_v3, %v2881_v22  ;;  %v2874_v24 = vmul.f32 0.5, %v4329_v57  ;;  %3500 = vst [vmem:[#allocation4 + $0x1a0] sm:$0xff] %v3390_v2  ;;  %2922 = vrot.lane.b32.xlu1 %v2881_v22, %s4386_s0  ;;  %v2837_v19 = vpop.f32.mrb[156].mxu1  ;;  %v2893_v3 = vadd.f32 %v6189_v56, %v2833_v52  ;;  %v6460_v57 = vld [vmem:[#allocation34_spill] sm:$0xff] }
 0xad2   :  { %4334 = vtanh.f32 %v2861_v11  ;;  %v2854_v36 = vadd.f32 %v2837_v19, %v743_v60  ;;  %v2839_v28 = vpop.f32.mrb[157].mxu1  ;;  %v739_v44 = vadd.f32 %v6460_v57, %v5109_v45 }
 0xad3   :  { %v2905_v16 = vadd.f32 %v2897_v6, %v715_v51  ;;  %v2882_v30 = vadd.f32 0.5, %v2874_v24  ;;  %v2894_v51 = vadd.f32 %v6189_v56, %v2839_v28  ;;  %v6461_v24 = vld [vmem:[#allocation36_spill] sm:$0xff] }
 0xad4   :  { %v4331_v23 = vpop.eup %4330  ;;  %v2862_v10 = vmul.f32 0.5, %v2854_v36  ;;  %v745_v19 = vadd.f32 %v6461_v24, %v5109_v45 }
 0xad5   :  { %v2898_v33 = vmul.f32 %v2890_v27, %v2882_v30  ;;  %v2875_v37 = vmul.f32 0.5, %v4331_v23  ;;  %2924 = vrot.lane.b32.xlu0 %v2882_v30, %s4386_s0  ;;  %v2843_v59 = vpop.f32.mrb[158].mxu1  ;;  %v3791_v40 = vpop.f32.mrb[150].mxu0 }
 0xad6   :  { %4336 = vtanh.f32 %v2862_v10  ;;  %v2855_v9 = vadd.f32 %v2843_v59, %v749_v49  ;;  %v3405_v42 = vadd.f32 %v6058_v62, %v3791_v40  ;;  %v2845_v54 = vpop.f32.mrb[159].mxu1  ;;  %v3399_v8 = vpop.f32.mrb[151].mxu0  ;;  %v751_v49 = vadd.f32 %v6462_v21, %v5109_v45 }
 0xad7   :  { %v2906_v13 = vadd.f32 %v2898_v33, %v721_v32  ;;  %v2883_v48 = vadd.f32 0.5, %v2875_v37  ;;  %v3400_v38 = vadd.f32 %v6058_v62, %v3399_v8  ;;  %v2895_v23 = vadd.f32 %v6189_v56, %v2845_v54 }
 0xad8   :  { %v4333_v55 = vpop.eup %4332  ;;  %v2863_v47 = vmul.f32 0.5, %v2855_v9  ;;  %3503 = vst [vmem:[#allocation4 + $0x1b8] sm:$0xff] %v3405_v42 }
 0xad9   :  { %v2899_v53 = vmul.f32 %v2891_v63, %v2883_v48  ;;  %v2876_v7 = vmul.f32 0.5, %v4333_v55  ;;  %3502 = vst [vmem:[#allocation4 + $0x1b0] sm:$0xff] %v3400_v38  ;;  %2926 = vrot.lane.b32.xlu1 %v2883_v48, %s4386_s0 }
 0xada   :  { %4338 = vtanh.f32 %v2863_v47 }
 0xadb   :  { %v2907_v34 = vadd.f32 %v2899_v53, %v727_v58  ;;  %v2884_v1 = vadd.f32 0.5, %v2876_v7  ;;  %4340 = vtanh.f32 %v6198_v14 }
 0xadc   :  { %v4335_v46 = vpop.eup %4334  ;;  %4342 = vtanh.f32 %v2905_v16 }
 0xadd   :  { %v2900_v61 = vmul.f32 %v2892_v26, %v2884_v1  ;;  %v2877_v0 = vmul.f32 0.5, %v4335_v46  ;;  %2928 = vrot.lane.b32.xlu0 %v2884_v1, %s4386_s0  ;;  %4344 = vtanh.f32 %v2906_v13 }
 0xade   :  { %4346 = vtanh.f32 %v2907_v34 }
 0xadf   :  { %v2908_v31 = vadd.f32 %v2900_v61, %v733_v39  ;;  %v2885_v22 = vadd.f32 0.5, %v2877_v0 }
 0xae0   :  { %v4337_v2 = vpop.eup %4336 }
 0xae1   :  { %v2901_v60 = vmul.f32 %v2893_v3, %v2885_v22  ;;  %v2878_v11 = vmul.f32 0.5, %v4337_v2  ;;  %2930 = vrot.lane.b32.xlu1 %v2885_v22, %s4386_s0  ;;  %4348 = vtanh.f32 %v2908_v31 }
 0xae3   :  { %v2909_v18 = vadd.f32 %v2901_v60, %v739_v44  ;;  %v2886_v4 = vadd.f32 0.5, %v2878_v11 }
 0xae4   :  { %v4339_v6 = vpop.eup %4338 }
 0xae5   :  { %v2902_v36 = vmul.f32 %v2894_v51, %v2886_v4  ;;  %v2879_v30 = vmul.f32 0.5, %v4339_v6  ;;  %2932 = vrot.lane.b32.xlu0 %v2886_v4, %s4386_s0  ;;  %v4341_v33 = vpop.eup %4340  ;;  %4350 = vtanh.f32 %v2909_v18 }
 0xae6   :  { %v4343_v42 = vpop.eup %4342 }
 0xae7   :  { %v2910_v52 = vadd.f32 %v2902_v36, %v745_v19  ;;  %v2887_v27 = vadd.f32 0.5, %v2879_v30  ;;  %v4345_v13 = vpop.eup %4344 }
 0xae8   :  { %v4347_v47 = vpop.eup %4346 }
 0xae9   :  { %v2903_v10 = vmul.f32 %v2895_v23, %v2887_v27  ;;  %2934 = vrot.lane.b32.xlu1 %v2887_v27, %s4386_s0  ;;  %4352 = vtanh.f32 %v2910_v52 }
 0xaeb   :  { %v2911_v5 = vadd.f32 %v2903_v10, %v751_v49  ;;  %v4349_v34 = vpop.eup %4348 }
 0xaed   :  { %4354 = vtanh.f32 %v2911_v5 }
 0xaef   :  { %v4351_v39 = vpop.eup %4350 }
 0xaf3   :  { %v4353_v3 = vpop.eup %4352 }
 0xaf7   :  { %v4355_v11 = vpop.eup %4354 }
 0xb3f   :  { %v2921_v28 = vpop.permute.xlu0 %2920 }
 0xb40   :  { %v2936_v32 = vsub.f32 1.0, %v2921_v28  ;;  %v2952_v59 = vmul.f32 %v2921_v28, %v6122_v17 }
 0xb42   :  { %v2944_v37 = vmul.f32 %v4341_v33, %v2936_v32 }
 0xb43   :  { %v2923_v40 = vpop.permute.xlu1 %2922 }
 0xb44   :  { %v2960_v56 = vadd.f32 %v2952_v59, %v2944_v37  ;;  %v2937_v9 = vsub.f32 1.0, %v2923_v40  ;;  %v2953_v54 = vmul.f32 %v2923_v40, %v6128_v41 }
 0xb46   :  { %v2945_v45 = vmul.f32 %v4343_v42, %v2937_v9  ;;  %3792 = vmatprep.mubr.f32.mxu0 %v2960_v56 }
 0xb47   :  { %v2925_v8 = vpop.permute.xlu0 %2924 }
 0xb48   :  { %v2961_v14 = vadd.f32 %v2953_v54, %v2945_v45  ;;  %v2938_v16 = vsub.f32 1.0, %v2925_v8  ;;  %v2954_v63 = vmul.f32 %v2925_v8, %v6134_v43 }
 0xb4a   :  { %v2946_v48 = vmul.f32 %v4345_v13, %v2938_v16  ;;  %3793 = vmatmul.mubr.f32.gmra.mrb[152].mxu0 %v2961_v14 }
 0xb4b   :  { %v2927_v17 = vpop.permute.xlu1 %2926 }
 0xb4c   :  { %v2962_v38 = vadd.f32 %v2954_v63, %v2946_v48  ;;  %v2939_v55 = vsub.f32 1.0, %v2927_v17  ;;  %v2955_v58 = vmul.f32 %v2927_v17, %v6140_v15 }
 0xb4e   :  { %v2947_v25 = vmul.f32 %v4347_v47, %v2939_v55  ;;  %3795 = vmatprep.mubr.f32.mxu0 %v2962_v38 }
 0xb4f   :  { %v2929_v41 = vpop.permute.xlu0 %2928 }
 0xb50   :  { %v2963_v53 = vadd.f32 %v2955_v58, %v2947_v25  ;;  %v2940_v7 = vsub.f32 1.0, %v2929_v41  ;;  %v2956_v26 = vmul.f32 %v2929_v41, %v6146_v50 }
 0xb52   :  { %v2948_v1 = vmul.f32 %v4349_v34, %v2940_v7  ;;  %3796 = vmatmul.mubr.f32.gmra.mrb[154].mxu0 %v2963_v53 }
 0xb53   :  { %v2931_v43 = vpop.permute.xlu1 %2930 }
 0xb54   :  { %v2964_v46 = vadd.f32 %v2956_v26, %v2948_v1  ;;  %v2941_v29 = vsub.f32 1.0, %v2931_v43  ;;  %v2957_v0 = vmul.f32 %v2931_v43, %v6152_v20 }
 0xb56   :  { %v2949_v61 = vmul.f32 %v4351_v39, %v2941_v29  ;;  %3798 = vmatprep.mubr.f32.mxu0 %v2964_v46 }
 0xb57   :  { %v2933_v15 = vpop.permute.xlu0 %2932 }
 0xb58   :  { %v2965_v31 = vadd.f32 %v2957_v0, %v2949_v61  ;;  %v2942_v22 = vsub.f32 1.0, %v2933_v15  ;;  %v2958_v57 = vmul.f32 %v2933_v15, %v6158_v35 }
 0xb5a   :  { %v2950_v2 = vmul.f32 %v4353_v3, %v2942_v22  ;;  %3799 = vmatmul.mubr.f32.gmra.mrb[156].mxu0 %v2965_v31 }
 0xb5b   :  { %v2935_v44 = vpop.permute.xlu1 %2934 }
 0xb5c   :  { %v2966_v50 = vadd.f32 %v2958_v57, %v2950_v2  ;;  %v2943_v60 = vsub.f32 1.0, %v2935_v44  ;;  %v2959_v4 = vmul.f32 %v2935_v44, %v6164_v12 }
 0xb5e   :  { %v2951_v18 = vmul.f32 %v4355_v11, %v2943_v60  ;;  %3801 = vmatprep.mubr.f32.mxu0 %v2966_v50 }
 0xb60   :  { %v2967_v51 = vadd.f32 %v2959_v4, %v2951_v18 }
 0xb62   :  { %3802 = vmatmul.mubr.f32.gmra.mrb[158].mxu0 %v2967_v51 }
 0xc1d   :  { %v3794_v20 = vpop.f32.mrb[152].mxu0 }
 0xc1e   :  { %v3415_v6 = vadd.f32 %v6058_v62, %v3794_v20  ;;  %v3409_v24 = vpop.f32.mrb[153].mxu0 }
 0xc1f   :  { %v3410_v19 = vadd.f32 %v6058_v62, %v3409_v24 }
 0xc20   :  { %3505 = vst [vmem:[#allocation4 + $0x1c8] sm:$0xff] %v3415_v6 }
 0xc21   :  { %3504 = vst [vmem:[#allocation4 + $0x1c0] sm:$0xff] %v3410_v19 }
 0xc25   :  { %v3797_v35 = vpop.f32.mrb[154].mxu0 }
 0xc26   :  { %v3425_v36 = vadd.f32 %v6058_v62, %v3797_v35  ;;  %v3419_v30 = vpop.f32.mrb[155].mxu0 }
 0xc27   :  { %v3420_v52 = vadd.f32 %v6058_v62, %v3419_v30 }
 0xc28   :  { %3507 = vst [vmem:[#allocation4 + $0x1d8] sm:$0xff] %v3425_v36 }
 0xc29   :  { %3506 = vst [vmem:[#allocation4 + $0x1d0] sm:$0xff] %v3420_v52 }
 0xc2d   :  { %v3800_v12 = vpop.f32.mrb[156].mxu0 }
 0xc2e   :  { %v3435_v27 = vadd.f32 %v6058_v62, %v3800_v12  ;;  %v3429_v23 = vpop.f32.mrb[157].mxu0 }
 0xc2f   :  { %v3430_v21 = vadd.f32 %v6058_v62, %v3429_v23 }
 0xc30   :  { %3509 = vst [vmem:[#allocation4 + $0x1e8] sm:$0xff] %v3435_v27 }
 0xc31   :  { %3508 = vst [vmem:[#allocation4 + $0x1e0] sm:$0xff] %v3430_v21 }
 0xc35   :  { %v3803_v49 = vpop.f32.mrb[158].mxu0 }
 0xc36   :  { %v3445_v10 = vadd.f32 %v6058_v62, %v3803_v49  ;;  %v3439_v5 = vpop.f32.mrb[159].mxu0 }
 0xc37   :  { %v3440_v28 = vadd.f32 %v6058_v62, %v3439_v5 }
 0xc38   :  { %3511 = vst [vmem:[#allocation4 + $0x1f8] sm:$0xff] %v3445_v10 }
 0xc39   :  { %3510 = vst [vmem:[#allocation4 + $0x1f0] sm:$0xff] %v3440_v28 }
 0xc3a   :  { %4372 = shalt.err (!%p4369_p4)
}
 0xc3b   :  { %s4373_s3 = scalar_lea.hbm %s6273_s7, 8192 }
 0xc3c   :  { %p4374_p5 = scmp.ne.s32.totalorder %s6273_s7, %s4373_s3  ;;  %p4377_p6 = scmp.lt.u32.totalorder %s4373_s3, %s6273_s7 }
 0xc3e   :  { %p4379_p7 = pnand %p4377_p6, %p4374_p5 }
 0xc40   :  { %4382 = shalt.err (!%p4379_p7)
}
 0xc41   :  { %s4388_s24 = smov 128   ;;  %s4389_s25 = smov 8  }
 0xc42   :  { %3523 = dma.vmem_to_hbm [thread:$0]  %s3518_s16, 8192, %s6273_s7, [#allocation5], %s4388_s24, %s4388_s24, %s4389_s25  }
 0xc43   :  { %4383 = dma.done.wait [#allocation5], 8192  }
 0xc44   :  { %4384 = vsyncadd [#allocation5], 4294959104 }
 0xc45   :  { %3527 = vsyncpa [#allocation5], 1 }

</bundles_post_ra>
